<compile_context>
chip_gen: v7x
topology: tpu7x:2x2x1
jax: 0.10.0
libtpu: 0.0.40
codegen_flags: <defaults>
</compile_context>

<pallas_src>
import math
import functools

import jax
import jax.numpy as jnp
from jax.experimental import pallas as pl
from jax.experimental.pallas import tpu as pltpu


_GELU_C1 = math.sqrt(2.0 / math.pi)
_GELU_C2 = _GELU_C1 * 0.044715


def _gelu_tanh(x):
    # Trimmed tanh-approx GELU: u = x*(c1 + c2*x^2); 0.5*x*(1 + tanh(u)).
    u = x * (_GELU_C1 + _GELU_C2 * (x * x))
    return 0.5 * x * (1.0 + jnp.tanh(u))


# ----------------------------------------------------------------------------
# Fused kernel: conv1(1x1)+BN+GELU -> dw3x3+BN+GELU -> conv3(1x1)+BN
#               -> residual add -> GELU
# ----------------------------------------------------------------------------
def _mbconv_kernel(x_ref, w1_ref, b1_ref, w2_ref, b2_ref, w3_ref, b3_ref,
                   o_ref, y1_s, *, th, w, wt):
    # x_ref : (H+2, WP, Cin) bf16  zero-padded image (WP = wt + 8, sublane
    #         aligned), resident across all row tiles of this batch element.
    # w1_ref: (Cin,  Chid) bf16   b1_ref: (1, Chid) f32
    # w2_ref: (9,    Chid) f32    b2_ref: (1, Chid) f32
    # w3_ref: (Chid, Cout) bf16   b3_ref: (1, Cout) f32
    # o_ref : (th, wt, Cout)      y1_s  : (th+2, WP, Chid) bf16 scratch
    wp = x_ref.shape[-2]
    cin = x_ref.shape[-1]
    chid = w1_ref.shape[-1]
    cout = w3_ref.shape[-1]

    r = pl.program_id(1)
    row0 = pl.multiple_of(r * th, th)          # first padded row of this tile

    # ---- conv1: 1x1 = MXU matmul over channels, folded BN, GELU ------------
    x_halo = x_ref[pl.ds(row0, th + 2), :, :]            # (th+2, wp, cin) bf16
    a = x_halo.reshape((th + 2) * wp, cin)
    y1 = jnp.dot(a, w1_ref[...], preferred_element_type=jnp.float32)
    y1 = _gelu_tanh(y1 + b1_ref[...])
    y1_s[...] = y1.reshape(th + 2, wp, chid).astype(jnp.bfloat16)

    # Border strips that are conv2's zero padding (the padded input is zero
    # there, but BN bias + GELU would otherwise leak nonzero values in).
    # Cheap strip writes replace the old full-tensor iota/compare/select.
    y1_s[:, 0:1, :] = jnp.zeros((th + 2, 1, chid), jnp.bfloat16)
    y1_s[:, w + 1:, :] = jnp.zeros((th + 2, wp - w - 1, chid), jnp.bfloat16)

    @pl.when(r == 0)
    def _():                                   # global padded row 0
        y1_s[0:1, :, :] = jnp.zeros((1, wp, chid), jnp.bfloat16)

    @pl.when(r == pl.num_programs(1) - 1)
    def _():                                   # global padded row H+1
        y1_s[th + 1:th + 2, :, :] = jnp.zeros((1, wp, chid), jnp.bfloat16)

    # ---- conv2: 3x3 depthwise (VPU), folded BN, GELU ------------------------
    acc = jnp.zeros((th, wt, chid), jnp.float32)
    for dy in range(3):
        for dx in range(3):
            patch = y1_s[pl.ds(dy, th), pl.ds(dx, wt), :]      # bf16
            tap = w2_ref[pl.ds(dy * 3 + dx, 1), :]             # (1, chid) f32
            acc = acc + patch.astype(jnp.float32) * tap
    y2 = _gelu_tanh(acc + b2_ref[...])

    # ---- conv3: 1x1 = MXU matmul, folded BN ----------------------------------
    y3 = jnp.dot(y2.reshape(th * wt, chid).astype(jnp.bfloat16), w3_ref[...],
                 preferred_element_type=jnp.float32)
    y3 = (y3 + b3_ref[...]).reshape(th, wt, cout)

    # ---- residual + final activation (drop_path = identity) -----------------
    # Re-read the shortcut from VMEM (keeps x_halo's live range short).
    shortcut = x_ref[pl.ds(row0 + 1, th), pl.ds(1, wt), :].astype(jnp.float32)
    o_ref[...] = _gelu_tanh(y3 + shortcut).astype(o_ref.dtype)


# ----------------------------------------------------------------------------
# Wrapper
# ----------------------------------------------------------------------------
def _vmem_bill(th, h, wp, wt, cin, chid, cout):
    """Approximate per-call VMEM working set in bytes for a row tile th."""
    scratch = (th + 2) * wp * chid * 2                 # bf16 y1_s
    x_blk = 2 * (h + 2) * wp * cin * 2                 # double-buffered bf16 image
    o_blk = 2 * th * wt * cout * 4                     # double-buffered f32 out tile
    wts = 2 * (cin * chid * 2 + chid * cout * 2 + 9 * chid * 4
               + (2 * chid + cout) * 4)                # double-buffered weights/biases
    return scratch + x_blk + o_blk + wts


def _pick_row_tile(h, requested, wp, wt, cin, chid, cout, budget=44 << 20):
    """Largest row tile (divisor of H) whose working set fits the budget.

    The budget is sized so th = H also fits v7x's 64 MiB physical VMEM with
    headroom for the pipeline; for TinyViT shapes th = H is almost always
    selected, eliminating halo recompute and per-grid-step overhead.
    """
    # TODO(synk): allow non-divisor tiles (cdiv grid + short last tile) for
    #             awkward H; divisor tiling is sufficient for TinyViT shapes.
    divisors = [t for t in range(1, h + 1) if h % t == 0]
    if requested is not None:
        return max(t for t in divisors if t <= max(1, requested))
    best = divisors[0]
    for t in divisors:
        if _vmem_bill(t, h, wp, wt, cin, chid, cout) <= budget:
            best = t
    return best


@functools.partial(jax.jit, static_argnames=("row_tile",))
def mbconv_forward(x_nchw, params, *, row_tile=None):
    """MBConv forward.  x_nchw: (B, Cin, H, W) -> (B, Cout, H, W)."""
    w1, b1 = params["w1"], params["b1"]
    w2, b2 = params["w2"], params["b2"]
    w3, b3 = params["w3"], params["b3"]
    B, cin, H, W = x_nchw.shape
    chid = w1.shape[1]
    cout = w3.shape[1]
    assert cin == cout, "MBConv residual requires in_chans == out_chans"

    # NHWC so channels sit on the 128-lane axis.  Pad once: 1 top/bottom row,
    # 1 left col, and enough right cols so the padded width is a multiple of 8
    # (keeps every in-kernel reshape layout-preserving).  bf16 input halves
    # the HBM read and the resident input block.
    wt = ((W + 7) // 8) * 8          # sublane-aligned output-tile width
    wp = wt + 8                      # padded width (>= W + 2, multiple of 8)
    x = jnp.transpose(x_nchw, (0, 2, 3, 1)).astype(jnp.bfloat16)
    x_pad = jnp.pad(x, ((0, 0), (1, 1), (1, wp - W - 1), (0, 0)))
    Hp = H + 2

    th = _pick_row_tile(H, row_tile, wp, wt, cin, chid, cout)
    grid = (B, H // th)
    kern = functools.partial(_mbconv_kernel, th=th, w=W, wt=wt)

    bill = _vmem_bill(th, H, wp, wt, cin, chid, cout)
    # Explicit scoped-VMEM limit: above the 32 MiB default when needed, but
    # capped below v7x's 64 MiB physical so double-buffering stays intact.
    vmem_limit = int(min(max(bill + (4 << 20), 32 << 20), 56 << 20))

    out_nhwc = pl.pallas_call(
        kern,
        out_shape=jax.ShapeDtypeStruct((B, H, wt, cout), x_nchw.dtype),
        grid=grid,
        in_specs=[
            # Whole padded image per batch element: same block index for every
            # row tile -> fetched once per image, row tiles slice it in-kernel.
            pl.BlockSpec((None, Hp, wp, cin), lambda b, r: (b, 0, 0, 0)),
            pl.BlockSpec((cin, chid), lambda b, r: (0, 0)),
            pl.BlockSpec((1, chid), lambda b, r: (0, 0)),
            pl.BlockSpec((9, chid), lambda b, r: (0, 0)),
            pl.BlockSpec((1, chid), lambda b, r: (0, 0)),
            pl.BlockSpec((chid, cout), lambda b, r: (0, 0)),
            pl.BlockSpec((1, cout), lambda b, r: (0, 0)),
        ],
        out_specs=pl.BlockSpec((None, th, wt, cout), lambda b, r: (b, r, 0, 0)),
        scratch_shapes=[pltpu.VMEM((th + 2, wp, chid), jnp.bfloat16)],
        compiler_params=pltpu.CompilerParams(
            dimension_semantics=("parallel", "parallel"),
            vmem_limit_bytes=vmem_limit),
    )(x_pad, w1, b1, w2, b2, w3, b3)

    out_nhwc = out_nhwc[:, :, :W, :]              # drop the alignment columns
    return jnp.transpose(out_nhwc, (0, 3, 1, 2))  # back to NCHW


# ----------------------------------------------------------------------------
# Deterministic parameter init (Conv2d bias-less + eval-mode BN, folded)
# ----------------------------------------------------------------------------
def init_params(key, in_chans, out_chans, expand_ratio, eps=1e-5):
    """Torch layout mapping:
         conv1.weight (hidden, in, 1, 1)  -> w1 (in, hidden)
         conv2.weight (hidden, 1, 3, 3)   -> w2 (9, hidden)   [depthwise taps]
         conv3.weight (out, hidden, 1, 1) -> w3 (hidden, out)
       BN scale (gamma/sqrt(var+eps)) is folded into the conv weights; the
       remaining bias (beta - mean*scale) is applied in-kernel.
    """
    hidden = int(in_chans * expand_ratio)
    ks = jax.random.split(key, 6)
    w1 = jax.random.normal(ks[0], (in_chans, hidden), jnp.float32) * 0.05
    w2 = jax.random.normal(ks[1], (3, 3, hidden), jnp.float32) * 0.1
    w3 = jax.random.normal(ks[2], (hidden, out_chans), jnp.float32) * 0.05

    def bn_fold(k, c):
        k1, k2, k3 = jax.random.split(k, 3)
        mean = jax.random.normal(k1, (c,), jnp.float32) * 0.1
        var = jax.nn.softplus(jax.random.normal(k2, (c,), jnp.float32)) + 0.5
        # Random gamma so every branch is exercised by the test (torch init is
        # gamma=1, and gamma=0 for bn3 which would zero the conv branch).
        gamma = 1.0 + 0.1 * jax.random.normal(k3, (c,), jnp.float32)
        beta = jnp.zeros((c,), jnp.float32)
        scale = gamma / jnp.sqrt(var + eps)
        bias = beta - mean * scale
        return scale, bias

    s1, b1 = bn_fold(ks[3], hidden)
    s2, b2 = bn_fold(ks[4], hidden)
    s3, b3 = bn_fold(ks[5], out_chans)

    return dict(
        w1=(w1 * s1[None, :]).astype(jnp.bfloat16),        # MXU operand
        b1=b1.reshape(1, -1),
        w2=(w2 * s2[None, None, :]).reshape(9, hidden),    # VPU taps, keep f32
        b2=b2.reshape(1, -1),
        w3=(w3 * s3[None, :]).astype(jnp.bfloat16),        # MXU operand
        b3=b3.reshape(1, -1),
    )


# ----------------------------------------------------------------------------
# Pure-JAX reference (mirrors the kernel numerics: bf16 input / MXU operands /
# y1 scratch, f32 GELU and depthwise accumulation)
# ----------------------------------------------------------------------------
def reference(x_nchw, params):
    w1, b1 = params["w1"], params["b1"]
    w2, b2 = params["w2"], params["b2"]
    w3, b3 = params["w3"], params["b3"]
    x_bf = jnp.transpose(x_nchw, (0, 2, 3, 1)).astype(jnp.bfloat16)
    xf = x_bf.astype(jnp.float32)
    B, H, W, _ = xf.shape
    chid = w1.shape[1]

    y1 = jnp.einsum("bhwc,cd->bhwd", x_bf, w1,
                    preferred_element_type=jnp.float32)
    y1 = _gelu_tanh(y1 + b1.reshape(1, 1, 1, -1))
    y1 = y1.astype(jnp.bfloat16).astype(jnp.float32)   # mirror bf16 scratch
    y1p = jnp.pad(y1, ((0, 0), (1, 1), (1, 1), (0, 0)))

    w2_taps = w2.reshape(3, 3, chid)
    acc = jnp.zeros((B, H, W, chid), jnp.float32)
    for dy in range(3):
        for dx in range(3):
            acc = acc + y1p[:, dy:dy + H, dx:dx + W, :] * w2_taps[dy, dx]
    y2 = _gelu_tanh(acc + b2.reshape(1, 1, 1, -1))

    y3 = jnp.einsum("bhwc,cd->bhwd", y2.astype(jnp.bfloat16), w3,
                    preferred_element_type=jnp.float32)
    y3 = y3 + b3.reshape(1, 1, 1, -1)

    out = _gelu_tanh(y3 + xf)                      # drop_path = identity
    return jnp.transpose(out, (0, 3, 1, 2)).astype(x_nchw.dtype)


if __name__ == "__main__":
    key = jax.random.PRNGKey(0)
    B, C, H, W = 2, 32, 16, 16
    expand_ratio = 4                  # hidden = 128 -> lane-dense MXU/VPU work
    kx, kp = jax.random.split(key)
    x = jax.random.normal(kx, (B, C, H, W), jnp.float32)
    params = init_params(kp, C, C, expand_ratio)

    ref = reference(x, params)
    # row_tile=8 exercises the multi-tile halo/border path; None = th = H.
    for rt in (8, None):
        out = jax.block_until_ready(mbconv_forward(x, params, row_tile=rt))
        assert out.shape == x.shape, out.shape
        err = float(jnp.max(jnp.abs(out - ref)))
        assert jnp.allclose(out, ref, atol=3e-3, rtol=3e-3), (rt, err)

    print("KERNEL_OK")
</pallas_src>

<mosaic_0001>
module attributes {stable_mosaic.version = 11 : i64} {
  func.func @_mbconv_kernel(%arg0: i32, %arg1: i32, %arg2: memref<1x18x24x32xbf16, #tpu.memory_space<vmem>>, %arg3: memref<32x128xbf16, #tpu.memory_space<vmem>>, %arg4: memref<1x128xf32, #tpu.memory_space<vmem>>, %arg5: memref<9x128xf32, #tpu.memory_space<vmem>>, %arg6: memref<1x128xf32, #tpu.memory_space<vmem>>, %arg7: memref<128x32xbf16, #tpu.memory_space<vmem>>, %arg8: memref<1x32xf32, #tpu.memory_space<vmem>>, %arg9: memref<1x8x16x32xf32, #tpu.memory_space<vmem>>, %arg10: memref<10x24x128xbf16, #tpu.memory_space<vmem>>) attributes {dimension_semantics = [#tpu.dimension_semantics<parallel>, #tpu.dimension_semantics<parallel>], iteration_bounds = array<i64: 2, 2>, scalar_prefetch = 0 : i64, scratch_operands = 1 : i64, tpu.core_type = #tpu.core_type<tc>, window_params = [{transform_indices = @transform_0, window_bounds = array<i64: 1, 18, 24, 32>}, {pipeline_mode = #tpu.pipeline_mode<synchronous>, transform_indices = @transform_1, window_bounds = array<i64: 32, 128>}, {pipeline_mode = #tpu.pipeline_mode<synchronous>, transform_indices = @transform_2, window_bounds = array<i64: 1, 128>}, {pipeline_mode = #tpu.pipeline_mode<synchronous>, transform_indices = @transform_3, window_bounds = array<i64: 9, 128>}, {pipeline_mode = #tpu.pipeline_mode<synchronous>, transform_indices = @transform_4, window_bounds = array<i64: 1, 128>}, {pipeline_mode = #tpu.pipeline_mode<synchronous>, transform_indices = @transform_5, window_bounds = array<i64: 128, 32>}, {pipeline_mode = #tpu.pipeline_mode<synchronous>, transform_indices = @transform_6, window_bounds = array<i64: 1, 32>}, {transform_indices = @transform_7, window_bounds = array<i64: 1, 8, 16, 32>}]} {
    %c8_i32 = arith.constant 8 : i32
    %0 = arith.muli %arg1, %c8_i32 : i32
    %1 = tpu.assume_multiple %0, 8 : i32
    %c0 = arith.constant 0 : index
    %2 = arith.index_cast %1 : i32 to index
    %c0_0 = arith.constant 0 : index
    %c0_1 = arith.constant 0 : index
    %3 = vector.load %arg2[%c0, %2, %c0_0, %c0_1] : memref<1x18x24x32xbf16, #tpu.memory_space<vmem>>, vector<1x10x24x32xbf16>
    %4 = vector.shape_cast %3 : vector<1x10x24x32xbf16> to vector<10x24x32xbf16>
    %5 = vector.shape_cast %4 : vector<10x24x32xbf16> to vector<240x32xbf16>
    %c0_2 = arith.constant 0 : index
    %c0_3 = arith.constant 0 : index
    %6 = vector.load %arg3[%c0_2, %c0_3] : memref<32x128xbf16, #tpu.memory_space<vmem>>, vector<32x128xbf16>
    %cst = arith.constant dense<0.000000e+00> : vector<240x128xf32>
    %7 = tpu.matmul %5, %6, %cst {dimension_numbers = #tpu.dot_dimension_numbers<[1], [0], [0], [1], [0, 0, 1, 1], [], []>} : vector<240x32xbf16>, vector<32x128xbf16>, vector<240x128xf32> -> vector<240x128xf32>
    %c0_4 = arith.constant 0 : index
    %c0_5 = arith.constant 0 : index
    %8 = vector.load %arg4[%c0_4, %c0_5] : memref<1x128xf32, #tpu.memory_space<vmem>>, vector<1x128xf32>
    %9 = vector.broadcast %8 : vector<1x128xf32> to vector<240x128xf32>
    %10 = arith.addf %7, %9 : vector<240x128xf32>
    %11 = arith.mulf %10, %10 : vector<240x128xf32>
    %cst_6 = arith.constant 0.0356774069 : f32
    %12 = vector.broadcast %cst_6 : f32 to vector<240x128xf32>
    %13 = arith.mulf %12, %11 : vector<240x128xf32>
    %cst_7 = arith.constant 0.797884583 : f32
    %14 = vector.broadcast %cst_7 : f32 to vector<240x128xf32>
    %15 = arith.addf %14, %13 : vector<240x128xf32>
    %16 = arith.mulf %10, %15 : vector<240x128xf32>
    %cst_8 = arith.constant 5.000000e-01 : f32
    %17 = vector.broadcast %cst_8 : f32 to vector<240x128xf32>
    %18 = arith.mulf %17, %10 : vector<240x128xf32>
    %19 = math.tanh %16 : vector<240x128xf32>
    %cst_9 = arith.constant 1.000000e+00 : f32
    %20 = vector.broadcast %cst_9 : f32 to vector<240x128xf32>
    %21 = arith.addf %20, %19 : vector<240x128xf32>
    %22 = arith.mulf %18, %21 : vector<240x128xf32>
    %23 = vector.shape_cast %22 : vector<240x128xf32> to vector<10x24x128xf32>
    %24 = arith.truncf %23 : vector<10x24x128xf32> to vector<10x24x128xbf16>
    %c0_10 = arith.constant 0 : index
    %c0_11 = arith.constant 0 : index
    %c0_12 = arith.constant 0 : index
    %25 = vector.load %arg10[%c0_10, %c0_11, %c0_12] : memref<10x24x128xbf16, #tpu.memory_space<vmem>>, vector<10x24x128xbf16>
    tpu.vector_store %arg10[%c0_10, %c0_11, %c0_12], %24 {strides = array<i32>} : memref<10x24x128xbf16, #tpu.memory_space<vmem>>, vector<10x24x128xbf16>,
    %cst_13 = arith.constant 0.000000e+00 : bf16
    %26 = vector.broadcast %cst_13 : bf16 to vector<10x1x128xbf16>
    %c0_14 = arith.constant 0 : index
    %c0_15 = arith.constant 0 : index
    %c0_16 = arith.constant 0 : index
    %27 = vector.load %arg10[%c0_14, %c0_15, %c0_16] : memref<10x24x128xbf16, #tpu.memory_space<vmem>>, vector<10x1x128xbf16>
    tpu.vector_store %arg10[%c0_14, %c0_15, %c0_16], %26 {strides = array<i32>} : memref<10x24x128xbf16, #tpu.memory_space<vmem>>, vector<10x1x128xbf16>,
    %cst_17 = arith.constant 0.000000e+00 : bf16
    %28 = vector.broadcast %cst_17 : bf16 to vector<10x7x128xbf16>
    %c0_18 = arith.constant 0 : index
    %c17 = arith.constant 17 : index
    %c0_19 = arith.constant 0 : index
    %29 = vector.load %arg10[%c0_18, %c17, %c0_19] : memref<10x24x128xbf16, #tpu.memory_space<vmem>>, vector<10x7x128xbf16>
    tpu.vector_store %arg10[%c0_18, %c17, %c0_19], %28 {strides = array<i32>} : memref<10x24x128xbf16, #tpu.memory_space<vmem>>, vector<10x7x128xbf16>,
    %c0_i32 = arith.constant 0 : i32
    %30 = arith.cmpi eq, %arg1, %c0_i32 : i32
    %31 = arith.extui %30 : i1 to i32
    %c0_i32_20 = arith.constant 0 : i32
    %32 = arith.cmpi ne, %31, %c0_i32_20 : i32
    scf.if %32 {
      %cst_83 = arith.constant 0.000000e+00 : bf16
      %145 = vector.broadcast %cst_83 : bf16 to vector<1x24x128xbf16>
      %c0_84 = arith.constant 0 : index
      %c0_85 = arith.constant 0 : index
      %c0_86 = arith.constant 0 : index
      %146 = vector.load %arg10[%c0_84, %c0_85, %c0_86] : memref<10x24x128xbf16, #tpu.memory_space<vmem>>, vector<1x24x128xbf16>
      tpu.vector_store %arg10[%c0_84, %c0_85, %c0_86], %145 {strides = array<i32>} : memref<10x24x128xbf16, #tpu.memory_space<vmem>>, vector<1x24x128xbf16>,
    } else {
    }
    %c1_i32 = arith.constant 1 : i32
    %33 = arith.cmpi eq, %arg1, %c1_i32 : i32
    %34 = arith.extui %33 : i1 to i32
    %c0_i32_21 = arith.constant 0 : i32
    %35 = arith.cmpi ne, %34, %c0_i32_21 : i32
    scf.if %35 {
      %cst_83 = arith.constant 0.000000e+00 : bf16
      %145 = vector.broadcast %cst_83 : bf16 to vector<1x24x128xbf16>
      %c9 = arith.constant 9 : index
      %c0_84 = arith.constant 0 : index
      %c0_85 = arith.constant 0 : index
      %146 = vector.load %arg10[%c9, %c0_84, %c0_85] : memref<10x24x128xbf16, #tpu.memory_space<vmem>>, vector<1x24x128xbf16>
      tpu.vector_store %arg10[%c9, %c0_84, %c0_85], %145 {strides = array<i32>} : memref<10x24x128xbf16, #tpu.memory_space<vmem>>, vector<1x24x128xbf16>,
    } else {
    }
    %cst_22 = arith.constant 0.000000e+00 : f32
    %36 = vector.broadcast %cst_22 : f32 to vector<8x16x128xf32>
    %c0_23 = arith.constant 0 : index
    %c0_24 = arith.constant 0 : index
    %c0_25 = arith.constant 0 : index
    %37 = vector.load %arg10[%c0_23, %c0_24, %c0_25] : memref<10x24x128xbf16, #tpu.memory_space<vmem>>, vector<8x16x128xbf16>
    %c0_26 = arith.constant 0 : index
    %c0_27 = arith.constant 0 : index
    %38 = vector.load %arg5[%c0_26, %c0_27] : memref<9x128xf32, #tpu.memory_space<vmem>>, vector<1x128xf32>
    %39 = arith.extf %37 : vector<8x16x128xbf16> to vector<8x16x128xf32>
    %40 = vector.shape_cast %38 : vector<1x128xf32> to vector<1x1x128xf32>
    %41 = vector.broadcast %40 : vector<1x1x128xf32> to vector<8x16x128xf32>
    %42 = arith.mulf %39, %41 : vector<8x16x128xf32>
    %43 = arith.addf %36, %42 : vector<8x16x128xf32>
    %c0_28 = arith.constant 0 : index
    %c1 = arith.constant 1 : index
    %c0_29 = arith.constant 0 : index
    %44 = vector.load %arg10[%c0_28, %c1, %c0_29] : memref<10x24x128xbf16, #tpu.memory_space<vmem>>, vector<8x16x128xbf16>
    %c1_30 = arith.constant 1 : index
    %c0_31 = arith.constant 0 : index
    %45 = vector.load %arg5[%c1_30, %c0_31] : memref<9x128xf32, #tpu.memory_space<vmem>>, vector<1x128xf32>
    %46 = arith.extf %44 : vector<8x16x128xbf16> to vector<8x16x128xf32>
    %47 = vector.shape_cast %45 : vector<1x128xf32> to vector<1x1x128xf32>
    %48 = vector.broadcast %47 : vector<1x1x128xf32> to vector<8x16x128xf32>
    %49 = arith.mulf %46, %48 : vector<8x16x128xf32>
    %50 = arith.addf %43, %49 : vector<8x16x128xf32>
    %c0_32 = arith.constant 0 : index
    %c2 = arith.constant 2 : index
    %c0_33 = arith.constant 0 : index
    %51 = vector.load %arg10[%c0_32, %c2, %c0_33] : memref<10x24x128xbf16, #tpu.memory_space<vmem>>, vector<8x16x128xbf16>
    %c2_34 = arith.constant 2 : index
    %c0_35 = arith.constant 0 : index
    %52 = vector.load %arg5[%c2_34, %c0_35] : memref<9x128xf32, #tpu.memory_space<vmem>>, vector<1x128xf32>
    %53 = arith.extf %51 : vector<8x16x128xbf16> to vector<8x16x128xf32>
    %54 = vector.shape_cast %52 : vector<1x128xf32> to vector<1x1x128xf32>
    %55 = vector.broadcast %54 : vector<1x1x128xf32> to vector<8x16x128xf32>
    %56 = arith.mulf %53, %55 : vector<8x16x128xf32>
    %57 = arith.addf %50, %56 : vector<8x16x128xf32>
    %c1_36 = arith.constant 1 : index
    %c0_37 = arith.constant 0 : index
    %c0_38 = arith.constant 0 : index
    %58 = vector.load %arg10[%c1_36, %c0_37, %c0_38] : memref<10x24x128xbf16, #tpu.memory_space<vmem>>, vector<8x16x128xbf16>
    %c3 = arith.constant 3 : index
    %c0_39 = arith.constant 0 : index
    %59 = vector.load %arg5[%c3, %c0_39] : memref<9x128xf32, #tpu.memory_space<vmem>>, vector<1x128xf32>
    %60 = arith.extf %58 : vector<8x16x128xbf16> to vector<8x16x128xf32>
    %61 = vector.shape_cast %59 : vector<1x128xf32> to vector<1x1x128xf32>
    %62 = vector.broadcast %61 : vector<1x1x128xf32> to vector<8x16x128xf32>
    %63 = arith.mulf %60, %62 : vector<8x16x128xf32>
    %64 = arith.addf %57, %63 : vector<8x16x128xf32>
    %c1_40 = arith.constant 1 : index
    %c1_41 = arith.constant 1 : index
    %c0_42 = arith.constant 0 : index
    %65 = vector.load %arg10[%c1_40, %c1_41, %c0_42] : memref<10x24x128xbf16, #tpu.memory_space<vmem>>, vector<8x16x128xbf16>
    %c4 = arith.constant 4 : index
    %c0_43 = arith.constant 0 : index
    %66 = vector.load %arg5[%c4, %c0_43] : memref<9x128xf32, #tpu.memory_space<vmem>>, vector<1x128xf32>
    %67 = arith.extf %65 : vector<8x16x128xbf16> to vector<8x16x128xf32>
    %68 = vector.shape_cast %66 : vector<1x128xf32> to vector<1x1x128xf32>
    %69 = vector.broadcast %68 : vector<1x1x128xf32> to vector<8x16x128xf32>
    %70 = arith.mulf %67, %69 : vector<8x16x128xf32>
    %71 = arith.addf %64, %70 : vector<8x16x128xf32>
    %c1_44 = arith.constant 1 : index
    %c2_45 = arith.constant 2 : index
    %c0_46 = arith.constant 0 : index
    %72 = vector.load %arg10[%c1_44, %c2_45, %c0_46] : memref<10x24x128xbf16, #tpu.memory_space<vmem>>, vector<8x16x128xbf16>
    %c5 = arith.constant 5 : index
    %c0_47 = arith.constant 0 : index
    %73 = vector.load %arg5[%c5, %c0_47] : memref<9x128xf32, #tpu.memory_space<vmem>>, vector<1x128xf32>
    %74 = arith.extf %72 : vector<8x16x128xbf16> to vector<8x16x128xf32>
    %75 = vector.shape_cast %73 : vector<1x128xf32> to vector<1x1x128xf32>
    %76 = vector.broadcast %75 : vector<1x1x128xf32> to vector<8x16x128xf32>
    %77 = arith.mulf %74, %76 : vector<8x16x128xf32>
    %78 = arith.addf %71, %77 : vector<8x16x128xf32>
    %c2_48 = arith.constant 2 : index
    %c0_49 = arith.constant 0 : index
    %c0_50 = arith.constant 0 : index
    %79 = vector.load %arg10[%c2_48, %c0_49, %c0_50] : memref<10x24x128xbf16, #tpu.memory_space<vmem>>, vector<8x16x128xbf16>
    %c6 = arith.constant 6 : index
    %c0_51 = arith.constant 0 : index
    %80 = vector.load %arg5[%c6, %c0_51] : memref<9x128xf32, #tpu.memory_space<vmem>>, vector<1x128xf32>
    %81 = arith.extf %79 : vector<8x16x128xbf16> to vector<8x16x128xf32>
    %82 = vector.shape_cast %80 : vector<1x128xf32> to vector<1x1x128xf32>
    %83 = vector.broadcast %82 : vector<1x1x128xf32> to vector<8x16x128xf32>
    %84 = arith.mulf %81, %83 : vector<8x16x128xf32>
    %85 = arith.addf %78, %84 : vector<8x16x128xf32>
    %c2_52 = arith.constant 2 : index
    %c1_53 = arith.constant 1 : index
    %c0_54 = arith.constant 0 : index
    %86 = vector.load %arg10[%c2_52, %c1_53, %c0_54] : memref<10x24x128xbf16, #tpu.memory_space<vmem>>, vector<8x16x128xbf16>
    %c7 = arith.constant 7 : index
    %c0_55 = arith.constant 0 : index
    %87 = vector.load %arg5[%c7, %c0_55] : memref<9x128xf32, #tpu.memory_space<vmem>>, vector<1x128xf32>
    %88 = arith.extf %86 : vector<8x16x128xbf16> to vector<8x16x128xf32>
    %89 = vector.shape_cast %87 : vector<1x128xf32> to vector<1x1x128xf32>
    %90 = vector.broadcast %89 : vector<1x1x128xf32> to vector<8x16x128xf32>
    %91 = arith.mulf %88, %90 : vector<8x16x128xf32>
    %92 = arith.addf %85, %91 : vector<8x16x128xf32>
    %c2_56 = arith.constant 2 : index
    %c2_57 = arith.constant 2 : index
    %c0_58 = arith.constant 0 : index
    %93 = vector.load %arg10[%c2_56, %c2_57, %c0_58] : memref<10x24x128xbf16, #tpu.memory_space<vmem>>, vector<8x16x128xbf16>
    %c8 = arith.constant 8 : index
    %c0_59 = arith.constant 0 : index
    %94 = vector.load %arg5[%c8, %c0_59] : memref<9x128xf32, #tpu.memory_space<vmem>>, vector<1x128xf32>
    %95 = arith.extf %93 : vector<8x16x128xbf16> to vector<8x16x128xf32>
    %96 = vector.shape_cast %94 : vector<1x128xf32> to vector<1x1x128xf32>
    %97 = vector.broadcast %96 : vector<1x1x128xf32> to vector<8x16x128xf32>
    %98 = arith.mulf %95, %97 : vector<8x16x128xf32>
    %99 = arith.addf %92, %98 : vector<8x16x128xf32>
    %c0_60 = arith.constant 0 : index
    %c0_61 = arith.constant 0 : index
    %100 = vector.load %arg6[%c0_60, %c0_61] : memref<1x128xf32, #tpu.memory_space<vmem>>, vector<1x128xf32>
    %101 = vector.shape_cast %100 : vector<1x128xf32> to vector<1x1x128xf32>
    %102 = vector.broadcast %101 : vector<1x1x128xf32> to vector<8x16x128xf32>
    %103 = arith.addf %99, %102 : vector<8x16x128xf32>
    %104 = arith.mulf %103, %103 : vector<8x16x128xf32>
    %cst_62 = arith.constant 0.0356774069 : f32
    %105 = vector.broadcast %cst_62 : f32 to vector<8x16x128xf32>
    %106 = arith.mulf %105, %104 : vector<8x16x128xf32>
    %cst_63 = arith.constant 0.797884583 : f32
    %107 = vector.broadcast %cst_63 : f32 to vector<8x16x128xf32>
    %108 = arith.addf %107, %106 : vector<8x16x128xf32>
    %109 = arith.mulf %103, %108 : vector<8x16x128xf32>
    %cst_64 = arith.constant 5.000000e-01 : f32
    %110 = vector.broadcast %cst_64 : f32 to vector<8x16x128xf32>
    %111 = arith.mulf %110, %103 : vector<8x16x128xf32>
    %112 = math.tanh %109 : vector<8x16x128xf32>
    %cst_65 = arith.constant 1.000000e+00 : f32
    %113 = vector.broadcast %cst_65 : f32 to vector<8x16x128xf32>
    %114 = arith.addf %113, %112 : vector<8x16x128xf32>
    %115 = arith.mulf %111, %114 : vector<8x16x128xf32>
    %116 = vector.shape_cast %115 : vector<8x16x128xf32> to vector<128x128xf32>
    %117 = arith.truncf %116 : vector<128x128xf32> to vector<128x128xbf16>
    %c0_66 = arith.constant 0 : index
    %c0_67 = arith.constant 0 : index
    %118 = vector.load %arg7[%c0_66, %c0_67] : memref<128x32xbf16, #tpu.memory_space<vmem>>, vector<128x32xbf16>
    %cst_68 = arith.constant dense<0.000000e+00> : vector<128x32xf32>
    %119 = tpu.matmul %117, %118, %cst_68 {dimension_numbers = #tpu.dot_dimension_numbers<[1], [0], [0], [1], [0, 0, 1, 1], [], []>} : vector<128x128xbf16>, vector<128x32xbf16>, vector<128x32xf32> -> vector<128x32xf32>
    %c0_69 = arith.constant 0 : index
    %c0_70 = arith.constant 0 : index
    %120 = vector.load %arg8[%c0_69, %c0_70] : memref<1x32xf32, #tpu.memory_space<vmem>>, vector<1x32xf32>
    %121 = vector.broadcast %120 : vector<1x32xf32> to vector<128x32xf32>
    %122 = arith.addf %119, %121 : vector<128x32xf32>
    %123 = vector.shape_cast %122 : vector<128x32xf32> to vector<8x16x32xf32>
    %c1_i32_71 = arith.constant 1 : i32
    %124 = arith.addi %1, %c1_i32_71 : i32
    %c0_72 = arith.constant 0 : index
    %125 = arith.index_cast %124 : i32 to index
    %c1_73 = arith.constant 1 : index
    %c0_74 = arith.constant 0 : index
    %126 = vector.load %arg2[%c0_72, %125, %c1_73, %c0_74] : memref<1x18x24x32xbf16, #tpu.memory_space<vmem>>, vector<1x8x16x32xbf16>
    %127 = vector.shape_cast %126 : vector<1x8x16x32xbf16> to vector<8x16x32xbf16>
    %128 = arith.extf %127 : vector<8x16x32xbf16> to vector<8x16x32xf32>
    %129 = arith.addf %123, %128 : vector<8x16x32xf32>
    %130 = arith.mulf %129, %129 : vector<8x16x32xf32>
    %cst_75 = arith.constant 0.0356774069 : f32
    %131 = vector.broadcast %cst_75 : f32 to vector<8x16x32xf32>
    %132 = arith.mulf %131, %130 : vector<8x16x32xf32>
    %cst_76 = arith.constant 0.797884583 : f32
    %133 = vector.broadcast %cst_76 : f32 to vector<8x16x32xf32>
    %134 = arith.addf %133, %132 : vector<8x16x32xf32>
    %135 = arith.mulf %129, %134 : vector<8x16x32xf32>
    %cst_77 = arith.constant 5.000000e-01 : f32
    %136 = vector.broadcast %cst_77 : f32 to vector<8x16x32xf32>
    %137 = arith.mulf %136, %129 : vector<8x16x32xf32>
    %138 = math.tanh %135 : vector<8x16x32xf32>
    %cst_78 = arith.constant 1.000000e+00 : f32
    %139 = vector.broadcast %cst_78 : f32 to vector<8x16x32xf32>
    %140 = arith.addf %139, %138 : vector<8x16x32xf32>
    %141 = arith.mulf %137, %140 : vector<8x16x32xf32>
    %c0_79 = arith.constant 0 : index
    %c0_80 = arith.constant 0 : index
    %c0_81 = arith.constant 0 : index
    %c0_82 = arith.constant 0 : index
    %142 = vector.load %arg9[%c0_79, %c0_80, %c0_81, %c0_82] : memref<1x8x16x32xf32, #tpu.memory_space<vmem>>, vector<1x8x16x32xf32>
    %143 = vector.shape_cast %142 : vector<1x8x16x32xf32> to vector<8x16x32xf32>
    %144 = vector.shape_cast %141 : vector<8x16x32xf32> to vector<1x8x16x32xf32>
    tpu.vector_store %arg9[%c0_79, %c0_80, %c0_81, %c0_82], %144 {strides = array<i32>} : memref<1x8x16x32xf32, #tpu.memory_space<vmem>>, vector<1x8x16x32xf32>,
    return
  }
  func.func @transform_0(%arg0: i32, %arg1: i32) -> (i32, i32, i32, i32) {
    %c0_i32 = arith.constant 0 : i32
    %c0_i32_0 = arith.constant 0 : i32
    %c0_i32_1 = arith.constant 0 : i32
    %c0_i32_2 = arith.constant 0 : i32
    return %arg0, %c0_i32, %c0_i32_0, %c0_i32_1 : i32, i32, i32, i32
  }
  func.func @transform_1(%arg0: i32, %arg1: i32) -> (i32, i32) {
    %c0_i32 = arith.constant 0 : i32
    %c0_i32_0 = arith.constant 0 : i32
    %c0_i32_1 = arith.constant 0 : i32
    return %c0_i32, %c0_i32_0 : i32, i32
  }
  func.func @transform_2(%arg0: i32, %arg1: i32) -> (i32, i32) {
    %c0_i32 = arith.constant 0 : i32
    %c0_i32_0 = arith.constant 0 : i32
    %c0_i32_1 = arith.constant 0 : i32
    return %c0_i32, %c0_i32_0 : i32, i32
  }
  func.func @transform_3(%arg0: i32, %arg1: i32) -> (i32, i32) {
    %c0_i32 = arith.constant 0 : i32
    %c0_i32_0 = arith.constant 0 : i32
    %c0_i32_1 = arith.constant 0 : i32
    return %c0_i32, %c0_i32_0 : i32, i32
  }
  func.func @transform_4(%arg0: i32, %arg1: i32) -> (i32, i32) {
    %c0_i32 = arith.constant 0 : i32
    %c0_i32_0 = arith.constant 0 : i32
    %c0_i32_1 = arith.constant 0 : i32
    return %c0_i32, %c0_i32_0 : i32, i32
  }
  func.func @transform_5(%arg0: i32, %arg1: i32) -> (i32, i32) {
    %c0_i32 = arith.constant 0 : i32
    %c0_i32_0 = arith.constant 0 : i32
    %c0_i32_1 = arith.constant 0 : i32
    return %c0_i32, %c0_i32_0 : i32, i32
  }
  func.func @transform_6(%arg0: i32, %arg1: i32) -> (i32, i32) {
    %c0_i32 = arith.constant 0 : i32
    %c0_i32_0 = arith.constant 0 : i32
    %c0_i32_1 = arith.constant 0 : i32
    return %c0_i32, %c0_i32_0 : i32, i32
  }
  func.func @transform_7(%arg0: i32, %arg1: i32) -> (i32, i32, i32, i32) {
    %c0_i32 = arith.constant 0 : i32
    %c0_i32_0 = arith.constant 0 : i32
    %c0_i32_1 = arith.constant 0 : i32
    return %arg0, %arg1, %c0_i32, %c0_i32_0 : i32, i32, i32, i32
  }
}

</mosaic_0001>

<bundles_post_ra>
// kernel: mbconv_forward.1
= control target key start
LH: loop header
LB: loop body
LE: loop exit
PB: predicated region body
PF: predicated region fallthrough
CT: control target
= control target key end

     0   :  { %12 = vsyncpa [#allocation4], 0  ;;  %s4807_s0 = inlined_call_operand.vmem [shape: bf16[2,18,24,32], index: 0, kind: input, shape index: {}]   ;;  %s4808_s1 = inlined_call_operand.vmem [shape: bf16[32,128], index: 1, kind: input, shape index: {}]   ;;  %s4809_s2 = inlined_call_operand.vmem [shape: f32[1,128], index: 2, kind: input, shape index: {}]   ;;  %s4810_s3 = inlined_call_operand.vmem [shape: f32[9,128], index: 3, kind: input, shape index: {}]   ;;  %s4811_s4 = inlined_call_operand.vmem [shape: f32[1,128], index: 4, kind: input, shape index: {}]   ;;  %s4812_s5 = inlined_call_operand.vmem [shape: bf16[128,32], index: 5, kind: input, shape index: {}]   ;;  %s4813_s6 = inlined_call_operand.vmem [shape: f32[1,32], index: 6, kind: input, shape index: {}]   ;;  %s4814_s7 = inlined_call_operand.hbm [shape: f32[2,16,16,32], index: 7, kind: output, shape index: {}]  }
   0x1   :  { %14 = vsyncpa [#allocation4 + $0x1], 0  ;;  %s3719_s24 = smov 0   ;;  %s3721_s25 = smov 0  }
   0x2   :  { %s3723_s26 = smov 0   ;;  %s3725_s27 = smov 0  }
   0x3   :  { %s3727_s28 = smov 0   ;;  %s3729_s29 = smov 0  }
   0x4   :  { %s3731_s30 = smov 0   ;;  %s3733_s8 = smov 0  }
   0x5 LB: > { %s2880_s9 = sadd.s32 4294967295, %s3670_s8   ;;  %s2881_s10 = sadd.s32 4294967294, %s3670_s8   ;;  %s3670_s8 = sphi %s3733_s8, %s20_s8   ;;  %s3666_s30 = sphi %s3731_s30, %s4829_s30   ;;  %s3662_s29 = sphi %s3729_s29, %s4828_s29   ;;  %s3658_s28 = sphi %s3727_s28, %s4827_s28   ;;  %s3654_s27 = sphi %s3725_s27, %s4826_s27   ;;  %s3650_s26 = sphi %s3723_s26, %s4825_s26   ;;  %s3646_s25 = sphi %s3721_s25, %s4824_s25   ;;  %s3642_s24 = sphi %s3719_s24, %s4823_s24  }
   0x6   : > { %s29_s11 = sadd.s32 1, %s3662_s29  ;;  %s32_s12 = sadd.s32 1, %s3666_s30 }
   0x7   : > { %p30_p0 = scmp.ge.s32.totalorder %s29_s11, 2  ;;  %p203_p1 = scmp.ne.s32.totalorder %s3650_s26, %s3646_s25 }
   0x8   : > { %p204_p2 = scmp.eq.s32.totalorder %s2880_s9, 3  ;;  %p209_p5 = scmp.ne.s32.totalorder %s3646_s25, %s3642_s24 }
   0x9   : > { %s4831_s11 = smov (%p30_p0, %s29_s11), 0  ;;  %s4833_s12 = smov (!%p30_p0, %s32_s12), %s3666_s30 }
   0xa   : > { %s189_s13 = ssub.s32 %s3662_s29, %s4831_s11  ;;  %p3770_p3 = por %p204_p2, %p203_p1 }
   0xb   : > { %p34_p4 = scmp.ge.s32.totalorder %s4833_s12, 2  ;;  %p210_p6 = scmp.eq.s32.totalorder %s2881_s10, 3 }
   0xc   : > { %p2884_p7 = scmp.ge.s32.totalorder %s3670_s8, 1  ;;  %p254_p9 = scmp.lt.s32.totalorder %s3670_s8, 5 }
   0xd   : > { %s4835_s12 = smov (%p34_p4, %s4833_s12), 0  ;;  %p3779_p8 = por %p210_p6, %p209_p5 }
   0xe   : > { %s188_s16 = ssub.s32 %s3666_s30, %s4835_s12  ;;  %s193_s17 = sadd.s32 1, %s3650_s26 }
   0xf   : > { %s190_s18 = sor.u32 %s189_s13, %s188_s16  ;;  %p255_p10 = pnand %p2884_p7, %p254_p9 }
  0x10   : > { %p191_p11 = scmp.eq.s32.totalorder %s190_s18, 0  ;;  %s4815_s20 = sand.u32 (!%p255_p10), 1, %s3646_s25   ;;  %v3672_v0 = vmov (!%p255_p10), 0.0   ;;  %v3417_v1 = vld [vmem:[%s4808_s1] sm:$0xff] (!%p255_p10)   ;;  %v3418_v2 = vld [vmem:[%s4808_s1 + $0x8] sm:$0xff] (!%p255_p10)   ;;  %vm3673_vm0 = vmmov (!%p255_p10), 0  }
  0x11   : > { %258 = sbr.rel (%p255_p10) target bundleno = 847 (0x34f), region = 48  ;;  %s3793_s21 = sshll.u32 (!%p255_p10), %s4815_s20, 7  ;;  %3239 = vmatprep.subr.bf16.mxu0 (!%p255_p10), %v3672_v0  ;;  %3335 = vmatprep.subr.bf16.mxu1 (!%p255_p10), %v3672_v0  ;;  %vm425_vm1 = vcmask (!%p255_p10), 261120   ;;  %v3857_v18 = vld [vmem:[%s4809_s2] ss:$0 sm:$0xff] (!%p255_p10)  ;;  %vm1024_vm2 = vcmask (!%p255_p10), 1040384  }
  0x12   : > { %s3788_s19 = scalar_select %p191_p11, %s3650_s26, %s193_s17  }
  0x13   : > { %p286_p12 = scmp.lt.s32.totalorder (!%p255_p10), %s3658_s28, 1  ;;  %3240 = vmatpush3.bf16.msra.mxu0 (!%p255_p10), %v3417_v1  ;;  %3243 = vmatprep.mubr.msk.bf16.mxu0 (!%p255_p10), %vm3673_vm0, %v3672_v0  ;;  %s3007_s16 = smul.u32 (!%p255_p10), 96, %s3654_s27  ;;  %vm1025_vm3 = vsmask.f32 (!%p255_p10), 256  ;;  %vm1057_vm4 = vcmask (!%p255_p10), 1043456  }
  0x14   : > { %3241 = vmatprep.subr.bf16.mxu0 (!%p255_p10), %v3672_v0  ;;  %3337 = vmatpush3.bf16.msra.mxu1 (!%p255_p10), %v3417_v1  ;;  %vm1058_vm5 = vsmask.f32 (!%p255_p10), 7938  ;;  %vm3940_vm6 = vmand (!%p255_p10), %vm1024_vm2, %vm1025_vm3  ;;  %p2953_p13 = scmp.ne.s32.totalorder (!%p255_p10), %s3654_s27, 0 }
  0x15   : > { %3336 = vmatprep.subr.bf16.mxu1 (!%p255_p10), %v3672_v0  ;;  %3283 = vmatprep.mubr.msk.bf16.mxu1 (!%p255_p10), %vm3673_vm0, %v3672_v0  ;;  %vm3962_vm7 = vmand (!%p255_p10), %vm1057_vm4, %vm1058_vm5 }
  0x17   : > { %3242 = vmatpush3.bf16.msra.mxu0 (!%p255_p10), %v3418_v2 }
  0x18   : > { %s287_s13 = scalar_select %p286_p12, %s3658_s28, 1  ;;  %3338 = vmatpush3.bf16.msra.mxu1 %v3418_v2 }
  0x1a   : > { %s3339_s17 = smul.u32 216, %s287_s13  ;;  %s4107_s13 = scalar_lea.vmem [#allocation3], %s3793_s21 }
  0x1c   : > { %s290_s23 = scalar_lea.vmem %s4807_s0, %s3339_s17 }
  0x1d   : > { %s3809_s20 = scalar_lea.vmem %s290_s23, %s3007_s16 }
  0x1e   : > { %v3419_v3 = vld [vmem:[%s3809_s20] sm:$0xff]   ;;  %v3422_v4 = vld [vmem:[%s3809_s20 + $0x50] sm:$0xff]   ;;  %v3420_v5 = vld [vmem:[%s3809_s20 + $0x8] sm:$0xff]  }
  0x1f   : > { %3244 = vmatmul.mubr.msk.bf16.vlgmr.msra.gmra.mrb[0].mxu0 %vm425_vm1, %v3419_v3  ;;  %3284 = vmatmul.mubr.msk.bf16.vlgmr.msra.gmra.mrb[0].mxu1 %vm425_vm1, %v3422_v4  ;;  %v3424_v6 = vld [vmem:[%s3809_s20 + $0x58] sm:$0xff]   ;;  %v3421_v7 = vld [vmem:[%s3809_s20 + $0x10] sm:$0xff]   ;;  %v3426_v8 = vld [vmem:[%s3809_s20 + $0x60] sm:$0xff]  }
  0x20   : > { %3247 = vmatprep.mubr.msk.bf16.mxu0 %vm3673_vm0, %v3672_v0  ;;  %3287 = vmatprep.mubr.msk.bf16.mxu1 %vm3673_vm0, %v3672_v0  ;;  %v3423_v9 = vld [vmem:[%s3809_s20 + $0x18] sm:$0xff]   ;;  %v3428_v10 = vld [vmem:[%s3809_s20 + $0x68] sm:$0xff]   ;;  %v3425_v11 = vld [vmem:[%s3809_s20 + $0x20] sm:$0xff]  }
  0x21   : > { %v3430_v12 = vld [vmem:[%s3809_s20 + $0x70] sm:$0xff]   ;;  %v3427_v13 = vld [vmem:[%s3809_s20 + $0x28] sm:$0xff]   ;;  %v3431_v15 = vld [vmem:[%s3809_s20 + $0x38] sm:$0xff]  }
  0x22   : > { %v3429_v14 = vld [vmem:[%s3809_s20 + $0x30] sm:$0xff]   ;;  %v3432_v16 = vld [vmem:[%s3809_s20 + $0x40] sm:$0xff]   ;;  %v3433_v17 = vld [vmem:[%s3809_s20 + $0x48] sm:$0xff]  }
  0x27   : > { %3248 = vmatmul.mubr.msk.bf16.gmra.mrb[4].mxu0 %vm425_vm1, %v3420_v5  ;;  %3288 = vmatmul.mubr.msk.bf16.gmra.mrb[4].mxu1 %vm425_vm1, %v3424_v6 }
  0x28   : > { %3251 = vmatprep.mubr.msk.bf16.mxu0 %vm3673_vm0, %v3672_v0  ;;  %3291 = vmatprep.mubr.msk.bf16.mxu1 %vm3673_vm0, %v3672_v0 }
  0x2f   : > { %3252 = vmatmul.mubr.msk.bf16.gmra.mrb[8].mxu0 %vm425_vm1, %v3421_v7  ;;  %3292 = vmatmul.mubr.msk.bf16.gmra.mrb[8].mxu1 %vm425_vm1, %v3426_v8 }
  0x30   : > { %3255 = vmatprep.mubr.msk.bf16.mxu0 %vm3673_vm0, %v3672_v0  ;;  %3295 = vmatprep.mubr.msk.bf16.mxu1 %vm3673_vm0, %v3672_v0 }
  0x37   : > { %3256 = vmatmul.mubr.msk.bf16.gmra.mrb[12].mxu0 %vm425_vm1, %v3423_v9  ;;  %3296 = vmatmul.mubr.msk.bf16.gmra.mrb[12].mxu1 %vm425_vm1, %v3428_v10 }
  0x38   : > { %3259 = vmatprep.mubr.msk.bf16.mxu0 %vm3673_vm0, %v3672_v0  ;;  %3299 = vmatprep.mubr.msk.bf16.mxu1 %vm3673_vm0, %v3672_v0 }
  0x3f   : > { %3260 = vmatmul.mubr.msk.bf16.gmra.mrb[16].mxu0 %vm425_vm1, %v3425_v11  ;;  %3300 = vmatmul.mubr.msk.bf16.gmra.mrb[16].mxu1 %vm425_vm1, %v3430_v12 }
  0x40   : > { %3263 = vmatprep.mubr.msk.bf16.mxu0 %vm3673_vm0, %v3672_v0 }
  0x47   : > { %3264 = vmatmul.mubr.msk.bf16.gmra.mrb[20].mxu0 %vm425_vm1, %v3427_v13 }
  0x48   : > { %3267 = vmatprep.mubr.msk.bf16.mxu0 %vm3673_vm0, %v3672_v0 }
  0x4f   : > { %3268 = vmatmul.mubr.msk.bf16.gmra.mrb[24].mxu0 %vm425_vm1, %v3429_v14 }
  0x50   : > { %3271 = vmatprep.mubr.msk.bf16.mxu0 %vm3673_vm0, %v3672_v0 }
  0x57   : > { %3272 = vmatmul.mubr.msk.bf16.gmra.mrb[28].mxu0 %vm425_vm1, %v3431_v15 }
  0x58   : > { %3275 = vmatprep.mubr.msk.bf16.mxu0 %vm3673_vm0, %v3672_v0 }
  0x5f   : > { %3276 = vmatmul.mubr.msk.bf16.gmra.mrb[32].mxu0 %vm425_vm1, %v3432_v16 }
  0x60   : > { %3279 = vmatprep.mubr.msk.bf16.mxu0 %vm3673_vm0, %v3672_v0 }
  0x67   : > { %3280 = vmatmul.mubr.msk.bf16.gmra.mrb[36].mxu0 %vm425_vm1, %v3433_v17 }
  0xf2   : > { %v505_v19 = vpop.f32.mrb[0].mxu0  ;;  %v585_v26 = vpop.f32.mrb[0].mxu1 }
  0xf3   : > { %v506_v20 = vadd.f32 %v3857_v18, %v505_v19  ;;  %v3245_v21 = vpop.f32.mrb[1].mxu0  ;;  %v3862_v27 = vadd.f32 %v3857_v18, %v585_v26  ;;  %v3285_v28 = vpop.f32.mrb[1].mxu1 }
  0xf4   : > { %v508_v22 = vpop.f32.mrb[2].mxu0  ;;  %v588_v31 = vpop.f32.mrb[2].mxu1 }
  0xf5   : > { %v624_v23 = vmul.f32 %v506_v20, %v506_v20  ;;  %v509_v24 = vadd.f32 %v3857_v18, %v508_v22  ;;  %v3246_v25 = vpop.f32.mrb[3].mxu0  ;;  %v644_v32 = vmul.f32 %v3862_v27, %v3862_v27  ;;  %v589_v33 = vadd.f32 %v3857_v18, %v588_v31  ;;  %v3286_v34 = vpop.f32.mrb[3].mxu1 }
  0xf6   : > { %v744_v7 = vmul.f32 0.5, %v506_v20 }
  0xf7   : > { %v654_v29 = vmul.f32 0.035677407, %v624_v23  ;;  %v625_v30 = vmul.f32 %v509_v24, %v509_v24  ;;  %v674_v38 = vmul.f32 0.035677407, %v644_v32  ;;  %v645_v39 = vmul.f32 %v589_v33, %v589_v33 }
  0xf8   : > { %v745_v10 = vmul.f32 0.5, %v509_v24  ;;  %v765_v25 = vmul.f32 0.5, %v589_v33 }
  0xf9   : > { %v684_v35 = vadd.f32 0.7978846, %v654_v29  ;;  %v655_v36 = vmul.f32 0.035677407, %v625_v30  ;;  %v704_v45 = vadd.f32 0.7978846, %v674_v38 }
  0xfa   : > { %v513_v37 = vpop.f32.mrb[4].mxu0  ;;  %v675_v46 = vmul.f32 0.035677407, %v645_v39  ;;  %v593_v50 = vpop.f32.mrb[4].mxu1 }
  0xfb   : > { %v714_v40 = vmul.f32 %v684_v35, %v506_v20  ;;  %v685_v41 = vadd.f32 0.7978846, %v655_v36  ;;  %v514_v42 = vadd.f32 %v3857_v18, %v513_v37  ;;  %v3249_v43 = vpop.f32.mrb[5].mxu0  ;;  %v734_v52 = vmul.f32 %v704_v45, %v3862_v27  ;;  %v3289_v55 = vpop.f32.mrb[5].mxu1 }
  0xfc   : > { %v516_v44 = vpop.f32.mrb[6].mxu0  ;;  %v705_v53 = vadd.f32 0.7978846, %v675_v46  ;;  %v3873_v54 = vadd.f32 %v3857_v18, %v593_v50  ;;  %v596_v57 = vpop.f32.mrb[6].mxu1 }
  0xfd   : > { %3434 = vtanh.f32 %v714_v40  ;;  %v715_v47 = vmul.f32 %v685_v41, %v509_v24  ;;  %v626_v48 = vmul.f32 %v514_v42, %v514_v42  ;;  %v3250_v49 = vpop.f32.mrb[7].mxu0  ;;  %v3869_v51 = vadd.f32 %v3857_v18, %v516_v44  ;;  %v3290_v60 = vpop.f32.mrb[7].mxu1 }
  0xfe   : > { %v735_v59 = vmul.f32 %v705_v53, %v589_v33  ;;  %v646_v62 = vmul.f32 %v3873_v54, %v3873_v54  ;;  %v3880_v63 = vadd.f32 %v3857_v18, %v596_v57  ;;  %v764_v24 = vmul.f32 0.5, %v3862_v27 }
  0xff   : > { %3436 = vtanh.f32 %v715_v47  ;;  %v656_v56 = vmul.f32 0.035677407, %v626_v48  ;;  %v627_v58 = vmul.f32 %v3869_v51, %v3869_v51  ;;  %v3900_v34 = vmul.f32 0.5, %v514_v42 }
 0x100   : > { %3438 = vtanh.f32 %v734_v52  ;;  %v676_v5 = vmul.f32 0.035677407, %v646_v62  ;;  %v647_v6 = vmul.f32 %v3880_v63, %v3880_v63 }
 0x101   : > { %v686_v61 = vadd.f32 0.7978846, %v656_v56  ;;  %v657_v0 = vmul.f32 0.035677407, %v627_v58  ;;  %3440 = vtanh.f32 %v735_v59  ;;  %v747_v59 = vmul.f32 0.5, %v3869_v51 }
 0x102   : > { %v521_v1 = vpop.f32.mrb[8].mxu0  ;;  %v601_v14 = vpop.f32.mrb[8].mxu1  ;;  %v706_v16 = vadd.f32 0.7978846, %v676_v5  ;;  %v677_v17 = vmul.f32 0.035677407, %v647_v6 }
 0x103   : > { %v716_v2 = vmul.f32 %v686_v61, %v514_v42  ;;  %v3883_v3 = vadd.f32 %v3857_v18, %v521_v1  ;;  %v3253_v4 = vpop.f32.mrb[9].mxu0  ;;  %v687_v8 = vadd.f32 0.7978846, %v657_v0  ;;  %v3894_v19 = vadd.f32 %v3857_v18, %v601_v14  ;;  %v3293_v20 = vpop.f32.mrb[9].mxu1 }
 0x104   : > { %v524_v9 = vpop.f32.mrb[10].mxu0  ;;  %v604_v26 = vpop.f32.mrb[10].mxu1  ;;  %v736_v29 = vmul.f32 %v706_v16, %v3873_v54  ;;  %v707_v30 = vadd.f32 0.7978846, %v677_v17 }
 0x105   : > { %3442 = vtanh.f32 %v716_v2  ;;  %v628_v11 = vmul.f32 %v3883_v3, %v3883_v3  ;;  %v3890_v12 = vadd.f32 %v3857_v18, %v524_v9  ;;  %v3254_v13 = vpop.f32.mrb[11].mxu0  ;;  %v717_v15 = vmul.f32 %v687_v8, %v3869_v51  ;;  %v3294_v31 = vpop.f32.mrb[11].mxu1 }
 0x106   : > { %v648_v37 = vmul.f32 %v3894_v19, %v3894_v19  ;;  %v737_v33 = vmul.f32 %v707_v30, %v3880_v63  ;;  %v3910_v50 = vadd.f32 %v3857_v18, %v604_v26  ;;  %v766_v8 = vmul.f32 0.5, %v3873_v54 }
 0x107   : > { %v3435_v21 = vpop.eup %3434  ;;  %v658_v22 = vmul.f32 0.035677407, %v628_v11  ;;  %v629_v23 = vmul.f32 %v3890_v12, %v3890_v12  ;;  %3444 = vtanh.f32 %v717_v15  ;;  %v767_v11 = vmul.f32 0.5, %v3880_v63 }
 0x108   : > { %v804_v28 = vadd.f32 1.0, %v3435_v21  ;;  %3446 = vtanh.f32 %v736_v29  ;;  %v678_v49 = vmul.f32 0.035677407, %v648_v37  ;;  %v649_v4 = vmul.f32 %v3910_v50, %v3910_v50 }
 0x109   : > { %v3437_v32 = vpop.eup %3436  ;;  %v688_v35 = vadd.f32 0.7978846, %v658_v22  ;;  %v659_v36 = vmul.f32 0.035677407, %v629_v23  ;;  %3448 = vtanh.f32 %v737_v33  ;;  %v748_v16 = vmul.f32 0.5, %v3883_v3 }
 0x10a   : > { %v3439_v38 = vpop.eup %3438  ;;  %v834_v39 = vmul.f32 %v804_v28, %v744_v7  ;;  %v805_v40 = vadd.f32 1.0, %v3437_v32  ;;  %v529_v27 = vpop.f32.mrb[12].mxu0  ;;  %v708_v2 = vadd.f32 0.7978846, %v678_v49  ;;  %v679_v14 = vmul.f32 0.035677407, %v649_v4 }
 0x10b   : > { %v718_v41 = vmul.f32 %v688_v35, %v3883_v3  ;;  %v689_v43 = vadd.f32 0.7978846, %v659_v36  ;;  %v824_v44 = vadd.f32 1.0, %v3439_v38  ;;  %v3907_v42 = vadd.f32 %v3857_v18, %v529_v27  ;;  %v3257_v45 = vpop.f32.mrb[13].mxu0  ;;  %v3441_v46 = vpop.eup %3440 }
 0x10c   : > { %v835_v47 = vmul.f32 %v805_v40, %v745_v10  ;;  %v532_v48 = vpop.f32.mrb[14].mxu0  ;;  %v825_v55 = vadd.f32 1.0, %v3441_v46  ;;  %v609_v57 = vpop.f32.mrb[12].mxu1  ;;  %v738_v13 = vmul.f32 %v708_v2, %v3894_v19  ;;  %v709_v63 = vadd.f32 0.7978846, %v679_v14 }
 0x10d   : > { %3450 = vtanh.f32 %v718_v41  ;;  %v719_v52 = vmul.f32 %v689_v43, %v3890_v12  ;;  %v854_v53 = vmul.f32 %v824_v44, %v764_v24  ;;  %v3258_v56 = vpop.f32.mrb[15].mxu0  ;;  %v630_v60 = vmul.f32 %v3907_v42, %v3907_v42  ;;  %v3297_v62 = vpop.f32.mrb[13].mxu1 }
 0x10e   : > { %v3042_v58 = vpack.c.bf16 %v835_v47, %v834_v39  ;;  %v3917_v61 = vadd.f32 %v3857_v18, %v532_v48  ;;  %v855_v1 = vmul.f32 %v825_v55, %v765_v25  ;;  %v3921_v5 = vpop.f32.mrb[14].mxu1  ;;  %v3930_v22 = vadd.f32 %v3857_v18, %v609_v57 }
 0x10f   : > { %v3443_v0 = vpop.eup %3442  ;;  %3452 = vtanh.f32 %v719_v52  ;;  %v660_v6 = vmul.f32 0.035677407, %v630_v60  ;;  %v3298_v9 = vpop.f32.mrb[15].mxu1  ;;  %v749_v28 = vmul.f32 0.5, %v3890_v12  ;;  %v739_v27 = vmul.f32 %v709_v63, %v3910_v50 }
 0x110   : > { %3043 = vst [vmem:[#allocation2] sm:$0xff] %v3042_v58   ;;  %v806_v51 = vadd.f32 1.0, %v3443_v0  ;;  %v631_v7 = vmul.f32 %v3917_v61, %v3917_v61  ;;  %v3092_v10 = vpack.c.bf16 %v855_v1, %v854_v53  ;;  %3454 = vtanh.f32 %v738_v13 }
 0x111   : > { %v3445_v15 = vpop.eup %3444  ;;  %v690_v17 = vadd.f32 0.7978846, %v660_v6 }
 0x112   : > { %v661_v20 = vmul.f32 0.035677407, %v631_v7  ;;  %v537_v21 = vpop.f32.mrb[16].mxu0  ;;  %v807_v23 = vadd.f32 1.0, %v3445_v15  ;;  %3187 = vst [vmem:[#allocation2 + $0x50] sm:$0xff] %v3092_v10   ;;  %v3447_v25 = vpop.eup %3446  ;;  %v836_v26 = vmul.f32 %v806_v51, %v3900_v34  ;;  %v650_v34 = vmul.f32 %v3930_v22, %v3930_v22 }
 0x113   : > { %v3933_v54 = vadd.f32 %v3857_v18, %v537_v21  ;;  %v3261_v24 = vpop.f32.mrb[17].mxu0  ;;  %v720_v3 = vmul.f32 %v690_v17, %v3907_v42  ;;  %v826_v35 = vadd.f32 1.0, %v3447_v25  ;;  %v617_v12 = vpop.f32.mrb[16].mxu1  ;;  %v3968_v51 = vadd.f32 %v3857_v18, %v3921_v5 }
 0x114   : > { %v691_v29 = vadd.f32 0.7978846, %v661_v20  ;;  %v540_v30 = vpop.f32.mrb[18].mxu0  ;;  %v837_v32 = vmul.f32 %v807_v23, %v747_v59  ;;  %v3449_v38 = vpop.eup %3448  ;;  %v768_v59 = vmul.f32 0.5, %v3894_v19  ;;  %v3971_v6 = vadd.f32 %v3857_v18, %v617_v12 }
 0x115   : > { %v632_v36 = vmul.f32 %v3933_v54, %v3933_v54  ;;  %v3262_v37 = vpop.f32.mrb[19].mxu0  ;;  %3456 = vtanh.f32 %v720_v3  ;;  %v3950_v40 = vadd.f32 %v3857_v18, %v540_v30  ;;  %v3301_v33 = vpop.f32.mrb[17].mxu1  ;;  %v856_v45 = vmul.f32 %v826_v35, %v766_v8 }
 0x116   : > { %v721_v39 = vmul.f32 %v691_v29, %v3917_v61  ;;  %v3047_v44 = vpack.c.bf16 %v837_v32, %v836_v26  ;;  %v827_v46 = vadd.f32 1.0, %v3449_v38  ;;  %v3953_v48 = vpop.f32.mrb[18].mxu1  ;;  %v680_v15 = vmul.f32 0.035677407, %v650_v34 }
 0x117   : > { %v3451_v41 = vpop.eup %3450  ;;  %v1027_v43 = vld [vmem:[#allocation2] sm:$0x1]  ;;  %v662_v47 = vmul.f32 0.035677407, %v632_v36  ;;  %v633_v53 = vmul.f32 %v3950_v40, %v3950_v40  ;;  %v3302_v55 = vpop.f32.mrb[19].mxu1  ;;  %v750_v17 = vmul.f32 0.5, %v3907_v42  ;;  %v651_v23 = vmul.f32 %v3968_v51, %v3968_v51 }
 0x118   : > { %v1028_v49 = vsel %vm3940_vm6, 0, %v1027_v43  ;;  %v808_v52 = vadd.f32 1.0, %v3451_v41  ;;  %3458 = vtanh.f32 %v721_v39  ;;  %3178 = vst [vmem:[#allocation2 + $0x8] sm:$0xff] %v3047_v44   ;;  %v857_v57 = vmul.f32 %v827_v46, %v767_v11 }
 0x119   : > { %v3453_v56 = vpop.eup %3452  ;;  %1029 = vst [vmem:[#allocation2] sm:$0x1] %v1028_v49  ;;  %v692_v58 = vadd.f32 0.7978846, %v662_v47  ;;  %3460 = vtanh.f32 %v739_v27  ;;  %v1048_v1 = vld [vmem:[#allocation2 + $0x54] sm:$0x1]  ;;  %v652_v12 = vmul.f32 %v3971_v6, %v3971_v6 }
 0x11a   : > { %v838_v62 = vmul.f32 %v808_v52, %v748_v16  ;;  %v809_v0 = vadd.f32 1.0, %v3453_v56  ;;  %v1078_v2 = vld [vmem:[#allocation2 + $0x50] sm:$0xf]  ;;  %v545_v4 = vpop.f32.mrb[20].mxu0  ;;  %v1049_v19 = vsel %vm3940_vm6, 0, %v1048_v1  ;;  %v3097_v8 = vpack.c.bf16 %v857_v57, %v856_v45  ;;  %v3455_v16 = vpop.eup %3454 }
 0x11b   : > { %v1079_v7 = vsel %vm3962_vm7, 0, %v1078_v2  ;;  %v722_v9 = vmul.f32 %v692_v58, %v3933_v54  ;;  %v3265_v10 = vpop.f32.mrb[21].mxu0  ;;  %1050 = vst [vmem:[#allocation2 + $0x54] sm:$0x1] %v1049_v19  ;;  %v663_v13 = vmul.f32 0.035677407, %v633_v53  ;;  %v3979_v5 = vadd.f32 %v3857_v18, %v545_v4 }
 0x11c   : > { %v839_v11 = vmul.f32 %v809_v0, %v749_v28  ;;  %1080 = vst [vmem:[#allocation2 + $0x50] sm:$0xf] %v1079_v7  ;;  %v548_v14 = vpop.f32.mrb[22].mxu0  ;;  %3188 = vst [vmem:[#allocation2 + $0x58] sm:$0xff] %v3097_v8   ;;  %v828_v25 = vadd.f32 1.0, %v3455_v16  ;;  %v751_v28 = vmul.f32 0.5, %v3917_v61 }
 0x11d   : > { %3462 = vtanh.f32 %v722_v9  ;;  %v3983_v20 = vadd.f32 %v3857_v18, %v548_v14  ;;  %v3266_v21 = vpop.f32.mrb[23].mxu0  ;;  %v693_v63 = vadd.f32 0.7978846, %v663_v13  ;;  %v634_v26 = vmul.f32 %v3979_v5, %v3979_v5 }
 0x11e   : > { %v3052_v24 = vpack.c.bf16 %v839_v11, %v838_v62  ;;  %v769_v3 = vmul.f32 0.5, %v3910_v50  ;;  %v710_v29 = vadd.f32 0.7978846, %v680_v15  ;;  %v858_v37 = vmul.f32 %v828_v25, %v768_v59 }
 0x11f   : > { %v635_v42 = vmul.f32 %v3983_v20, %v3983_v20  ;;  %v3457_v30 = vpop.eup %3456  ;;  %v1030_v32 = vld [vmem:[#allocation2 + $0xc] sm:$0x1]  ;;  %v1060_v35 = vld [vmem:[#allocation2 + $0x8] sm:$0xf]  ;;  %v723_v36 = vmul.f32 %v693_v63, %v3950_v40  ;;  %v664_v34 = vmul.f32 0.035677407, %v634_v26  ;;  %v4022_v25 = vadd.f32 %v3857_v18, %v3953_v48 }
 0x120   : > { %3179 = vst [vmem:[#allocation2 + $0x10] sm:$0xff] %v3052_v24   ;;  %v1031_v61 = vsel %vm3940_vm6, 0, %v1030_v32  ;;  %v1061_v50 = vsel %vm3962_vm7, 0, %v1060_v35  ;;  %v810_v38 = vadd.f32 1.0, %v3457_v30  ;;  %v740_v41 = vmul.f32 %v710_v29, %v3930_v22 }
 0x121   : > { %v665_v39 = vmul.f32 0.035677407, %v635_v42  ;;  %1032 = vst [vmem:[#allocation2 + $0xc] sm:$0x1] %v1031_v61  ;;  %1062 = vst [vmem:[#allocation2 + $0x8] sm:$0xf] %v1061_v50  ;;  %3464 = vtanh.f32 %v723_v36  ;;  %v653_v48 = vmul.f32 %v4022_v25, %v4022_v25 }
 0x122   : > { %v3459_v27 = vpop.eup %3458  ;;  %v694_v33 = vadd.f32 0.7978846, %v664_v34  ;;  %v681_v43 = vmul.f32 0.035677407, %v651_v23  ;;  %v553_v44 = vpop.f32.mrb[24].mxu0  ;;  %v840_v46 = vmul.f32 %v810_v38, %v750_v17  ;;  %3466 = vtanh.f32 %v740_v41 }
 0x123   : > { %v3461_v45 = vpop.eup %3460  ;;  %v811_v47 = vadd.f32 1.0, %v3459_v27  ;;  %v695_v49 = vadd.f32 0.7978846, %v665_v39  ;;  %v4002_v52 = vadd.f32 %v3857_v18, %v553_v44  ;;  %v3269_v53 = vpop.f32.mrb[25].mxu0  ;;  %v1081_v55 = vld [vmem:[#allocation2 + $0x5c] sm:$0xf] }
 0x124   : > { %v829_v56 = vadd.f32 1.0, %v3461_v45  ;;  %v724_v57 = vmul.f32 %v694_v33, %v3979_v5  ;;  %v711_v58 = vadd.f32 0.7978846, %v681_v43  ;;  %v556_v59 = vpop.f32.mrb[26].mxu0  ;;  %v1082_v0 = vsel %vm3962_vm7, 0, %v1081_v55 }
 0x125   : > { %v841_v62 = vmul.f32 %v811_v47, %v751_v28  ;;  %v725_v1 = vmul.f32 %v695_v49, %v3983_v20  ;;  %v636_v2 = vmul.f32 %v4002_v52, %v4002_v52  ;;  %v3270_v4 = vpop.f32.mrb[27].mxu0  ;;  %1083 = vst [vmem:[#allocation2 + $0x5c] sm:$0xf] %v1082_v0  ;;  %v4012_v13 = vadd.f32 %v3857_v18, %v556_v59 }
 0x126   : > { %v859_v19 = vmul.f32 %v829_v56, %v769_v3  ;;  %3468 = vtanh.f32 %v724_v57  ;;  %v741_v7 = vmul.f32 %v711_v58, %v3968_v51  ;;  %v682_v21 = vmul.f32 0.035677407, %v652_v12 }
 0x127   : > { %v3463_v8 = vpop.eup %3462  ;;  %v1063_v9 = vld [vmem:[#allocation2 + $0x14] sm:$0xf]  ;;  %v3057_v10 = vpack.c.bf16 %v841_v62, %v840_v46  ;;  %3470 = vtanh.f32 %v725_v1  ;;  %v666_v11 = vmul.f32 0.035677407, %v636_v2  ;;  %v637_v17 = vmul.f32 %v4012_v13, %v4012_v13 }
 0x128   : > { %v1064_v14 = vsel %vm3962_vm7, 0, %v1063_v9  ;;  %v3102_v15 = vpack.c.bf16 %v859_v19, %v858_v37  ;;  %3472 = vtanh.f32 %v741_v7  ;;  %v752_v23 = vmul.f32 0.5, %v3933_v54 }
 0x129   : > { %1065 = vst [vmem:[#allocation2 + $0x14] sm:$0xf] %v1064_v14  ;;  %3180 = vst [vmem:[#allocation2 + $0x18] sm:$0xff] %v3057_v10   ;;  %v696_v16 = vadd.f32 0.7978846, %v666_v11  ;;  %v812_v24 = vadd.f32 1.0, %v3463_v8 }
 0x12a   : > { %3189 = vst [vmem:[#allocation2 + $0x60] sm:$0xff] %v3102_v15   ;;  %v770_v63 = vmul.f32 0.5, %v3930_v22  ;;  %v561_v26 = vpop.f32.mrb[28].mxu0  ;;  %v667_v3 = vmul.f32 0.035677407, %v637_v17  ;;  %v753_v54 = vmul.f32 0.5, %v3950_v40 }
 0x12b   : > { %v726_v28 = vmul.f32 %v696_v16, %v4002_v52  ;;  %v712_v42 = vadd.f32 0.7978846, %v682_v21  ;;  %v4026_v29 = vadd.f32 %v3857_v18, %v561_v26  ;;  %v3273_v30 = vpop.f32.mrb[29].mxu0  ;;  %v3465_v32 = vpop.eup %3464  ;;  %v754_v35 = vmul.f32 0.5, %v3979_v5 }
 0x12c   : > { %v771_v22 = vmul.f32 0.5, %v3968_v51  ;;  %v564_v36 = vpop.f32.mrb[30].mxu0  ;;  %v813_v37 = vadd.f32 1.0, %v3465_v32  ;;  %v697_v34 = vadd.f32 0.7978846, %v667_v3  ;;  %v3467_v50 = vpop.eup %3466  ;;  %v842_v38 = vmul.f32 %v812_v24, %v752_v23 }
 0x12d   : > { %3474 = vtanh.f32 %v726_v28  ;;  %v742_v12 = vmul.f32 %v712_v42, %v3971_v6  ;;  %v3274_v61 = vpop.f32.mrb[31].mxu0  ;;  %v683_v39 = vmul.f32 0.035677407, %v653_v48  ;;  %v638_v40 = vmul.f32 %v4026_v29, %v4026_v29 }
 0x12e   : > { %v4037_v5 = vadd.f32 %v3857_v18, %v564_v36  ;;  %v843_v51 = vmul.f32 %v813_v37, %v753_v54  ;;  %v830_v27 = vadd.f32 1.0, %v3467_v50  ;;  %v727_v33 = vmul.f32 %v697_v34, %v4012_v13 }
 0x12f   : > { %3476 = vtanh.f32 %v742_v12  ;;  %v713_v44 = vadd.f32 0.7978846, %v683_v39  ;;  %v668_v45 = vmul.f32 0.035677407, %v638_v40  ;;  %v755_v57 = vmul.f32 0.5, %v3983_v20 }
 0x130   : > { %v3469_v41 = vpop.eup %3468  ;;  %v1033_v43 = vld [vmem:[#allocation2 + $0x18] sm:$0x1]  ;;  %v639_v46 = vmul.f32 %v4037_v5, %v4037_v5  ;;  %v3062_v53 = vpack.c.bf16 %v843_v51, %v842_v38  ;;  %3478 = vtanh.f32 %v727_v33  ;;  %v860_v2 = vmul.f32 %v830_v27, %v770_v63 }
 0x131   : > { %v3471_v47 = vpop.eup %3470  ;;  %v1034_v49 = vsel %vm3940_vm6, 0, %v1033_v43  ;;  %v1051_v55 = vld [vmem:[#allocation2 + $0x60] sm:$0x1]  ;;  %v814_v56 = vadd.f32 1.0, %v3469_v41  ;;  %v743_v0 = vmul.f32 %v713_v44, %v4022_v25  ;;  %v698_v19 = vadd.f32 0.7978846, %v668_v45 }
 0x132   : > { %v3473_v58 = vpop.eup %3472  ;;  %1035 = vst [vmem:[#allocation2 + $0x18] sm:$0x1] %v1034_v49  ;;  %v1052_v59 = vsel %vm3940_vm6, 0, %v1051_v55  ;;  %v815_v62 = vadd.f32 1.0, %v3471_v47  ;;  %v569_v1 = vpop.f32.mrb[32].mxu0  ;;  %3181 = vst [vmem:[#allocation2 + $0x20] sm:$0xff] %v3062_v53  }
 0x133   : > { %1053 = vst [vmem:[#allocation2 + $0x60] sm:$0x1] %v1052_v59  ;;  %v831_v4 = vadd.f32 1.0, %v3473_v58  ;;  %v669_v7 = vmul.f32 0.035677407, %v639_v46  ;;  %v3277_v8 = vpop.f32.mrb[33].mxu0  ;;  %v844_v9 = vmul.f32 %v814_v56, %v754_v35  ;;  %3480 = vtanh.f32 %v743_v0 }
 0x134   : > { %v845_v10 = vmul.f32 %v815_v62, %v755_v57  ;;  %v4049_v20 = vadd.f32 %v3857_v18, %v569_v1  ;;  %v572_v11 = vpop.f32.mrb[34].mxu0  ;;  %v728_v15 = vmul.f32 %v698_v19, %v4026_v29  ;;  %v772_v54 = vmul.f32 0.5, %v3971_v6 }
 0x135   : > { %v861_v14 = vmul.f32 %v831_v4, %v771_v22  ;;  %v699_v16 = vadd.f32 0.7978846, %v669_v7  ;;  %v4053_v17 = vadd.f32 %v3857_v18, %v572_v11  ;;  %v3278_v21 = vpop.f32.mrb[35].mxu0  ;;  %v756_v39 = vmul.f32 0.5, %v4002_v52 }
 0x136   : > { %v3067_v23 = vpack.c.bf16 %v845_v10, %v844_v9  ;;  %v640_v24 = vmul.f32 %v4049_v20, %v4049_v20  ;;  %3482 = vtanh.f32 %v728_v15  ;;  %v757_v6 = vmul.f32 0.5, %v4012_v13 }
 0x137   : > { %v3475_v63 = vpop.eup %3474  ;;  %v3107_v26 = vpack.c.bf16 %v861_v14, %v860_v2  ;;  %v729_v28 = vmul.f32 %v699_v16, %v4037_v5  ;;  %v641_v3 = vmul.f32 %v4053_v17, %v4053_v17  ;;  %v773_v33 = vmul.f32 0.5, %v4022_v25 }
 0x138   : > { %3182 = vst [vmem:[#allocation2 + $0x28] sm:$0xff] %v3067_v23   ;;  %v670_v42 = vmul.f32 0.035677407, %v640_v24  ;;  %v816_v32 = vadd.f32 1.0, %v3475_v63  ;;  %v758_v10 = vmul.f32 0.5, %v4026_v29  ;;  %v759_v11 = vmul.f32 0.5, %v4037_v5 }
 0x139   : > { %v3477_v30 = vpop.eup %3476  ;;  %3190 = vst [vmem:[#allocation2 + $0x68] sm:$0xff] %v3107_v26   ;;  %3484 = vtanh.f32 %v729_v28  ;;  %v671_v35 = vmul.f32 0.035677407, %v641_v3  ;;  %v1036_v22 = vld [vmem:[#allocation2 + $0x24] sm:$0x1] }
 0x13a   : > { %v1066_v48 = vld [vmem:[#allocation2 + $0x20] sm:$0xf]  ;;  %v832_v36 = vadd.f32 1.0, %v3477_v30  ;;  %v577_v37 = vpop.f32.mrb[36].mxu0  ;;  %v1037_v34 = vsel %vm3940_vm6, 0, %v1036_v22  ;;  %v3479_v38 = vpop.eup %3478  ;;  %v846_v46 = vmul.f32 %v816_v32, %v756_v39  ;;  %v760_v30 = vmul.f32 0.5, %v4049_v20 }
 0x13b   : > { %v1067_v12 = vsel %vm3962_vm7, 0, %v1066_v48  ;;  %v700_v61 = vadd.f32 0.7978846, %v670_v42  ;;  %v701_v50 = vadd.f32 0.7978846, %v671_v35  ;;  %v4068_v40 = vadd.f32 %v3857_v18, %v577_v37  ;;  %v3281_v51 = vpop.f32.mrb[37].mxu0 }
 0x13c   : > { %1038 = vst [vmem:[#allocation2 + $0x24] sm:$0x1] %v1037_v34  ;;  %1068 = vst [vmem:[#allocation2 + $0x20] sm:$0xf] %v1067_v12  ;;  %v817_v27 = vadd.f32 1.0, %v3479_v38  ;;  %v580_v44 = vpop.f32.mrb[38].mxu0  ;;  %v862_v55 = vmul.f32 %v832_v36, %v772_v54 }
 0x13d   : > { %v730_v41 = vmul.f32 %v700_v61, %v4049_v20  ;;  %v731_v43 = vmul.f32 %v701_v50, %v4053_v17  ;;  %v3481_v45 = vpop.eup %3480  ;;  %v642_v47 = vmul.f32 %v4068_v40, %v4068_v40  ;;  %v4076_v52 = vadd.f32 %v3857_v18, %v580_v44  ;;  %v3282_v13 = vpop.f32.mrb[39].mxu0 }
 0x13e   : > { %v847_v53 = vmul.f32 %v817_v27, %v757_v6  ;;  %v833_v56 = vadd.f32 1.0, %v3481_v45  ;;  %v761_v32 = vmul.f32 0.5, %v4053_v17  ;;  %v762_v39 = vmul.f32 0.5, %v4068_v40 }
 0x13f   : > { %v1069_v49 = vld [vmem:[#allocation2 + $0x2c] sm:$0xf]  ;;  %3486 = vtanh.f32 %v730_v41  ;;  %v643_v59 = vmul.f32 %v4076_v52, %v4076_v52  ;;  %v672_v19 = vmul.f32 0.035677407, %v642_v47  ;;  %v763_v6 = vmul.f32 0.5, %v4076_v52 }
 0x140   : > { %v1070_v25 = vsel %vm3962_vm7, 0, %v1069_v49  ;;  %v1054_v57 = vld [vmem:[#allocation2 + $0x6c] sm:$0x1]  ;;  %v1084_v58 = vld [vmem:[#allocation2 + $0x68] sm:$0xf]  ;;  %3488 = vtanh.f32 %v731_v43  ;;  %v3483_v62 = vpop.eup %3482  ;;  %v3072_v1 = vpack.c.bf16 %v847_v53, %v846_v46  ;;  %v863_v2 = vmul.f32 %v833_v56, %v773_v33 }
 0x141   : > { %1071 = vst [vmem:[#allocation2 + $0x2c] sm:$0xf] %v1070_v25  ;;  %v1055_v18 = vsel %vm3940_vm6, 0, %v1054_v57  ;;  %v1085_v0 = vsel %vm3962_vm7, 0, %v1084_v58  ;;  %v818_v4 = vadd.f32 1.0, %v3483_v62 }
 0x142   : > { %1056 = vst [vmem:[#allocation2 + $0x6c] sm:$0x1] %v1055_v18  ;;  %1086 = vst [vmem:[#allocation2 + $0x68] sm:$0xf] %v1085_v0  ;;  %v673_v7 = vmul.f32 0.035677407, %v643_v59  ;;  %v3112_v9 = vpack.c.bf16 %v863_v2, %v862_v55 }
 0x143   : > { %v3485_v8 = vpop.eup %3484  ;;  %3183 = vst [vmem:[#allocation2 + $0x30] sm:$0xff] %v3072_v1   ;;  %v702_v15 = vadd.f32 0.7978846, %v672_v19  ;;  %v848_v21 = vmul.f32 %v818_v4, %v758_v10 }
 0x144   : > { %v819_v14 = vadd.f32 1.0, %v3485_v8  ;;  %v703_v16 = vadd.f32 0.7978846, %v673_v7  ;;  %3191 = vst [vmem:[#allocation2 + $0x70] sm:$0xff] %v3112_v9  }
 0x145   : > { %v732_v24 = vmul.f32 %v702_v15, %v4068_v40  ;;  %v3674_v40 = vmov (!%p2953_p13), 0  }
 0x146   : > { %v849_v23 = vmul.f32 %v819_v14, %v759_v11  ;;  %v733_v63 = vmul.f32 %v703_v16, %v4076_v52  ;;  %1094 = vst [vmem:[#allocation2] sm:$0xf] (!%p2953_p13), %v3674_v40  ;;  %1095 = vst [vmem:[#allocation2 + $0x4] sm:$0xf] (!%p2953_p13), %v3674_v40 }
 0x147   : > { %3490 = vtanh.f32 %v732_v24  ;;  %1096 = vst [vmem:[#allocation2 + $0x8] sm:$0xf] (!%p2953_p13), %v3674_v40 }
 0x148   : > { %v3077_v26 = vpack.c.bf16 %v849_v23, %v848_v21  ;;  %3492 = vtanh.f32 %v733_v63 }
 0x149   : > { %v3487_v28 = vpop.eup %3486 }
 0x14a   : > { %v3489_v3 = vpop.eup %3488  ;;  %v1039_v42 = vld [vmem:[#allocation2 + $0x30] sm:$0x1]  ;;  %3184 = vst [vmem:[#allocation2 + $0x38] sm:$0xff] %v3077_v26   ;;  %v820_v29 = vadd.f32 1.0, %v3487_v28 }
 0x14b   : > { %v1040_v5 = vsel %vm3940_vm6, 0, %v1039_v42  ;;  %v821_v54 = vadd.f32 1.0, %v3489_v3  ;;  %v1087_v35 = vld [vmem:[#allocation2 + $0x74] sm:$0xf] }
 0x14c   : > { %1041 = vst [vmem:[#allocation2 + $0x30] sm:$0x1] %v1040_v5  ;;  %v1088_v22 = vsel %vm3962_vm7, 0, %v1087_v35  ;;  %v850_v48 = vmul.f32 %v820_v29, %v760_v30 }
 0x14d   : > { %v851_v36 = vmul.f32 %v821_v54, %v761_v32  ;;  %1089 = vst [vmem:[#allocation2 + $0x74] sm:$0xf] %v1088_v22 }
 0x14f   : > { %v3082_v37 = vpack.c.bf16 %v851_v36, %v850_v48 }
 0x151   : > { %v1042_v34 = vld [vmem:[#allocation2 + $0x3c] sm:$0x1]  ;;  %v1072_v12 = vld [vmem:[#allocation2 + $0x38] sm:$0xf]  ;;  %3185 = vst [vmem:[#allocation2 + $0x40] sm:$0xff] %v3082_v37   ;;  %v3491_v61 = vpop.eup %3490 }
 0x152   : > { %v1043_v50 = vsel %vm3940_vm6, 0, %v1042_v34  ;;  %v1073_v20 = vsel %vm3962_vm7, 0, %v1072_v12  ;;  %v3493_v17 = vpop.eup %3492  ;;  %v822_v38 = vadd.f32 1.0, %v3491_v61 }
 0x153   : > { %1044 = vst [vmem:[#allocation2 + $0x3c] sm:$0x1] %v1043_v50  ;;  %1074 = vst [vmem:[#allocation2 + $0x38] sm:$0xf] %v1073_v20  ;;  %v823_v51 = vadd.f32 1.0, %v3493_v17 }
 0x154   : > { %v852_v27 = vmul.f32 %v822_v38, %v762_v39 }
 0x155   : > { %v853_v33 = vmul.f32 %v823_v51, %v763_v6 }
 0x157   : > { %v3087_v43 = vpack.c.bf16 %v853_v33, %v852_v27 }
 0x158   : > { %v1075_v41 = vld [vmem:[#allocation2 + $0x44] sm:$0xf] }
 0x159   : > { %v1076_v44 = vsel %vm3962_vm7, 0, %v1075_v41  ;;  %3186 = vst [vmem:[#allocation2 + $0x48] sm:$0xff] %v3087_v43  }
 0x15a   : > { %1077 = vst [vmem:[#allocation2 + $0x44] sm:$0xf] %v1076_v44 }
 0x15c   : > { %1093 = sbr.rel (%p2953_p13) target bundleno = 355 (0x163), region = 52 }
 0x160   : > { %v1045_v45 = vld [vmem:[#allocation2 + $0x48] sm:$0x1] }
 0x161   : > { %v1046_v46 = vsel %vm3940_vm6, 0, %v1045_v45 }
 0x162   : > { %1047 = vst [vmem:[#allocation2 + $0x48] sm:$0x1] %v1046_v46 }
 0x163 PF: > { %p2954_p0 = scmp.ne.s32.totalorder %s3654_s27, 1 }
 0x164   : > { %v3675_v60 = vmov (!%p2954_p0), 0  }
 0x165   : > { %1100 = sbr.rel (%p2954_p0) target bundleno = 364 (0x16c), region = 56  ;;  %1102 = vst [vmem:[#allocation2 + $0x6c] sm:$0xf] (!%p2954_p0), %v3675_v60  ;;  %1103 = vst [vmem:[#allocation2 + $0x70] sm:$0xf] (!%p2954_p0), %v3675_v60 }
 0x166   : > { %1104 = vst [vmem:[#allocation2 + $0x74] sm:$0xf] (!%p2954_p0), %v3675_v60 }
 0x16c PF: > { %v3494_v31 = vld [vmem:[%s4812_s5] sm:$0xff]   ;;  %v3495_v47 = vld [vmem:[%s4812_s5 + $0x8] sm:$0xff]   ;;  %v3496_v52 = vld [vmem:[%s4812_s5 + $0x10] sm:$0xff]   ;;  %vm1243_vm8 = vcmask 1046528   ;;  %vm1385_vm9 = vcmask 1045504   ;;  %s3003_s21 = sshll.u32 %s3658_s28, 5 }
 0x16d   : > { %3303 = vmatprep.subr.bf16.mxu1 %v3494_v31  ;;  %v3497_v13 = vld [vmem:[%s4812_s5 + $0x18] sm:$0xff]   ;;  %v3115_v49 = vld [vmem:[#allocation2] sm:$0xff]   ;;  %v1174_v55 = vld [vmem:[#allocation2 + $0x8] sm:$0x1]  ;;  %s2798_s23 = sshll.u32 %s4107_s13, 4  ;;  %s4822_s10 = sand.u32 1, %s3646_s25   ;;  %s4745_s23 = int_to_ptr.vmem [resolvable:$true] %s2798_s23 }
 0x16e   : > { %3304 = vmatpush3.bf16.msra.mxu1 %v3494_v31  ;;  %v4126_v53 = vld [vmem:[%s4810_s3] ss:$0 sm:$0xff]  ;;  %v3116_v56 = vunpack.c.l.bf16 %v3115_v49  ;;  %v3117_v25 = vunpack.c.h.bf16 %v3115_v49  ;;  %v4131_v57 = vld [vmem:[%s4810_s3 + $0x1] ss:$0 sm:$0xff]  ;;  %v1183_v58 = vunpack.c.l.bf16 %v1174_v55  ;;  %v4136_v62 = vld [vmem:[%s4810_s3 + $0x2] ss:$0 sm:$0xff] }
 0x16f   : > { %3305 = vmatprep.subr.bf16.mxu1 %v3495_v47  ;;  %v1316_v59 = vld [vmem:[#allocation2] sm:$0xe]  ;;  %v1459_v0 = vld [vmem:[#allocation2 + $0xc] sm:$0xff]   ;;  %v1528_v15 = vld [vmem:[#allocation2 + $0x14] sm:$0x1]  ;;  %s4755_s16 = scalar_lea.sflag [#allocation4], %s4822_s10 }
 0x170   : > { %v1325_v18 = vunpack.c.l.bf16 %v1316_v59  ;;  %v1142_v1 = vmul.f32 %v3116_v56, %v4126_v53  ;;  %v1143_v2 = vmul.f32 %v3117_v25, %v4126_v53  ;;  %v1195_v4 = vmul.f32 %v3116_v56, %v4131_v57  ;;  %v3498_v7 = vld [vmem:[%s4812_s5 + $0x20] sm:$0xff]   ;;  %v1669_v54 = vld [vmem:[#allocation2 + $0xc] sm:$0xe]  ;;  %v3147_v51 = vld [vmem:[#allocation2 + $0x18] sm:$0xff]   ;;  %s3576_s17 = scalar_lea.vmem %s4745_s23, 2048 }
 0x171   : > { %v1196_v19 = vmul.f32 %v3117_v25, %v4131_v57  ;;  %v1197_v8 = vmul.f32 %v4131_v57, %v1183_v58  ;;  %v1338_v10 = vmul.f32 %v3117_v25, %v4136_v62  ;;  %v1339_v11 = vmul.f32 %v4136_v62, %v1183_v58  ;;  %v4152_v14 = vld [vmem:[%s4810_s3 + $0x3] ss:$0 sm:$0xff]  ;;  %v4157_v42 = vld [vmem:[%s4810_s3 + $0x4] ss:$0 sm:$0xff]  ;;  %v4165_v35 = vld [vmem:[%s4810_s3 + $0x5] ss:$0 sm:$0xff]  ;;  %p3577_p1 = scmp.ne.s32.totalorder %s4745_s23, %s3576_s17 }
 0x172   : > { %3306 = vmatpush3.bf16.msra.mxu1 %v3495_v47  ;;  %v1337_v9 = vmul.f32 %v4136_v62, %v1325_v18  ;;  %v1244_v16 = vrot.slane %v1195_v4, 1  ;;  %v1476_v23 = vunpack.c.l.bf16 %v1459_v0  ;;  %v1477_v24 = vunpack.c.h.bf16 %v1459_v0  ;;  %v3499_v22 = vld [vmem:[%s4812_s5 + $0x28] sm:$0xff]   ;;  %v3500_v27 = vld [vmem:[%s4812_s5 + $0x30] sm:$0xff]   ;;  %v4184_v45 = vld [vmem:[%s4810_s3 + $0x6] ss:$0 sm:$0xff] }
 0x173   : > { %3307 = vmatprep.subr.bf16.mxu1 %v3496_v52  ;;  %v1245_v21 = vrot.slane %v1196_v19, 1  ;;  %v1247_v63 = vrot.slane %v1197_v8, 1  ;;  %v1387_v28 = vrot.slane %v1338_v10, 2  ;;  %v1389_v3 = vrot.slane %v1339_v11, 2  ;;  %v1880_v47 = vld [vmem:[#allocation2 + $0x20] sm:$0x1]  ;;  %p3578_p2 = pnand %p3577_p1, %p3770_p3 }
 0x174   : > { %v1386_v26 = vrot.slane %v1337_v9, 2  ;;  %v1496_v5 = vmul.f32 %v4152_v14, %v1476_v23  ;;  %v1497_v30 = vmul.f32 %v4152_v14, %v1477_v24  ;;  %v1537_v32 = vunpack.c.l.bf16 %v1528_v15  ;;  %v2021_v25 = vld [vmem:[#allocation2 + $0x18] sm:$0xe] }
 0x175   : > { %v1246_v29 = vsel %vm1243_vm8, %v1244_v16, %v1245_v21  ;;  %v1248_v48 = vsel %vm1243_vm8, %v1245_v21, %v1247_v63  ;;  %v1390_v34 = vsel %vm1385_vm9, %v1387_v28, %v1389_v3  ;;  %v1549_v61 = vmul.f32 %v4157_v42, %v1476_v23  ;;  %v3501_v8 = vld [vmem:[%s4812_s5 + $0x38] sm:$0xff]   ;;  %v1107_v16 = vld [vmem:[#allocation2 + $0xc] sm:$0xff]   ;;  %p3579_p4 = pneg %p3578_p2 }
 0x176   : > { %3308 = vmatpush3.bf16.msra.mxu1 %v3496_v52  ;;  %v1300_v36 = vadd.f32 %v1246_v29, %v1142_v1  ;;  %v1388_v37 = vsel %vm1385_vm9, %v1386_v26, %v1387_v28  ;;  %v1301_v12 = vadd.f32 %v1248_v48, %v1143_v2  ;;  %v1550_v50 = vmul.f32 %v4157_v42, %v1477_v24  ;;  %v4190_v52 = vld [vmem:[%s4810_s3 + $0x7] ss:$0 sm:$0xff] }
 0x177   : > { %3309 = vmatprep.subr.bf16.mxu1 %v3497_v13  ;;  %v1551_v20 = vmul.f32 %v4157_v42, %v1537_v32  ;;  %v1678_v38 = vunpack.c.l.bf16 %v1669_v54  ;;  %v1691_v39 = vmul.f32 %v4165_v35, %v1477_v24  ;;  %v1692_v6 = vmul.f32 %v4165_v35, %v1537_v32 }
 0x178   : > { %v1442_v17 = vadd.f32 %v1388_v37, %v1300_v36  ;;  %v1443_v33 = vadd.f32 %v1390_v34, %v1301_v12  ;;  %v1597_v41 = vrot.slane %v1549_v61, 1  ;;  %v1598_v43 = vrot.slane %v1550_v50, 1 }
 0x179   : > { %v1600_v44 = vrot.slane %v1551_v20, 1  ;;  %v1690_v40 = vmul.f32 %v4165_v35, %v1678_v38  ;;  %v1739_v60 = vrot.slane %v1691_v39, 2  ;;  %v1741_v31 = vrot.slane %v1692_v6, 2 }
 0x17a   : > { %3310 = vmatpush3.bf16.msra.mxu1 %v3497_v13  ;;  %v1512_v46 = vadd.f32 %v1496_v5, %v1442_v17  ;;  %v1513_v13 = vadd.f32 %v1497_v30, %v1443_v33  ;;  %v1599_v49 = vsel %vm1243_vm8, %v1597_v41, %v1598_v43  ;;  %v4194_v56 = vunpack.c.l.bf16 %v3147_v51  ;;  %v1317_v17 = vld [vmem:[#allocation2 + $0xc] sm:$0xe] }
 0x17b   : > { %3311 = vmatprep.subr.bf16.mxu1 %v3498_v7  ;;  %v1601_v55 = vsel %vm1243_vm8, %v1598_v43, %v1600_v44  ;;  %v1738_v59 = vrot.slane %v1690_v40, 2  ;;  %v1742_v18 = vsel %vm1385_vm9, %v1739_v60, %v1741_v31  ;;  %v4197_v0 = vunpack.c.h.bf16 %v3147_v51  ;;  %v4229_v51 = vld [vmem:[%s4811_s4] ss:$0 sm:$0xff] }
 0x17c   : > { %v1653_v58 = vadd.f32 %v1599_v49, %v1512_v46  ;;  %v1654_v1 = vadd.f32 %v1601_v55, %v1513_v13  ;;  %v1848_v2 = vmul.f32 %v4194_v56, %v4184_v45  ;;  %v1889_v4 = vunpack.c.l.bf16 %v1880_v47 }
 0x17d   : > { %v1901_v19 = vmul.f32 %v4194_v56, %v4190_v52  ;;  %v1740_v9 = vsel %vm1385_vm9, %v1738_v59, %v1739_v60  ;;  %v1849_v10 = vmul.f32 %v4197_v0, %v4184_v45  ;;  %v1902_v11 = vmul.f32 %v4197_v0, %v4190_v52 }
 0x17e   : > { %3312 = vmatpush3.bf16.msra.mxu1 %v3498_v7  ;;  %v4206_v7 = vld [vmem:[%s4810_s3 + $0x8] ss:$0 sm:$0xff]  ;;  %v2030_v15 = vunpack.c.l.bf16 %v2021_v25  ;;  %v1794_v21 = vadd.f32 %v1740_v9, %v1653_v58  ;;  %v1795_v23 = vadd.f32 %v1742_v18, %v1654_v1  ;;  %v1903_v24 = vmul.f32 %v4190_v52, %v1889_v4 }
 0x17f   : > { %3313 = vmatprep.subr.bf16.mxu1 %v3499_v22  ;;  %v1949_v63 = vrot.slane %v1901_v19, 1  ;;  %v1950_v26 = vrot.slane %v1902_v11, 1  ;;  %v2043_v3 = vmul.f32 %v4197_v0, %v4206_v7  ;;  %v2044_v29 = vmul.f32 %v4206_v7, %v1889_v4 }
 0x180   : > { %v2042_v28 = vmul.f32 %v4206_v7, %v2030_v15  ;;  %v1864_v5 = vadd.f32 %v1848_v2, %v1794_v21  ;;  %v1865_v30 = vadd.f32 %v1849_v10, %v1795_v23  ;;  %v1952_v32 = vrot.slane %v1903_v24, 1 }
 0x181   : > { %v1124_v54 = vunpack.c.l.bf16 %v1107_v16  ;;  %v1951_v48 = vsel %vm1243_vm8, %v1949_v63, %v1950_v26  ;;  %v2091_v37 = vrot.slane %v2043_v3, 2  ;;  %v2093_v34 = vrot.slane %v2044_v29, 2  ;;  %v1670_v29 = vld [vmem:[#allocation2 + $0x18] sm:$0xe] }
 0x182   : > { %3314 = vmatpush3.bf16.msra.mxu1 %v3499_v22  ;;  %v1175_v22 = vld [vmem:[#allocation2 + $0x14] sm:$0x1]  ;;  %v2090_v36 = vrot.slane %v2042_v28, 2  ;;  %v1953_v12 = vsel %vm1243_vm8, %v1950_v26, %v1952_v32  ;;  %v2005_v61 = vadd.f32 %v1951_v48, %v1864_v5  ;;  %v1125_v50 = vunpack.c.h.bf16 %v1107_v16 }
 0x183   : > { %3315 = vmatprep.subr.bf16.mxu1 %v3500_v27  ;;  %v1144_v20 = vmul.f32 %v4126_v53, %v1124_v54  ;;  %v2006_v38 = vadd.f32 %v1953_v12, %v1865_v30  ;;  %v2094_v6 = vsel %vm1385_vm9, %v2091_v37, %v2093_v34  ;;  %v1198_v43 = vmul.f32 %v4131_v57, %v1124_v54 }
 0x184   : > { %v2092_v39 = vsel %vm1385_vm9, %v2090_v36, %v2091_v37  ;;  %v1145_v41 = vmul.f32 %v4126_v53, %v1125_v50  ;;  %v1199_v44 = vmul.f32 %v4131_v57, %v1125_v50  ;;  %v1326_v60 = vunpack.c.l.bf16 %v1317_v17 }
 0x185   : > { %v2146_v33 = vadd.f32 %v2092_v39, %v2005_v61  ;;  %v2147_v46 = vadd.f32 %v2094_v6, %v2006_v38  ;;  %v1341_v31 = vmul.f32 %v4136_v62, %v1125_v50  ;;  %v1249_v13 = vrot.slane %v1198_v43, 1  ;;  %v1881_v43 = vld [vmem:[#allocation2 + $0x2c] sm:$0x1] }
 0x186   : > { %3316 = vmatpush3.bf16.msra.mxu1 %v3500_v27  ;;  %v1184_v27 = vunpack.c.l.bf16 %v1175_v22  ;;  %v1250_v49 = vrot.slane %v1199_v44, 1  ;;  %v1340_v59 = vmul.f32 %v4136_v62, %v1326_v60  ;;  %v1498_v26 = vmul.f32 %v4194_v56, %v4152_v14  ;;  %v2022_v60 = vld [vmem:[#allocation2 + $0x24] sm:$0xe] }
 0x187   : > { %3317 = vmatprep.subr.bf16.mxu1 %v3501_v8  ;;  %v2169_v47 = vadd.f32 %v4229_v51, %v2146_v33  ;;  %v2170_v25 = vadd.f32 %v4229_v51, %v2147_v46  ;;  %v1392_v18 = vrot.slane %v1341_v31, 2  ;;  %v1499_v28 = vmul.f32 %v4197_v0, %v4152_v14 }
 0x188   : > { %v1200_v40 = vmul.f32 %v4131_v57, %v1184_v27  ;;  %v1342_v55 = vmul.f32 %v4136_v62, %v1184_v27  ;;  %v1251_v4 = vsel %vm1243_vm8, %v1249_v13, %v1250_v49  ;;  %v1391_v23 = vrot.slane %v1340_v59, 2 }
 0x189   : > { %v2185_v1 = vmul.f32 %v2169_v47, %v2169_v47  ;;  %v4240_v2 = vmul.f32 0.5, %v2169_v47  ;;  %v2186_v9 = vmul.f32 %v2170_v25, %v2170_v25  ;;  %v4243_v10 = vmul.f32 0.5, %v2170_v25 }
 0x18a   : > { %3318 = vmatpush3.bf16.msra.mxu1 %v3501_v8  ;;  %v1252_v58 = vrot.slane %v1200_v40, 1  ;;  %v1394_v19 = vrot.slane %v1342_v55, 2  ;;  %v1529_v8 = vld [vmem:[#allocation2 + $0x20] sm:$0x1]  ;;  %v1302_v15 = vadd.f32 %v1251_v4, %v1144_v20  ;;  %v1393_v30 = vsel %vm1385_vm9, %v1391_v23, %v1392_v18  ;;  %v1813_v20 = vld [vmem:[#allocation2 + $0x24] sm:$0xff]  }
 0x18b   : > { %v2201_v16 = vmul.f32 0.035677407, %v2185_v1  ;;  %v2202_v63 = vmul.f32 0.035677407, %v2186_v9  ;;  %v1538_v3 = vunpack.c.l.bf16 %v1529_v8  ;;  %v1552_v54 = vmul.f32 %v4194_v56, %v4157_v42 }
 0x18c   : > { %v1253_v11 = vsel %vm1243_vm8, %v1250_v49, %v1252_v58  ;;  %v1395_v24 = vsel %vm1385_vm9, %v1392_v18, %v1394_v19  ;;  %v1444_v48 = vadd.f32 %v1393_v30, %v1302_v15  ;;  %v1553_v36 = vmul.f32 %v4197_v0, %v4157_v42 }
 0x18d   : > { %v1303_v21 = vadd.f32 %v1253_v11, %v1145_v41  ;;  %v2217_v5 = vadd.f32 0.7978846, %v2201_v16  ;;  %v2218_v22 = vadd.f32 0.7978846, %v2202_v63  ;;  %v1554_v37 = vmul.f32 %v4157_v42, %v1538_v3  ;;  %v1176_v63 = vld [vmem:[#allocation2 + $0x20] sm:$0x1] }
 0x18e   : > { %v1602_v61 = vrot.slane %v1552_v54, 1  ;;  %v1679_v50 = vunpack.c.l.bf16 %v1670_v29  ;;  %v1514_v38 = vadd.f32 %v1498_v26, %v1444_v48  ;;  %v1603_v39 = vrot.slane %v1553_v36, 1 }
 0x18f   : > { %v1445_v32 = vadd.f32 %v1395_v24, %v1303_v21  ;;  %v2233_v34 = vmul.f32 %v2217_v5, %v2169_v47  ;;  %v2234_v17 = vmul.f32 %v2218_v22, %v2170_v25  ;;  %v1605_v6 = vrot.slane %v1554_v37, 1 }
 0x190   : > { %v1693_v27 = vmul.f32 %v4165_v35, %v1679_v50  ;;  %v1694_v33 = vmul.f32 %v4197_v0, %v4165_v35  ;;  %v1695_v41 = vmul.f32 %v4165_v35, %v1538_v3  ;;  %v1604_v44 = vsel %vm1243_vm8, %v1602_v61, %v1603_v39 }
 0x191   : > { %v1515_v12 = vadd.f32 %v1499_v28, %v1445_v32  ;;  %3502 = vtanh.f32 %v2233_v34  ;;  %v1606_v46 = vsel %vm1243_vm8, %v1603_v39, %v1605_v6  ;;  %v1830_v40 = vunpack.c.l.bf16 %v1813_v20 }
 0x192   : > { %3504 = vtanh.f32 %v2234_v17  ;;  %v1655_v31 = vadd.f32 %v1604_v44, %v1514_v38  ;;  %v1743_v13 = vrot.slane %v1693_v27, 2  ;;  %v1744_v49 = vrot.slane %v1694_v33, 2  ;;  %v1318_v17 = vld [vmem:[#allocation2 + $0x18] sm:$0xe] }
 0x193   : > { %v1656_v47 = vadd.f32 %v1606_v46, %v1515_v12  ;;  %v1746_v55 = vrot.slane %v1695_v41, 2  ;;  %v1831_v25 = vunpack.c.h.bf16 %v1813_v20  ;;  %v1850_v58 = vmul.f32 %v4184_v45, %v1830_v40 }
 0x194   : > { %v1890_v59 = vunpack.c.l.bf16 %v1881_v43  ;;  %v1745_v18 = vsel %vm1385_vm9, %v1743_v13, %v1744_v49  ;;  %v1904_v1 = vmul.f32 %v4190_v52, %v1830_v40  ;;  %v2031_v4 = vunpack.c.l.bf16 %v2022_v60 }
 0x195   : > { %v1146_v19 = vmul.f32 %v4194_v56, %v4126_v53  ;;  %v1747_v8 = vsel %vm1385_vm9, %v1744_v49, %v1746_v55  ;;  %v1796_v9 = vadd.f32 %v1745_v18, %v1655_v31  ;;  %v1851_v11 = vmul.f32 %v4184_v45, %v1831_v25 }
 0x196   : > { %v1905_v15 = vmul.f32 %v4190_v52, %v1831_v25  ;;  %v1797_v16 = vadd.f32 %v1747_v8, %v1656_v47  ;;  %v1906_v21 = vmul.f32 %v4190_v52, %v1890_v59  ;;  %v1954_v23 = vrot.slane %v1904_v1, 1  ;;  %v1463_v8 = vld [vmem:[#allocation2 + $0x24] sm:$0xff]  }
 0x197   : > { %v2045_v24 = vmul.f32 %v4206_v7, %v2031_v4  ;;  %v1866_v26 = vadd.f32 %v1850_v58, %v1796_v9  ;;  %v2046_v3 = vmul.f32 %v4206_v7, %v1831_v25  ;;  %v2047_v29 = vmul.f32 %v4206_v7, %v1890_v59  ;;  %v1530_v9 = vld [vmem:[#allocation2 + $0x2c] sm:$0x1] }
 0x198   : > { %v1955_v28 = vrot.slane %v1905_v15, 1  ;;  %v1867_v5 = vadd.f32 %v1851_v11, %v1797_v16  ;;  %v1957_v30 = vrot.slane %v1906_v21, 1  ;;  %v1147_v54 = vmul.f32 %v4197_v0, %v4126_v53  ;;  %v1671_v21 = vld [vmem:[#allocation2 + $0x24] sm:$0xe] }
 0x199   : > { %v2095_v32 = vrot.slane %v2045_v24, 2  ;;  %v2096_v48 = vrot.slane %v2046_v3, 2  ;;  %v2098_v36 = vrot.slane %v2047_v29, 2  ;;  %v1185_v37 = vunpack.c.l.bf16 %v1176_v63 }
 0x19a   : > { %v1956_v22 = vsel %vm1243_vm8, %v1954_v23, %v1955_v28  ;;  %v1958_v12 = vsel %vm1243_vm8, %v1955_v28, %v1957_v30  ;;  %v1201_v50 = vmul.f32 %v4194_v56, %v4131_v57  ;;  %v1202_v20 = vmul.f32 %v4197_v0, %v4131_v57 }
 0x19b   : > { %v3503_v34 = vpop.eup %3502  ;;  %v2007_v61 = vadd.f32 %v1956_v22, %v1866_v26  ;;  %v2008_v6 = vadd.f32 %v1958_v12, %v1867_v5  ;;  %v2097_v27 = vsel %vm1385_vm9, %v2095_v32, %v2096_v48  ;;  %v2099_v33 = vsel %vm1385_vm9, %v2096_v48, %v2098_v36 }
 0x19c   : > { %v3505_v38 = vpop.eup %3504  ;;  %v2281_v39 = vadd.f32 1.0, %v3503_v34  ;;  %v1203_v44 = vmul.f32 %v4131_v57, %v1185_v37  ;;  %v1254_v46 = vrot.slane %v1201_v50, 1  ;;  %v1255_v56 = vrot.slane %v1202_v20, 1 }
 0x19d   : > { %v2282_v41 = vadd.f32 1.0, %v3505_v38  ;;  %v2148_v43 = vadd.f32 %v2097_v27, %v2007_v61  ;;  %v2149_v60 = vadd.f32 %v2099_v33, %v2008_v6  ;;  %v1327_v31 = vunpack.c.l.bf16 %v1318_v17  ;;  %v3199_v6 = vld [vmem:[#allocation2 + $0x30] sm:$0xff]  }
 0x19e   : > { %v2297_v40 = vmul.f32 %v2281_v39, %v4240_v2  ;;  %v1257_v49 = vrot.slane %v1203_v44, 1  ;;  %v1344_v55 = vmul.f32 %v4197_v0, %v4136_v62  ;;  %v1256_v58 = vsel %vm1243_vm8, %v1254_v46, %v1255_v56 }
 0x19f   : > { %v2298_v47 = vmul.f32 %v2282_v41, %v4243_v10  ;;  %v2171_v13 = vadd.f32 %v4229_v51, %v2148_v43  ;;  %v2172_v25 = vadd.f32 %v4229_v51, %v2149_v60  ;;  %v1343_v59 = vmul.f32 %v4136_v62, %v1327_v31 }
 0x1a0   : > { %v1345_v18 = vmul.f32 %v4136_v62, %v1185_v37  ;;  %v1258_v10 = vsel %vm1243_vm8, %v1255_v56, %v1257_v49  ;;  %v1304_v0 = vadd.f32 %v1256_v58, %v1146_v19  ;;  %v1397_v63 = vrot.slane %v1344_v55, 2  ;;  %v2023_v58 = vld [vmem:[#allocation2 + $0x30] sm:$0xe] }
 0x1a1   : > { %v2313_v2 = vpack.c.bf16 %v2298_v47, %v2297_v40  ;;  %v2187_v1 = vmul.f32 %v2171_v13, %v2171_v13  ;;  %v4295_v4 = vmul.f32 0.5, %v2171_v13  ;;  %v2188_v11 = vmul.f32 %v2172_v25, %v2172_v25  ;;  %v1882_v40 = vld [vmem:[#allocation2 + $0x38] sm:$0x1] }
 0x1a2   : > { %v4298_v15 = vmul.f32 0.5, %v2172_v25  ;;  %v1305_v16 = vadd.f32 %v1258_v10, %v1147_v54  ;;  %v1396_v24 = vrot.slane %v1343_v59, 2  ;;  %v1399_v26 = vrot.slane %v1345_v18, 2 }
 0x1a3   : > { %3319 = vmatprep.mubr.bf16.mxu1 %v2313_v2  ;;  %v2203_v23 = vmul.f32 0.035677407, %v2187_v1  ;;  %v2204_v28 = vmul.f32 0.035677407, %v2188_v11  ;;  %v1480_v3 = vunpack.c.l.bf16 %v1463_v8  ;;  %v1481_v29 = vunpack.c.h.bf16 %v1463_v8 }
 0x1a4   : > { %v1539_v5 = vunpack.c.l.bf16 %v1530_v9  ;;  %v1398_v32 = vsel %vm1385_vm9, %v1396_v24, %v1397_v63  ;;  %v1400_v22 = vsel %vm1385_vm9, %v1397_v63, %v1399_v26  ;;  %v1680_v48 = vunpack.c.l.bf16 %v1671_v21  ;;  %v1111_v24 = vld [vmem:[#allocation2 + $0x24] sm:$0xff]  }
 0x1a5   : > { %v2219_v30 = vadd.f32 0.7978846, %v2203_v23  ;;  %v2220_v36 = vadd.f32 0.7978846, %v2204_v28  ;;  %v1446_v37 = vadd.f32 %v1398_v32, %v1304_v0  ;;  %v1447_v19 = vadd.f32 %v1400_v22, %v1305_v16 }
 0x1a6   : > { %v1500_v54 = vmul.f32 %v4152_v14, %v1480_v3  ;;  %v1501_v12 = vmul.f32 %v4152_v14, %v1481_v29  ;;  %v1555_v61 = vmul.f32 %v4157_v42, %v1480_v3  ;;  %v1556_v50 = vmul.f32 %v4157_v42, %v1481_v29 }
 0x1a7   : > { %v2235_v34 = vmul.f32 %v2219_v30, %v2171_v13  ;;  %v2236_v20 = vmul.f32 %v2220_v36, %v2172_v25  ;;  %v1557_v38 = vmul.f32 %v4157_v42, %v1539_v5  ;;  %v1696_v39 = vmul.f32 %v4165_v35, %v1680_v48 }
 0x1a8   : > { %v1516_v17 = vadd.f32 %v1500_v54, %v1446_v37  ;;  %v1517_v27 = vadd.f32 %v1501_v12, %v1447_v19  ;;  %v1607_v33 = vrot.slane %v1555_v61, 1  ;;  %v1608_v41 = vrot.slane %v1556_v50, 1  ;;  %v1177_v19 = vld [vmem:[#allocation2 + $0x2c] sm:$0x1] }
 0x1a9   : > { %3506 = vtanh.f32 %v2235_v34  ;;  %v1610_v43 = vrot.slane %v1557_v38, 1  ;;  %v1697_v44 = vmul.f32 %v4165_v35, %v1481_v29  ;;  %v1698_v46 = vmul.f32 %v4165_v35, %v1539_v5 }
 0x1aa   : > { %3508 = vtanh.f32 %v2236_v20  ;;  %v1609_v60 = vsel %vm1243_vm8, %v1607_v33, %v1608_v41  ;;  %v1748_v56 = vrot.slane %v1696_v39, 2  ;;  %v4311_v31 = vunpack.c.l.bf16 %v3199_v6 }
 0x1ab   : > { %v4313_v47 = vunpack.c.h.bf16 %v3199_v6  ;;  %v1611_v13 = vsel %vm1243_vm8, %v1608_v41, %v1610_v43  ;;  %v1657_v49 = vadd.f32 %v1609_v60, %v1516_v17  ;;  %v1749_v55 = vrot.slane %v1697_v44, 2 }
 0x1ac   : > { %v1751_v25 = vrot.slane %v1698_v46, 2  ;;  %v1658_v59 = vadd.f32 %v1611_v13, %v1517_v27  ;;  %v1852_v18 = vmul.f32 %v4311_v31, %v4184_v45  ;;  %v1891_v1 = vunpack.c.l.bf16 %v1882_v40  ;;  %v1319_v27 = vld [vmem:[#allocation2 + $0x24] sm:$0xe] }
 0x1ad   : > { %v1853_v2 = vmul.f32 %v4313_v47, %v4184_v45  ;;  %v1750_v10 = vsel %vm1385_vm9, %v1748_v56, %v1749_v55  ;;  %v1907_v9 = vmul.f32 %v4311_v31, %v4190_v52  ;;  %v1908_v11 = vmul.f32 %v4313_v47, %v4190_v52 }
 0x1ae   : > { %v1752_v8 = vsel %vm1385_vm9, %v1749_v55, %v1751_v25  ;;  %v1798_v0 = vadd.f32 %v1750_v10, %v1657_v49  ;;  %v1909_v21 = vmul.f32 %v4190_v52, %v1891_v1  ;;  %v2032_v23 = vunpack.c.l.bf16 %v2023_v58 }
 0x1af   : > { %v1799_v16 = vadd.f32 %v1752_v8, %v1658_v59  ;;  %v1959_v63 = vrot.slane %v1907_v9, 1  ;;  %v1960_v26 = vrot.slane %v1908_v11, 1  ;;  %v2049_v28 = vmul.f32 %v4313_v47, %v4206_v7 }
 0x1b0   : > { %v2050_v3 = vmul.f32 %v4206_v7, %v1891_v1  ;;  %v1868_v29 = vadd.f32 %v1852_v18, %v1798_v0  ;;  %v1962_v30 = vrot.slane %v1909_v21, 1  ;;  %v2048_v32 = vmul.f32 %v4206_v7, %v2032_v23 }
 0x1b1   : > { %v1869_v5 = vadd.f32 %v1853_v2, %v1799_v16  ;;  %v1961_v22 = vsel %vm1243_vm8, %v1959_v63, %v1960_v26  ;;  %v2101_v48 = vrot.slane %v2049_v28, 2  ;;  %v1128_v37 = vunpack.c.l.bf16 %v1111_v24  ;;  %v1531_v63 = vld [vmem:[#allocation2 + $0x38] sm:$0x1] }
 0x1b2   : > { %v2103_v36 = vrot.slane %v2050_v3, 2  ;;  %v1963_v34 = vsel %vm1243_vm8, %v1960_v26, %v1962_v30  ;;  %v2009_v12 = vadd.f32 %v1961_v22, %v1868_v29  ;;  %v2100_v61 = vrot.slane %v2048_v32, 2 }
 0x1b3   : > { %v3507_v54 = vpop.eup %3506  ;;  %v1129_v50 = vunpack.c.h.bf16 %v1111_v24  ;;  %v2010_v38 = vadd.f32 %v1963_v34, %v1869_v5  ;;  %v1148_v6 = vmul.f32 %v4126_v53, %v1128_v37  ;;  %v1186_v44 = vunpack.c.l.bf16 %v1177_v19  ;;  %v1672_v5 = vld [vmem:[#allocation2 + $0x30] sm:$0xe] }
 0x1b4   : > { %v3509_v20 = vpop.eup %3508  ;;  %v2283_v17 = vadd.f32 1.0, %v3507_v54  ;;  %v2104_v39 = vsel %vm1385_vm9, %v2101_v48, %v2103_v36  ;;  %v2102_v41 = vsel %vm1385_vm9, %v2100_v61, %v2101_v48  ;;  %v1204_v56 = vmul.f32 %v4131_v57, %v1128_v37 }
 0x1b5   : > { %v2284_v33 = vadd.f32 1.0, %v3509_v20  ;;  %v1149_v43 = vmul.f32 %v4126_v53, %v1129_v50  ;;  %v2150_v40 = vadd.f32 %v2102_v41, %v2009_v12  ;;  %v2151_v60 = vadd.f32 %v2104_v39, %v2010_v38 }
 0x1b6   : > { %v2299_v46 = vmul.f32 %v2283_v17, %v4295_v4  ;;  %v1205_v49 = vmul.f32 %v4131_v57, %v1129_v50  ;;  %v1206_v55 = vmul.f32 %v4131_v57, %v1186_v44  ;;  %v1328_v25 = vunpack.c.l.bf16 %v1319_v27 }
 0x1b7   : > { %v2300_v13 = vmul.f32 %v2284_v33, %v4298_v15  ;;  %v2173_v58 = vadd.f32 %v4229_v51, %v2150_v40  ;;  %v2174_v59 = vadd.f32 %v4229_v51, %v2151_v60  ;;  %v1259_v18 = vrot.slane %v1204_v56, 1  ;;  %v1883_v60 = vld [vmem:[#allocation2 + $0x44] sm:$0x1] }
 0x1b8   : > { %v1347_v2 = vmul.f32 %v4136_v62, %v1129_v50  ;;  %v1260_v4 = vrot.slane %v1205_v49, 1  ;;  %v1262_v10 = vrot.slane %v1206_v55, 1  ;;  %v1346_v8 = vmul.f32 %v4136_v62, %v1328_v25 }
 0x1b9   : > { %v2314_v1 = vpack.c.bf16 %v2300_v13, %v2299_v46  ;;  %v2189_v9 = vmul.f32 %v2173_v58, %v2173_v58  ;;  %v2190_v11 = vmul.f32 %v2174_v59, %v2174_v59  ;;  %v4346_v15 = vmul.f32 0.5, %v2173_v58 }
 0x1ba   : > { %v4348_v0 = vmul.f32 0.5, %v2174_v59  ;;  %v1261_v16 = vsel %vm1243_vm8, %v1259_v18, %v1260_v4  ;;  %v1263_v21 = vsel %vm1243_vm8, %v1260_v4, %v1262_v10  ;;  %v1348_v23 = vmul.f32 %v4136_v62, %v1186_v44  ;;  %v2024_v10 = vld [vmem:[#allocation2 + $0x3c] sm:$0xe] }
 0x1bb   : > { %3320 = vmatmul.mubr.bf16.vlgmr.msra.gmra.mrb[20].mxu1 %v2314_v1  ;;  %v1401_v24 = vrot.slane %v1346_v8, 2  ;;  %v2205_v26 = vmul.f32 0.035677407, %v2189_v9  ;;  %v2206_v28 = vmul.f32 0.035677407, %v2190_v11  ;;  %v1306_v3 = vadd.f32 %v1261_v16, %v1148_v6 }
 0x1bc   : > { %v1307_v29 = vadd.f32 %v1263_v21, %v1149_v43  ;;  %v1402_v30 = vrot.slane %v1347_v2, 2  ;;  %v1404_v32 = vrot.slane %v1348_v23, 2  ;;  %v1502_v22 = vmul.f32 %v4311_v31, %v4152_v14  ;;  %v1817_v43 = vld [vmem:[#allocation2 + $0x3c] sm:$0xff]  }
 0x1bd   : > { %v1503_v48 = vmul.f32 %v4313_v47, %v4152_v14  ;;  %v2221_v36 = vadd.f32 0.7978846, %v2205_v26  ;;  %v2222_v37 = vadd.f32 0.7978846, %v2206_v28  ;;  %v1540_v19 = vunpack.c.l.bf16 %v1531_v63 }
 0x1be   : > { %v1558_v54 = vmul.f32 %v4311_v31, %v4157_v42  ;;  %v1403_v34 = vsel %vm1385_vm9, %v1401_v24, %v1402_v30  ;;  %v1405_v12 = vsel %vm1385_vm9, %v1402_v30, %v1404_v32  ;;  %v1559_v61 = vmul.f32 %v4313_v47, %v4157_v42 }
 0x1bf   : > { %v1681_v50 = vunpack.c.l.bf16 %v1672_v5  ;;  %v2237_v20 = vmul.f32 %v2221_v36, %v2173_v58  ;;  %v2238_v17 = vmul.f32 %v2222_v37, %v2174_v59  ;;  %v1448_v38 = vadd.f32 %v1403_v34, %v1306_v3 }
 0x1c0   : > { %v1449_v39 = vadd.f32 %v1405_v12, %v1307_v29  ;;  %v1560_v6 = vmul.f32 %v4157_v42, %v1540_v19  ;;  %v1612_v27 = vrot.slane %v1558_v54, 1  ;;  %v1613_v33 = vrot.slane %v1559_v61, 1 }
 0x1c1   : > { %v1699_v41 = vmul.f32 %v4165_v35, %v1681_v50  ;;  %3510 = vtanh.f32 %v2237_v20  ;;  %v1518_v44 = vadd.f32 %v1502_v22, %v1448_v38  ;;  %v1700_v40 = vmul.f32 %v4313_v47, %v4165_v35 }
 0x1c2   : > { %v1519_v46 = vadd.f32 %v1503_v48, %v1449_v39  ;;  %3512 = vtanh.f32 %v2238_v17  ;;  %v1614_v56 = vsel %vm1243_vm8, %v1612_v27, %v1613_v33  ;;  %v1615_v13 = vrot.slane %v1560_v6, 1  ;;  %v1178_v48 = vld [vmem:[#allocation2 + $0x38] sm:$0x1] }
 0x1c3   : > { %v1701_v49 = vmul.f32 %v4165_v35, %v1540_v19  ;;  %v1659_v55 = vadd.f32 %v1614_v56, %v1518_v44  ;;  %v1753_v25 = vrot.slane %v1699_v41, 2  ;;  %v1754_v58 = vrot.slane %v1700_v40, 2 }
 0x1c4   : > { %v1834_v59 = vunpack.c.l.bf16 %v1817_v43  ;;  %v1616_v18 = vsel %vm1243_vm8, %v1613_v33, %v1615_v13  ;;  %v1835_v1 = vunpack.c.h.bf16 %v1817_v43  ;;  %v1892_v4 = vunpack.c.l.bf16 %v1883_v60 }
 0x1c5   : > { %v1756_v2 = vrot.slane %v1701_v49, 2  ;;  %v1660_v8 = vadd.f32 %v1616_v18, %v1519_v46  ;;  %v1755_v9 = vsel %vm1385_vm9, %v1753_v25, %v1754_v58  ;;  %v2033_v29 = vunpack.c.l.bf16 %v2024_v10  ;;  %v1320_v46 = vld [vmem:[#allocation2 + $0x30] sm:$0xe] }
 0x1c6   : > { %v1854_v11 = vmul.f32 %v4184_v45, %v1834_v59  ;;  %v1910_v16 = vmul.f32 %v4190_v52, %v1834_v59  ;;  %v1800_v23 = vadd.f32 %v1755_v9, %v1659_v55  ;;  %v1855_v24 = vmul.f32 %v4184_v45, %v1835_v1 }
 0x1c7   : > { %v1757_v21 = vsel %vm1385_vm9, %v1754_v58, %v1756_v2  ;;  %v1911_v63 = vmul.f32 %v4190_v52, %v1835_v1  ;;  %v1912_v28 = vmul.f32 %v4190_v52, %v1892_v4  ;;  %v2052_v32 = vmul.f32 %v4206_v7, %v1835_v1 }
 0x1c8   : > { %v1801_v26 = vadd.f32 %v1757_v21, %v1660_v8  ;;  %v1964_v3 = vrot.slane %v1910_v16, 1  ;;  %v1870_v5 = vadd.f32 %v1854_v11, %v1800_v23  ;;  %v2053_v22 = vmul.f32 %v4206_v7, %v1892_v4 }
 0x1c9   : > { %v1965_v30 = vrot.slane %v1911_v63, 1  ;;  %v1967_v37 = vrot.slane %v1912_v28, 1  ;;  %v2051_v19 = vmul.f32 %v4206_v7, %v2033_v29  ;;  %v1150_v54 = vmul.f32 %v4311_v31, %v4126_v53  ;;  %v1673_v63 = vld [vmem:[#allocation2 + $0x3c] sm:$0xe] }
 0x1ca   : > { %v1871_v36 = vadd.f32 %v1855_v24, %v1801_v26  ;;  %v2106_v12 = vrot.slane %v2052_v32, 2  ;;  %v2108_v61 = vrot.slane %v2053_v22, 2  ;;  %v1151_v50 = vmul.f32 %v4313_v47, %v4126_v53  ;;  %v1532_v24 = vld [vmem:[#allocation2 + $0x44] sm:$0x1] }
 0x1cb   : > { %v1966_v34 = vsel %vm1243_vm8, %v1964_v3, %v1965_v30  ;;  %v3511_v20 = vpop.eup %3510  ;;  %v1968_v17 = vsel %vm1243_vm8, %v1965_v30, %v1967_v37  ;;  %v2105_v39 = vrot.slane %v2051_v19, 2  ;;  %v1187_v6 = vunpack.c.l.bf16 %v1178_v48 }
 0x1cc   : > { %v2011_v38 = vadd.f32 %v1966_v34, %v1870_v5  ;;  %v3513_v27 = vpop.eup %3512  ;;  %v2285_v33 = vadd.f32 1.0, %v3511_v20  ;;  %v2012_v41 = vadd.f32 %v1968_v17, %v1871_v36  ;;  %v2109_v43 = vsel %vm1385_vm9, %v2106_v12, %v2108_v61 }
 0x1cd   : > { %v1207_v44 = vmul.f32 %v4311_v31, %v4131_v57  ;;  %v2286_v40 = vadd.f32 1.0, %v3513_v27  ;;  %v2107_v60 = vsel %vm1385_vm9, %v2105_v39, %v2106_v12  ;;  %v1208_v53 = vmul.f32 %v4313_v47, %v4131_v57  ;;  %v3200_v27 = vld [vmem:[#allocation2 + $0x48] sm:$0xff]  }
 0x1ce   : > { %v1209_v56 = vmul.f32 %v4131_v57, %v1187_v6  ;;  %v2301_v13 = vmul.f32 %v2285_v33, %v4346_v15  ;;  %v2152_v49 = vadd.f32 %v2107_v60, %v2011_v38  ;;  %v2153_v55 = vadd.f32 %v2109_v43, %v2012_v41 }
 0x1cf   : > { %v1264_v25 = vrot.slane %v1207_v44, 1  ;;  %v2302_v58 = vmul.f32 %v2286_v40, %v4348_v0  ;;  %v1265_v59 = vrot.slane %v1208_v53, 1  ;;  %v1329_v2 = vunpack.c.l.bf16 %v1320_v46  ;;  %v1467_v0 = vld [vmem:[#allocation2 + $0x3c] sm:$0xff]  }
 0x1d0   : > { %v1267_v18 = vrot.slane %v1209_v56, 1  ;;  %v2175_v31 = vadd.f32 %v4229_v51, %v2152_v49  ;;  %v2176_v1 = vadd.f32 %v4229_v51, %v2153_v55  ;;  %v1350_v4 = vmul.f32 %v4313_v47, %v4136_v62 }
 0x1d1   : > { %v1351_v10 = vmul.f32 %v4136_v62, %v1187_v6  ;;  %v2315_v57 = vpack.c.bf16 %v2302_v58, %v2301_v13  ;;  %v1266_v15 = vsel %vm1243_vm8, %v1264_v25, %v1265_v59  ;;  %v1349_v9 = vmul.f32 %v4136_v62, %v1329_v2  ;;  %v1884_v13 = vld [vmem:[#allocation2 + $0x50] sm:$0x1]  ;;  %v2025_v58 = vld [vmem:[#allocation2 + $0x48] sm:$0xe] }
 0x1d2   : > { %v1268_v8 = vsel %vm1243_vm8, %v1265_v59, %v1267_v18  ;;  %v2191_v11 = vmul.f32 %v2175_v31, %v2175_v31  ;;  %v2192_v16 = vmul.f32 %v2176_v1, %v2176_v1  ;;  %v4403_v21 = vmul.f32 0.5, %v2175_v31 }
 0x1d3   : > { %v4405_v23 = vmul.f32 0.5, %v2176_v1  ;;  %3323 = vmatprep.mubr.bf16.mxu1 %v2315_v57  ;;  %v1308_v47 = vadd.f32 %v1266_v15, %v1150_v54  ;;  %v1309_v26 = vadd.f32 %v1268_v8, %v1151_v50  ;;  %v1406_v28 = vrot.slane %v1349_v9, 2 }
 0x1d4   : > { %v1407_v3 = vrot.slane %v1350_v4, 2  ;;  %v2207_v29 = vmul.f32 0.035677407, %v2191_v11  ;;  %v2208_v5 = vmul.f32 0.035677407, %v2192_v16  ;;  %v1409_v30 = vrot.slane %v1351_v10, 2 }
 0x1d5   : > { %v1484_v32 = vunpack.c.l.bf16 %v1467_v0  ;;  %v1485_v22 = vunpack.c.h.bf16 %v1467_v0  ;;  %v1541_v48 = vunpack.c.l.bf16 %v1532_v24  ;;  %v1682_v36 = vunpack.c.l.bf16 %v1673_v63  ;;  %v1115_v0 = vld [vmem:[#allocation2 + $0x3c] sm:$0xff]  }
 0x1d6   : > { %v1408_v62 = vsel %vm1385_vm9, %v1406_v28, %v1407_v3  ;;  %v2223_v37 = vadd.f32 0.7978846, %v2207_v29  ;;  %v2224_v19 = vadd.f32 0.7978846, %v2208_v5  ;;  %v1410_v34 = vsel %vm1385_vm9, %v1407_v3, %v1409_v30  ;;  %v1179_v3 = vld [vmem:[#allocation2 + $0x44] sm:$0x1] }
 0x1d7   : > { %v1450_v12 = vadd.f32 %v1408_v62, %v1308_v47  ;;  %v1451_v61 = vadd.f32 %v1410_v34, %v1309_v26  ;;  %v1504_v54 = vmul.f32 %v4152_v14, %v1484_v32  ;;  %v1505_v50 = vmul.f32 %v4152_v14, %v1485_v22  ;;  %v4443_v34 = vld [vmem:[%s4810_s3] ss:$0 sm:$0xff] }
 0x1d8   : > { %v1561_v20 = vmul.f32 %v4157_v42, %v1484_v32  ;;  %v2239_v17 = vmul.f32 %v2223_v37, %v2175_v31  ;;  %v2240_v38 = vmul.f32 %v2224_v19, %v2176_v1  ;;  %v1562_v39 = vmul.f32 %v4157_v42, %v1485_v22 }
 0x1d9   : > { %v1563_v6 = vmul.f32 %v4157_v42, %v1541_v48  ;;  %v1520_v33 = vadd.f32 %v1504_v54, %v1450_v12  ;;  %v1521_v41 = vadd.f32 %v1505_v50, %v1451_v61  ;;  %v1702_v44 = vmul.f32 %v4165_v35, %v1682_v36 }
 0x1da   : > { %v1617_v43 = vrot.slane %v1561_v20, 1  ;;  %3514 = vtanh.f32 %v2239_v17  ;;  %v1618_v46 = vrot.slane %v1562_v39, 1  ;;  %v1703_v60 = vmul.f32 %v4165_v35, %v1485_v22 }
 0x1db   : > { %v1620_v40 = vrot.slane %v1563_v6, 1  ;;  %3516 = vtanh.f32 %v2240_v38  ;;  %v1704_v14 = vmul.f32 %v4165_v35, %v1541_v48  ;;  %v1758_v53 = vrot.slane %v1702_v44, 2  ;;  %v1321_v38 = vld [vmem:[#allocation2 + $0x3c] sm:$0xe] }
 0x1dc   : > { %v4417_v56 = vunpack.c.l.bf16 %v3200_v27  ;;  %v1619_v42 = vsel %vm1243_vm8, %v1617_v43, %v1618_v46  ;;  %v1759_v55 = vrot.slane %v1703_v60, 2  ;;  %v4421_v25 = vunpack.c.h.bf16 %v3200_v27 }
 0x1dd   : > { %v1621_v49 = vsel %vm1243_vm8, %v1618_v46, %v1620_v40  ;;  %v1661_v59 = vadd.f32 %v1619_v42, %v1520_v33  ;;  %v1761_v2 = vrot.slane %v1704_v14, 2  ;;  %v1893_v4 = vunpack.c.l.bf16 %v1884_v13  ;;  %v4452_v33 = vld [vmem:[%s4810_s3 + $0x1] ss:$0 sm:$0xff] }
 0x1de   : > { %v1662_v18 = vadd.f32 %v1621_v49, %v1521_v41  ;;  %v1856_v31 = vmul.f32 %v4417_v56, %v4184_v45  ;;  %v1760_v35 = vsel %vm1385_vm9, %v1758_v53, %v1759_v55  ;;  %v1857_v1 = vmul.f32 %v4421_v25, %v4184_v45 }
 0x1df   : > { %v1913_v10 = vmul.f32 %v4417_v56, %v4190_v52  ;;  %v1762_v57 = vsel %vm1385_vm9, %v1759_v55, %v1761_v2  ;;  %v1802_v15 = vadd.f32 %v1760_v35, %v1661_v59  ;;  %v1914_v8 = vmul.f32 %v4421_v25, %v4190_v52 }
 0x1e0   : > { %v2034_v9 = vunpack.c.l.bf16 %v2025_v58  ;;  %v1803_v11 = vadd.f32 %v1762_v57, %v1662_v18  ;;  %v1915_v16 = vmul.f32 %v4190_v52, %v1893_v4  ;;  %v2055_v63 = vmul.f32 %v4421_v25, %v4206_v7  ;;  %v4464_v58 = vld [vmem:[%s4810_s3 + $0x2] ss:$0 sm:$0xff] }
 0x1e1   : > { %v1969_v24 = vrot.slane %v1913_v10, 1  ;;  %v1872_v45 = vadd.f32 %v1856_v31, %v1802_v15  ;;  %v1970_v47 = vrot.slane %v1914_v8, 1  ;;  %v2056_v28 = vmul.f32 %v4206_v7, %v1893_v4  ;;  %v1533_v4 = vld [vmem:[#allocation2 + $0x50] sm:$0x1] }
 0x1e2   : > { %v2054_v26 = vmul.f32 %v4206_v7, %v2034_v9  ;;  %v1873_v29 = vadd.f32 %v1857_v1, %v1803_v11  ;;  %v1972_v5 = vrot.slane %v1915_v16, 1  ;;  %v2111_v30 = vrot.slane %v2055_v63, 2  ;;  %v4478_v16 = vld [vmem:[%s4810_s3 + $0x3] ss:$0 sm:$0xff] }
 0x1e3   : > { %v1132_v32 = vunpack.c.l.bf16 %v1115_v0  ;;  %v1971_v62 = vsel %vm1243_vm8, %v1969_v24, %v1970_v47  ;;  %v2113_v48 = vrot.slane %v2056_v28, 2  ;;  %v1133_v52 = vunpack.c.h.bf16 %v1115_v0 }
 0x1e4   : > { %v2110_v22 = vrot.slane %v2054_v26, 2  ;;  %v3515_v36 = vpop.eup %3514  ;;  %v1973_v37 = vsel %vm1243_vm8, %v1970_v47, %v1972_v5  ;;  %v2013_v19 = vadd.f32 %v1971_v62, %v1872_v45  ;;  %v1188_v12 = vunpack.c.l.bf16 %v1179_v3 }
 0x1e5   : > { %v1152_v7 = vmul.f32 %v4443_v34, %v1132_v32  ;;  %v3517_v61 = vpop.eup %3516  ;;  %v2287_v54 = vadd.f32 1.0, %v3515_v36  ;;  %v2014_v50 = vadd.f32 %v1973_v37, %v1873_v29  ;;  %v2114_v17 = vsel %vm1385_vm9, %v2111_v30, %v2113_v48  ;;  %v4488_v29 = vld [vmem:[%s4810_s3 + $0x4] ss:$0 sm:$0xff] }
 0x1e6   : > { %v2112_v20 = vsel %vm1385_vm9, %v2110_v22, %v2111_v30  ;;  %v2288_v39 = vadd.f32 1.0, %v3517_v61  ;;  %v1153_v27 = vmul.f32 %v4443_v34, %v1133_v52  ;;  %v1210_v41 = vmul.f32 %v4452_v33, %v1132_v32  ;;  %v1674_v32 = vld [vmem:[#allocation2 + $0x48] sm:$0xe] }
 0x1e7   : > { %v2154_v6 = vadd.f32 %v2112_v20, %v2013_v19  ;;  %v2303_v43 = vmul.f32 %v2287_v54, %v4403_v21  ;;  %v2155_v44 = vadd.f32 %v2114_v17, %v2014_v50  ;;  %v1211_v46 = vmul.f32 %v4452_v33, %v1133_v52  ;;  %v1821_v50 = vld [vmem:[#allocation2 + $0x54] sm:$0xff]  }
 0x1e8   : > { %v1212_v40 = vmul.f32 %v4452_v33, %v1188_v12  ;;  %v2304_v60 = vmul.f32 %v2288_v39, %v4405_v23  ;;  %v1269_v53 = vrot.slane %v1210_v41, 1  ;;  %v1330_v13 = vunpack.c.l.bf16 %v1321_v38  ;;  %v4500_v38 = vld [vmem:[%s4810_s3 + $0x5] ss:$0 sm:$0xff] }
 0x1e9   : > { %v2177_v14 = vadd.f32 %v4229_v51, %v2154_v6  ;;  %v2178_v42 = vadd.f32 %v4229_v51, %v2155_v44  ;;  %v1270_v49 = vrot.slane %v1211_v46, 1  ;;  %v1353_v21 = vmul.f32 %v4464_v58, %v1133_v52  ;;  %v1885_v6 = vld [vmem:[#allocation2 + $0x5c] sm:$0x1] }
 0x1ea   : > { %v1272_v55 = vrot.slane %v1212_v40, 1  ;;  %v2316_v59 = vpack.c.bf16 %v2304_v60, %v2303_v43  ;;  %v1352_v23 = vmul.f32 %v4464_v58, %v1330_v13  ;;  %v1354_v8 = vmul.f32 %v4464_v58, %v1188_v12 }
 0x1eb   : > { %v2193_v18 = vmul.f32 %v2177_v14, %v2177_v14  ;;  %v4467_v2 = vmul.f32 0.5, %v2177_v14  ;;  %v2194_v31 = vmul.f32 %v2178_v42, %v2178_v42  ;;  %v4470_v35 = vmul.f32 0.5, %v2178_v42 }
 0x1ec   : > { %v1271_v51 = vsel %vm1243_vm8, %v1269_v53, %v1270_v49  ;;  %v1273_v1 = vsel %vm1243_vm8, %v1270_v49, %v1272_v55  ;;  %3324 = vmatmul.mubr.bf16.gmra.mrb[24].mxu1 %v2316_v59  ;;  %v1411_v0 = vrot.slane %v1352_v23, 2  ;;  %v1412_v11 = vrot.slane %v1353_v21, 2  ;;  %v4510_v21 = vld [vmem:[%s4810_s3 + $0x6] ss:$0 sm:$0xff]  ;;  %v4517_v23 = vld [vmem:[%s4810_s3 + $0x7] ss:$0 sm:$0xff] }
 0x1ed   : > { %v2209_v10 = vmul.f32 0.035677407, %v2193_v18  ;;  %v1310_v57 = vadd.f32 %v1271_v51, %v1152_v7  ;;  %v1311_v15 = vadd.f32 %v1273_v1, %v1153_v27  ;;  %v2210_v9 = vmul.f32 0.035677407, %v2194_v31  ;;  %v2026_v27 = vld [vmem:[#allocation2 + $0x54] sm:$0xe] }
 0x1ee   : > { %v1506_v24 = vmul.f32 %v4478_v16, %v4417_v56  ;;  %v1414_v45 = vrot.slane %v1354_v8, 2  ;;  %v1507_v47 = vmul.f32 %v4478_v16, %v4421_v25  ;;  %v1542_v26 = vunpack.c.l.bf16 %v1533_v4 }
 0x1ef   : > { %v2225_v63 = vadd.f32 0.7978846, %v2209_v10  ;;  %v2226_v28 = vadd.f32 0.7978846, %v2210_v9  ;;  %v1413_v3 = vsel %vm1385_vm9, %v1411_v0, %v1412_v11  ;;  %v1564_v5 = vmul.f32 %v4488_v29, %v4417_v56 }
 0x1f0   : > { %v1565_v30 = vmul.f32 %v4488_v29, %v4421_v25  ;;  %v1415_v22 = vsel %vm1385_vm9, %v1412_v11, %v1414_v45  ;;  %v1452_v48 = vadd.f32 %v1413_v3, %v1310_v57  ;;  %v1566_v52 = vmul.f32 %v4488_v29, %v1542_v26  ;;  %v4527_v57 = vld [vmem:[%s4810_s3 + $0x8] ss:$0 sm:$0xff] }
 0x1f1   : > { %v2241_v62 = vmul.f32 %v2225_v63, %v2177_v14  ;;  %v2242_v36 = vmul.f32 %v2226_v28, %v2178_v42  ;;  %v1453_v37 = vadd.f32 %v1415_v22, %v1311_v15  ;;  %v1622_v19 = vrot.slane %v1564_v5, 1 }
 0x1f2   : > { %v1623_v7 = vrot.slane %v1565_v30, 1  ;;  %v1522_v12 = vadd.f32 %v1506_v24, %v1452_v48  ;;  %v1625_v61 = vrot.slane %v1566_v52, 1  ;;  %v1683_v54 = vunpack.c.l.bf16 %v1674_v32 }
 0x1f3   : > { %3518 = vtanh.f32 %v2241_v62  ;;  %v1523_v20 = vadd.f32 %v1507_v47, %v1453_v37  ;;  %v1706_v39 = vmul.f32 %v4500_v38, %v4421_v25  ;;  %v1707_v46 = vmul.f32 %v4500_v38, %v1542_v26  ;;  %v1180_v26 = vld [vmem:[#allocation2 + $0x50] sm:$0x1] }
 0x1f4   : > { %3520 = vtanh.f32 %v2242_v36  ;;  %v1624_v17 = vsel %vm1243_vm8, %v1622_v19, %v1623_v7  ;;  %v1626_v41 = vsel %vm1243_vm8, %v1623_v7, %v1625_v61  ;;  %v1705_v44 = vmul.f32 %v4500_v38, %v1683_v54  ;;  %v1322_v61 = vld [vmem:[#allocation2 + $0x48] sm:$0xe] }
 0x1f5   : > { %v1663_v43 = vadd.f32 %v1624_v17, %v1522_v12  ;;  %v1664_v40 = vadd.f32 %v1626_v41, %v1523_v20  ;;  %v1764_v60 = vrot.slane %v1706_v39, 2  ;;  %v1838_v14 = vunpack.c.l.bf16 %v1821_v50 }
 0x1f6   : > { %v1839_v53 = vunpack.c.h.bf16 %v1821_v50  ;;  %v1763_v13 = vrot.slane %v1705_v44, 2  ;;  %v1766_v42 = vrot.slane %v1707_v46, 2  ;;  %v1894_v49 = vunpack.c.l.bf16 %v1885_v6 }
 0x1f7   : > { %v2035_v55 = vunpack.c.l.bf16 %v2026_v27  ;;  %v1858_v59 = vmul.f32 %v4510_v21, %v1838_v14  ;;  %v1916_v31 = vmul.f32 %v4517_v23, %v1838_v14  ;;  %v1154_v30 = vmul.f32 %v4443_v34, %v4417_v56 }
 0x1f8   : > { %v1859_v18 = vmul.f32 %v4510_v21, %v1839_v53  ;;  %v1917_v51 = vmul.f32 %v4517_v23, %v1839_v53  ;;  %v1765_v1 = vsel %vm1385_vm9, %v1763_v13, %v1764_v60  ;;  %v1767_v4 = vsel %vm1385_vm9, %v1764_v60, %v1766_v42  ;;  %v4550_v60 = vld [vmem:[%s4811_s4] ss:$0 sm:$0xff] }
 0x1f9   : > { %v1918_v10 = vmul.f32 %v4517_v23, %v1894_v49  ;;  %v2057_v15 = vmul.f32 %v4527_v57, %v2035_v55  ;;  %v1804_v8 = vadd.f32 %v1765_v1, %v1663_v43  ;;  %v1805_v9 = vadd.f32 %v1767_v4, %v1664_v40 }
 0x1fa   : > { %v1974_v0 = vrot.slane %v1916_v31, 1  ;;  %v1975_v11 = vrot.slane %v1917_v51, 1  ;;  %v2058_v63 = vmul.f32 %v4527_v57, %v1839_v53  ;;  %v2059_v45 = vmul.f32 %v4527_v57, %v1894_v49  ;;  %v1471_v51 = vld [vmem:[#allocation2 + $0x54] sm:$0xff]  }
 0x1fb   : > { %v1977_v24 = vrot.slane %v1918_v10, 1  ;;  %v2115_v47 = vrot.slane %v2057_v15, 2  ;;  %v1874_v28 = vadd.f32 %v1858_v59, %v1804_v8  ;;  %v1875_v3 = vadd.f32 %v1859_v18, %v1805_v9  ;;  %v1534_v15 = vld [vmem:[#allocation2 + $0x5c] sm:$0x1] }
 0x1fc   : > { %v1976_v5 = vsel %vm1243_vm8, %v1974_v0, %v1975_v11  ;;  %v2116_v22 = vrot.slane %v2058_v63, 2  ;;  %v2118_v48 = vrot.slane %v2059_v45, 2  ;;  %v1155_v52 = vmul.f32 %v4443_v34, %v4421_v25 }
 0x1fd   : > { %v3519_v32 = vpop.eup %3518  ;;  %v1978_v62 = vsel %vm1243_vm8, %v1975_v11, %v1977_v24  ;;  %v2015_v19 = vadd.f32 %v1976_v5, %v1874_v28  ;;  %v1189_v12 = vunpack.c.l.bf16 %v1180_v26  ;;  %v1213_v17 = vmul.f32 %v4452_v33, %v4417_v56 }
 0x1fe   : > { %v3521_v36 = vpop.eup %3520  ;;  %v2289_v37 = vadd.f32 1.0, %v3519_v32  ;;  %v2016_v7 = vadd.f32 %v1978_v62, %v1875_v3  ;;  %v2117_v50 = vsel %vm1385_vm9, %v2115_v47, %v2116_v22  ;;  %v2119_v20 = vsel %vm1385_vm9, %v2116_v22, %v2118_v48  ;;  %v1675_v32 = vld [vmem:[#allocation2 + $0x54] sm:$0xe] }
 0x1ff   : > { %v2290_v54 = vadd.f32 1.0, %v3521_v36  ;;  %v2156_v6 = vadd.f32 %v2117_v50, %v2015_v19  ;;  %v1214_v41 = vmul.f32 %v4452_v33, %v4421_v25  ;;  %v1215_v44 = vmul.f32 %v4452_v33, %v1189_v12  ;;  %v3201_v50 = vld [vmem:[#allocation2 + $0x60] sm:$0xff]  }
 0x200   : > { %v2305_v39 = vmul.f32 %v2289_v37, %v4467_v2  ;;  %v2157_v27 = vadd.f32 %v2119_v20, %v2016_v7  ;;  %v1274_v46 = vrot.slane %v1213_v17, 1  ;;  %v1331_v40 = vunpack.c.l.bf16 %v1322_v61 }
 0x201   : > { %v2306_v43 = vmul.f32 %v2290_v54, %v4470_v35  ;;  %v2179_v56 = vadd.f32 %v4550_v60, %v2156_v6  ;;  %v1275_v14 = vrot.slane %v1214_v41, 1  ;;  %v1356_v53 = vmul.f32 %v4464_v58, %v4421_v25 }
 0x202   : > { %v2180_v2 = vadd.f32 %v4550_v60, %v2157_v27  ;;  %v1277_v42 = vrot.slane %v1215_v44, 1  ;;  %v1355_v35 = vmul.f32 %v4464_v58, %v1331_v40  ;;  %v1357_v49 = vmul.f32 %v4464_v58, %v1189_v12 }
 0x203   : > { %v2317_v13 = vpack.c.bf16 %v2306_v43, %v2305_v39  ;;  %v2195_v55 = vmul.f32 %v2179_v56, %v2179_v56  ;;  %v4558_v18 = vmul.f32 0.5, %v2179_v56  ;;  %v1276_v1 = vsel %vm1243_vm8, %v1274_v46, %v1275_v14  ;;  %v1886_v43 = vld [vmem:[#allocation2 + $0x68] sm:$0x1] }
 0x204   : > { %v2196_v59 = vmul.f32 %v2180_v2, %v2180_v2  ;;  %v4560_v31 = vmul.f32 0.5, %v2180_v2  ;;  %v1278_v4 = vsel %vm1243_vm8, %v1275_v14, %v1277_v42  ;;  %v1416_v10 = vrot.slane %v1355_v35, 2  ;;  %v2027_v42 = vld [vmem:[#allocation2 + $0x60] sm:$0xe] }
 0x205   : > { %3327 = vmatprep.mubr.bf16.mxu1 %v2317_v13  ;;  %v1417_v25 = vrot.slane %v1356_v53, 2  ;;  %v2211_v8 = vmul.f32 0.035677407, %v2195_v55  ;;  %v1312_v0 = vadd.f32 %v1276_v1, %v1154_v30  ;;  %v1313_v11 = vadd.f32 %v1278_v4, %v1155_v52 }
 0x206   : > { %v2212_v9 = vmul.f32 0.035677407, %v2196_v59  ;;  %v1419_v63 = vrot.slane %v1357_v49, 2  ;;  %v1488_v45 = vunpack.c.l.bf16 %v1471_v51  ;;  %v1489_v47 = vunpack.c.h.bf16 %v1471_v51 }
 0x207   : > { %v1418_v24 = vsel %vm1385_vm9, %v1416_v10, %v1417_v25  ;;  %v2227_v26 = vadd.f32 0.7978846, %v2211_v8  ;;  %v1543_v5 = vunpack.c.l.bf16 %v1534_v15  ;;  %v1684_v54 = vunpack.c.l.bf16 %v1675_v32 }
 0x208   : > { %v2228_v28 = vadd.f32 0.7978846, %v2212_v9  ;;  %v1454_v3 = vadd.f32 %v1418_v24, %v1312_v0  ;;  %v1420_v62 = vsel %vm1385_vm9, %v1417_v25, %v1419_v63  ;;  %v1508_v22 = vmul.f32 %v4478_v16, %v1488_v45  ;;  %v1119_v0 = vld [vmem:[#allocation2 + $0x54] sm:$0xff]  }
 0x209   : > { %v1509_v48 = vmul.f32 %v4478_v16, %v1489_v47  ;;  %v1567_v36 = vmul.f32 %v4488_v29, %v1488_v45  ;;  %v2243_v30 = vmul.f32 %v2227_v26, %v2179_v56  ;;  %v1455_v37 = vadd.f32 %v1420_v62, %v1313_v11 }
 0x20a   : > { %v2244_v52 = vmul.f32 %v2228_v28, %v2180_v2  ;;  %v1568_v19 = vmul.f32 %v4488_v29, %v1489_v47  ;;  %v1524_v7 = vadd.f32 %v1508_v22, %v1454_v3  ;;  %v1569_v12 = vmul.f32 %v4488_v29, %v1543_v5 }
 0x20b   : > { %v1627_v61 = vrot.slane %v1567_v36, 1  ;;  %3522 = vtanh.f32 %v2243_v30  ;;  %v1525_v20 = vadd.f32 %v1509_v48, %v1455_v37  ;;  %v1709_v39 = vmul.f32 %v4500_v38, %v1489_v47  ;;  %v1181_v48 = vld [vmem:[#allocation2 + $0x5c] sm:$0x1] }
 0x20c   : > { %v1628_v17 = vrot.slane %v1568_v19, 1  ;;  %3524 = vtanh.f32 %v2244_v52  ;;  %v1630_v6 = vrot.slane %v1569_v12, 1  ;;  %v1708_v27 = vmul.f32 %v4500_v38, %v1684_v54 }
 0x20d   : > { %v1710_v41 = vmul.f32 %v4500_v38, %v1543_v5  ;;  %v1769_v46 = vrot.slane %v1709_v39, 2  ;;  %v4575_v40 = vunpack.c.l.bf16 %v3201_v50  ;;  %v4577_v56 = vunpack.c.h.bf16 %v3201_v50 }
 0x20e   : > { %v1629_v44 = vsel %vm1243_vm8, %v1627_v61, %v1628_v17  ;;  %v1631_v2 = vsel %vm1243_vm8, %v1628_v17, %v1630_v6  ;;  %v1768_v53 = vrot.slane %v1708_v27, 2  ;;  %v1895_v59 = vunpack.c.l.bf16 %v1886_v43 }
 0x20f   : > { %v1665_v14 = vadd.f32 %v1629_v44, %v1524_v7  ;;  %v1771_v13 = vrot.slane %v1710_v41, 2  ;;  %v1666_v35 = vadd.f32 %v1631_v2, %v1525_v20  ;;  %v1860_v49 = vmul.f32 %v4510_v21, %v4575_v40  ;;  %v1323_v20 = vld [vmem:[#allocation2 + $0x54] sm:$0xe] }
 0x210   : > { %v1861_v55 = vmul.f32 %v4510_v21, %v4577_v56  ;;  %v1770_v51 = vsel %vm1385_vm9, %v1768_v53, %v1769_v46  ;;  %v1919_v4 = vmul.f32 %v4517_v23, %v4575_v40  ;;  %v1920_v10 = vmul.f32 %v4517_v23, %v4577_v56 }
 0x211   : > { %v1772_v1 = vsel %vm1385_vm9, %v1769_v46, %v1771_v13  ;;  %v1806_v25 = vadd.f32 %v1770_v51, %v1665_v14  ;;  %v1921_v8 = vmul.f32 %v4517_v23, %v1895_v59  ;;  %v2036_v9 = vunpack.c.l.bf16 %v2027_v42 }
 0x212   : > { %v1807_v15 = vadd.f32 %v1772_v1, %v1666_v35  ;;  %v1979_v11 = vrot.slane %v1919_v4, 1  ;;  %v1980_v24 = vrot.slane %v1920_v10, 1  ;;  %v2061_v63 = vmul.f32 %v4527_v57, %v4577_v56 }
 0x213   : > { %v2062_v45 = vmul.f32 %v4527_v57, %v1895_v59  ;;  %v1876_v47 = vadd.f32 %v1860_v49, %v1806_v25  ;;  %v1982_v28 = vrot.slane %v1921_v8, 1  ;;  %v2060_v3 = vmul.f32 %v4527_v57, %v2036_v9 }
 0x214   : > { %v1877_v26 = vadd.f32 %v1861_v55, %v1807_v15  ;;  %v1981_v5 = vsel %vm1243_vm8, %v1979_v11, %v1980_v24  ;;  %v2121_v32 = vrot.slane %v2061_v63, 2  ;;  %v1136_v22 = vunpack.c.l.bf16 %v1119_v0  ;;  %v1535_v15 = vld [vmem:[#allocation2 + $0x68] sm:$0x1] }
 0x215   : > { %v2123_v62 = vrot.slane %v2062_v45, 2  ;;  %v3523_v36 = vpop.eup %3522  ;;  %v1983_v30 = vsel %vm1243_vm8, %v1980_v24, %v1982_v28  ;;  %v2017_v52 = vadd.f32 %v1981_v5, %v1876_v47  ;;  %v2120_v37 = vrot.slane %v2060_v3, 2  ;;  %v1676_v24 = vld [vmem:[#allocation2 + $0x60] sm:$0xe] }
 0x216   : > { %v1137_v19 = vunpack.c.h.bf16 %v1119_v0  ;;  %v3525_v7 = vpop.eup %3524  ;;  %v2291_v12 = vadd.f32 1.0, %v3523_v36  ;;  %v2018_v61 = vadd.f32 %v1983_v30, %v1877_v26  ;;  %v1156_v50 = vmul.f32 %v4443_v34, %v1136_v22 }
 0x217   : > { %v2124_v54 = vsel %vm1385_vm9, %v2121_v32, %v2123_v62  ;;  %v2292_v17 = vadd.f32 1.0, %v3525_v7  ;;  %v2122_v39 = vsel %vm1385_vm9, %v2120_v37, %v2121_v32  ;;  %v1190_v27 = vunpack.c.l.bf16 %v1181_v48 }
 0x218   : > { %v1157_v6 = vmul.f32 %v4443_v34, %v1137_v19  ;;  %v2307_v41 = vmul.f32 %v2291_v12, %v4558_v18  ;;  %v2158_v43 = vadd.f32 %v2122_v39, %v2017_v52  ;;  %v2159_v44 = vadd.f32 %v2124_v54, %v2018_v61  ;;  %v1825_v12 = vld [vmem:[#allocation2 + $0x6c] sm:$0xff]  }
 0x219   : > { %v1216_v46 = vmul.f32 %v4452_v33, %v1136_v22  ;;  %v2308_v2 = vmul.f32 %v2292_v17, %v4560_v31  ;;  %v1217_v14 = vmul.f32 %v4452_v33, %v1137_v19  ;;  %v1218_v53 = vmul.f32 %v4452_v33, %v1190_v27 }
 0x21a   : > { %v1332_v13 = vunpack.c.l.bf16 %v1323_v20  ;;  %v4607_v42 = vadd.f32 %v4550_v60, %v2158_v43  ;;  %v4610_v35 = vadd.f32 %v4550_v60, %v2159_v44  ;;  %v1359_v18 = vmul.f32 %v4464_v58, %v1137_v19  ;;  %v1887_v20 = vld [vmem:[#allocation2 + $0x74] sm:$0x1] }
 0x21b   : > { %v1279_v34 = vrot.slane %v1216_v46, 1  ;;  %v2318_v49 = vpack.c.bf16 %v2308_v2, %v2307_v41  ;;  %v1280_v55 = vrot.slane %v1217_v14, 1  ;;  %v1282_v59 = vrot.slane %v1218_v53, 1  ;;  %v2028_v53 = vld [vmem:[#allocation2 + $0x6c] sm:$0xe] }
 0x21c   : > { %v1358_v51 = vmul.f32 %v4464_v58, %v1332_v13  ;;  %v2197_v31 = vmul.f32 %v4607_v42, %v4607_v42  ;;  %v2198_v33 = vmul.f32 %v4610_v35, %v4610_v35  ;;  %v1360_v10 = vmul.f32 %v4464_v58, %v1190_v27 }
 0x21d   : > { %3328 = vmatmul.mubr.bf16.gmra.mrb[28].mxu1 %v2318_v49  ;;  %v1281_v1 = vsel %vm1243_vm8, %v1279_v34, %v1280_v55  ;;  %v1283_v4 = vsel %vm1243_vm8, %v1280_v55, %v1282_v59  ;;  %v1422_v63 = vrot.slane %v1359_v18, 2  ;;  %v1510_v47 = vmul.f32 %v4478_v16, %v4575_v40 }
 0x21e   : > { %v1421_v25 = vrot.slane %v1358_v51, 2  ;;  %v2213_v8 = vmul.f32 0.035677407, %v2197_v31  ;;  %v2214_v9 = vmul.f32 0.035677407, %v2198_v33  ;;  %v1314_v0 = vadd.f32 %v1281_v1, %v1156_v50 }
 0x21f   : > { %v1315_v11 = vadd.f32 %v1283_v4, %v1157_v6  ;;  %v1424_v45 = vrot.slane %v1360_v10, 2  ;;  %v1511_v26 = vmul.f32 %v4478_v16, %v4577_v56  ;;  %v1544_v5 = vunpack.c.l.bf16 %v1535_v15 }
 0x220   : > { %v2229_v28 = vadd.f32 0.7978846, %v2213_v8  ;;  %v2230_v3 = vadd.f32 0.7978846, %v2214_v9  ;;  %v1570_v58 = vmul.f32 %v4488_v29, %v4575_v40  ;;  %v1423_v32 = vsel %vm1385_vm9, %v1421_v25, %v1422_v63 }
 0x221   : > { %v1425_v62 = vsel %vm1385_vm9, %v1422_v63, %v1424_v45  ;;  %v1571_v22 = vmul.f32 %v4488_v29, %v4577_v56  ;;  %v1685_v48 = vunpack.c.l.bf16 %v1676_v24  ;;  %v1456_v52 = vadd.f32 %v1423_v32, %v1314_v0 }
 0x222   : > { %v2245_v36 = vmul.f32 %v2229_v28, %v4607_v42  ;;  %v2246_v30 = vmul.f32 %v2230_v3, %v4610_v35  ;;  %v1457_v16 = vadd.f32 %v1425_v62, %v1315_v11  ;;  %v1572_v37 = vmul.f32 %v4488_v29, %v1544_v5 }
 0x223   : > { %v1632_v19 = vrot.slane %v1570_v58, 1  ;;  %v1633_v7 = vrot.slane %v1571_v22, 1  ;;  %v1711_v40 = vmul.f32 %v4500_v38, %v1685_v48  ;;  %v1526_v61 = vadd.f32 %v1510_v47, %v1456_v52 }
 0x224   : > { %3526 = vtanh.f32 %v2245_v36  ;;  %v1527_v54 = vadd.f32 %v1511_v26, %v1457_v16  ;;  %v1712_v50 = vmul.f32 %v4500_v38, %v4577_v56  ;;  %v1635_v39 = vrot.slane %v1572_v37, 1 }
 0x225   : > { %3528 = vtanh.f32 %v2246_v30  ;;  %v1634_v17 = vsel %vm1243_vm8, %v1632_v19, %v1633_v7  ;;  %v1713_v6 = vmul.f32 %v4500_v38, %v1544_v5  ;;  %v1773_v29 = vrot.slane %v1711_v40, 2 }
 0x226   : > { %v1667_v27 = vadd.f32 %v1634_v17, %v1526_v61  ;;  %v1774_v41 = vrot.slane %v1712_v50, 2  ;;  %v1842_v43 = vunpack.c.l.bf16 %v1825_v12  ;;  %v1636_v44 = vsel %vm1243_vm8, %v1633_v7, %v1635_v39 }
 0x227   : > { %v1776_v46 = vrot.slane %v1713_v6, 2  ;;  %v1843_v2 = vunpack.c.h.bf16 %v1825_v12  ;;  %v1896_v14 = vunpack.c.l.bf16 %v1887_v20  ;;  %v1668_v13 = vadd.f32 %v1636_v44, %v1527_v54  ;;  %v2976_v44 = vld [vmem:[%s3809_s20 + $0xc] sm:$0xff]  }
 0x228   : > { %v1775_v56 = vsel %vm1385_vm9, %v1773_v29, %v1774_v41  ;;  %v1862_v34 = vmul.f32 %v4510_v21, %v1842_v43  ;;  %v1922_v18 = vmul.f32 %v4517_v23, %v1842_v43  ;;  %v2037_v1 = vunpack.c.l.bf16 %v2028_v53  ;;  %v3202_v43 = vld [vmem:[%s3809_s20 + $0x18] sm:$0xff]   ;;  %v2978_v53 = vld [vmem:[%s3809_s20 + $0x14] sm:$0x1] }
 0x229   : > { %v1777_v49 = vsel %vm1385_vm9, %v1774_v41, %v1776_v46  ;;  %v1808_v38 = vadd.f32 %v1775_v56, %v1667_v27  ;;  %v1863_v55 = vmul.f32 %v4510_v21, %v1843_v2  ;;  %v1923_v59 = vmul.f32 %v4517_v23, %v1843_v2  ;;  %v2981_v46 = vld [vmem:[%s3809_s20 + $0x20] sm:$0x1] }
 0x22a   : > { %v1809_v51 = vadd.f32 %v1777_v49, %v1668_v13  ;;  %v1924_v31 = vmul.f32 %v4517_v23, %v1896_v14  ;;  %v1984_v33 = vrot.slane %v1922_v18, 1  ;;  %v2064_v25 = vmul.f32 %v4527_v57, %v1843_v2 }
 0x22b   : > { %v1878_v4 = vadd.f32 %v1862_v34, %v1808_v38  ;;  %v1985_v10 = vrot.slane %v1923_v59, 1  ;;  %v2065_v15 = vmul.f32 %v4527_v57, %v1896_v14  ;;  %v2063_v0 = vmul.f32 %v4527_v57, %v2037_v1 }
 0x22c   : > { %v1879_v8 = vadd.f32 %v1863_v55, %v1809_v51  ;;  %v1987_v9 = vrot.slane %v1924_v31, 1  ;;  %v2261_v11 = vmul.f32 0.5, %v4607_v42  ;;  %v2126_v24 = vrot.slane %v2064_v25, 2  ;;  %v4665_v51 = vld [vmem:[%s4813_s6] ss:$0 sm:$0xff] }
 0x22d   : > { %v1986_v21 = vsel %vm1243_vm8, %v1984_v33, %v1985_v10  ;;  %v2128_v63 = vrot.slane %v2065_v15, 2  ;;  %v2262_v23 = vmul.f32 0.5, %v4610_v35  ;;  %v2125_v28 = vrot.slane %v2063_v0, 2 }
 0x22e   : > { %v3527_v45 = vpop.eup %3526  ;;  %v1988_v47 = vsel %vm1243_vm8, %v1985_v10, %v1987_v9  ;;  %v2019_v26 = vadd.f32 %v1986_v21, %v1878_v4  ;;  %v3164_v2 = vunpack.c.l.bf16 %v3202_v43  ;;  %v3165_v14 = vunpack.c.h.bf16 %v3202_v43 }
 0x22f   : > { %v3529_v3 = vpop.eup %3528  ;;  %v2293_v5 = vadd.f32 1.0, %v3527_v45  ;;  %v2020_v58 = vadd.f32 %v1988_v47, %v1879_v8  ;;  %v2129_v32 = vsel %vm1385_vm9, %v2126_v24, %v2128_v63  ;;  %v2127_v57 = vsel %vm1385_vm9, %v2125_v28, %v2126_v24 }
 0x230   : > { %v2294_v62 = vadd.f32 1.0, %v3529_v3  ;;  %v2160_v22 = vadd.f32 %v2127_v57, %v2019_v26  ;;  %v2517_v13 = vunpack.c.l.bf16 %v2976_v44  ;;  %v2518_v56 = vunpack.c.h.bf16 %v2976_v44  ;;  %v3203_v44 = vld [vmem:[%s3809_s20 + $0x30] sm:$0xff]  }
 0x231   : > { %v2309_v42 = vmul.f32 %v2293_v5, %v2261_v11  ;;  %v2161_v48 = vadd.f32 %v2129_v32, %v2020_v58  ;;  %v2522_v34 = vunpack.c.l.bf16 %v2981_v46  ;;  %v2519_v18 = vunpack.c.l.bf16 %v2978_v53  ;;  %v2982_v46 = vld [vmem:[%s3809_s20 + $0x24] sm:$0xff]  }
 0x232   : > { %v2310_v36 = vmul.f32 %v2294_v62, %v2262_v23  ;;  %v2183_v30 = vadd.f32 %v4550_v60, %v2160_v22  ;;  %v2570_v49 = vrot.slane %v3164_v2, 1  ;;  %v2571_v38 = vrot.slane %v3165_v14, 1  ;;  %v2987_v2 = vld [vmem:[%s3809_s20 + $0x38] sm:$0x1] }
 0x233   : > { %v2184_v35 = vadd.f32 %v4550_v60, %v2161_v48  ;;  %v2565_v55 = vrot.slane %v2517_v13, 1  ;;  %v2566_v59 = vrot.slane %v2518_v56, 1  ;;  %v2573_v31 = vrot.slane %v2522_v34, 1  ;;  %v2984_v13 = vld [vmem:[%s3809_s20 + $0x2c] sm:$0x1] }
 0x234   : > { %v2319_v52 = vpack.c.bf16 %v2310_v36, %v2309_v42  ;;  %v2199_v16 = vmul.f32 %v2183_v30, %v2183_v30  ;;  %v2263_v50 = vmul.f32 0.5, %v2183_v30  ;;  %v2568_v33 = vrot.slane %v2519_v18, 1 }
 0x235   : > { %v2200_v37 = vmul.f32 %v2184_v35, %v2184_v35  ;;  %v2264_v17 = vmul.f32 0.5, %v2184_v35  ;;  %v2572_v4 = vsel %vm1243_vm8, %v2570_v49, %v2571_v38  ;;  %v2567_v15 = vsel %vm1243_vm8, %v2565_v55, %v2566_v59 }
 0x236   : > { %3331 = vmatprep.mubr.bf16.mxu1 %v2319_v52  ;;  %v2215_v19 = vmul.f32 0.035677407, %v2199_v16  ;;  %v2574_v0 = vsel %vm1243_vm8, %v2571_v38, %v2573_v31  ;;  %v2569_v63 = vsel %vm1243_vm8, %v2566_v59, %v2568_v33  ;;  %v3168_v14 = vunpack.c.l.bf16 %v3203_v44 }
 0x237   : > { %v2216_v7 = vmul.f32 0.035677407, %v2200_v37  ;;  %v3169_v53 = vunpack.c.h.bf16 %v3203_v44  ;;  %v2523_v56 = vunpack.c.l.bf16 %v2982_v46  ;;  %v2524_v34 = vunpack.c.h.bf16 %v2982_v46  ;;  %v3204_v46 = vld [vmem:[%s3809_s20 + $0x48] sm:$0xff]  }
 0x238   : > { %v2231_v40 = vadd.f32 0.7978846, %v2215_v19  ;;  %v2528_v18 = vunpack.c.l.bf16 %v2987_v2  ;;  %v2525_v49 = vunpack.c.l.bf16 %v2984_v13  ;;  %v2580_v38 = vrot.slane %v3168_v14, 1  ;;  %v2988_v2 = vld [vmem:[%s3809_s20 + $0x3c] sm:$0xff]   ;;  %v2993_v14 = vld [vmem:[%s3809_s20 + $0x50] sm:$0x1] }
 0x239   : > { %v2232_v12 = vadd.f32 0.7978846, %v2216_v7  ;;  %v2581_v55 = vrot.slane %v3169_v53, 1  ;;  %v2575_v59 = vrot.slane %v2523_v56, 1  ;;  %v2576_v31 = vrot.slane %v2524_v34, 1 }
 0x23a   : > { %v2247_v61 = vmul.f32 %v2231_v40, %v2183_v30  ;;  %v2583_v33 = vrot.slane %v2528_v18, 1  ;;  %v3172_v53 = vunpack.c.l.bf16 %v3204_v46  ;;  %v3173_v13 = vunpack.c.h.bf16 %v3204_v46  ;;  %v2990_v56 = vld [vmem:[%s3809_s20 + $0x44] sm:$0x1] }
 0x23b   : > { %v2248_v54 = vmul.f32 %v2232_v12, %v2184_v35  ;;  %v2529_v34 = vunpack.c.l.bf16 %v2988_v2  ;;  %v2530_v18 = vunpack.c.h.bf16 %v2988_v2  ;;  %v3205_v2 = vld [vmem:[%s3809_s20 + $0x60] sm:$0xff]  }
 0x23c   : > { %3530 = vtanh.f32 %v2247_v61 }
 0x23d   : > { %3532 = vtanh.f32 %v2248_v54 }
 0x246   : > { %v3531_v20 = vpop.eup %3530 }
 0x247   : > { %v3533_v60 = vpop.eup %3532  ;;  %v2295_v39 = vadd.f32 1.0, %v3531_v20 }
 0x248   : > { %v2296_v6 = vadd.f32 1.0, %v3533_v60 }
 0x249   : > { %v2311_v27 = vmul.f32 %v2295_v39, %v2263_v50 }
 0x24a   : > { %v2312_v29 = vmul.f32 %v2296_v6, %v2264_v17 }
 0x24c   : > { %v2320_v41 = vpack.c.bf16 %v2312_v29, %v2311_v27 }
 0x24e   : > { %3332 = vmatmul.mubr.bf16.gmra.mrb[32].mxu1 %v2320_v41 }
 0x28e   : > { %v3321_v1 = vpop.f32.mrb[20].mxu1 }
 0x28f   : > { %v2435_v10 = vadd.f32 %v3321_v1, %v4665_v51  ;;  %v2426_v25 = vpop.f32.mrb[21].mxu1  ;;  %v2578_v1 = vrot.slane %v2525_v49, 1  ;;  %v2534_v49 = vunpack.c.l.bf16 %v2993_v14  ;;  %v2994_v14 = vld [vmem:[%s3809_s20 + $0x54] sm:$0xff]  }
 0x290   : > { %v2427_v8 = vadd.f32 %v4665_v51, %v2426_v25  ;;  %v3322_v9 = vpop.f32.mrb[22].mxu1 }
 0x291   : > { %v2623_v11 = vadd.f32 %v2572_v4, %v2435_v10  ;;  %v2438_v21 = vadd.f32 %v3322_v9, %v4665_v51  ;;  %v2429_v24 = vpop.f32.mrb[23].mxu1  ;;  %v2582_v10 = vsel %vm1243_vm8, %v2580_v38, %v2581_v55  ;;  %v2531_v38 = vunpack.c.l.bf16 %v2990_v56 }
 0x292   : > { %v2621_v45 = vadd.f32 %v2567_v15, %v2427_v8  ;;  %v2430_v23 = vadd.f32 %v4665_v51, %v2429_v24  ;;  %v2577_v8 = vsel %vm1243_vm8, %v2575_v59, %v2576_v31  ;;  %v2591_v59 = vrot.slane %v3173_v13, 1 }
 0x293   : > { %v2639_v47 = vmul.f32 %v2623_v11, %v2623_v11  ;;  %v2624_v26 = vadd.f32 %v2574_v0, %v2438_v21  ;;  %v2703_v40 = vmul.f32 0.5, %v2623_v11  ;;  %v3176_v13 = vunpack.c.l.bf16 %v3205_v2 }
 0x294   : > { %v2637_v28 = vmul.f32 %v2621_v45, %v2621_v45  ;;  %v2622_v3 = vadd.f32 %v2569_v63, %v2430_v23  ;;  %v2701_v54 = vmul.f32 0.5, %v2621_v45  ;;  %v3177_v56 = vunpack.c.h.bf16 %v3205_v2 }
 0x295   : > { %v2655_v5 = vmul.f32 0.035677407, %v2639_v47  ;;  %v2640_v58 = vmul.f32 %v2624_v26, %v2624_v26  ;;  %v2704_v60 = vmul.f32 0.5, %v2624_v26 }
 0x296   : > { %v2653_v32 = vmul.f32 0.035677407, %v2637_v28  ;;  %v2638_v62 = vmul.f32 %v2622_v3, %v2622_v3  ;;  %v2702_v27 = vmul.f32 0.5, %v2622_v3 }
 0x297   : > { %v2671_v57 = vadd.f32 0.7978846, %v2655_v5  ;;  %v2656_v42 = vmul.f32 0.035677407, %v2640_v58 }
 0x298   : > { %v2669_v22 = vadd.f32 0.7978846, %v2653_v32  ;;  %v2654_v48 = vmul.f32 0.035677407, %v2638_v62 }
 0x299   : > { %v2687_v36 = vmul.f32 %v2671_v57, %v2623_v11  ;;  %v2672_v30 = vadd.f32 0.7978846, %v2656_v42  ;;  %v2584_v11 = vsel %vm1243_vm8, %v2581_v55, %v2583_v33  ;;  %v2590_v55 = vrot.slane %v3172_v53, 1  ;;  %v2999_v53 = vld [vmem:[%s3809_s20 + $0x68] sm:$0x1] }
 0x29a   : > { %v2685_v35 = vmul.f32 %v2669_v22, %v2621_v45  ;;  %v2670_v52 = vadd.f32 0.7978846, %v2654_v48  ;;  %v2579_v45 = vsel %vm1243_vm8, %v2576_v31, %v2578_v1  ;;  %v2585_v31 = vrot.slane %v2529_v34, 1  ;;  %v2996_v34 = vld [vmem:[%s3809_s20 + $0x5c] sm:$0x1]  ;;  %s3038_s20 = sshll.u32 %s3654_s27, 4 }
 0x29b   : > { %3534 = vtanh.f32 %v2687_v36  ;;  %v2688_v16 = vmul.f32 %v2672_v30, %v2624_v26  ;;  %v2586_v33 = vrot.slane %v2530_v18, 1  ;;  %v2593_v1 = vrot.slane %v2534_v49, 1  ;;  %s2795_s18 = sadd.s32 %s3038_s20, %s3003_s21  ;;  %s3676_s20 = smov [#allocation3]  }
 0x29c   : > { %3536 = vtanh.f32 %v2685_v35  ;;  %v2686_v37 = vmul.f32 %v2670_v52, %v2622_v3  ;;  %v2535_v18 = vunpack.c.l.bf16 %v2994_v14  ;;  %v2536_v49 = vunpack.c.h.bf16 %v2994_v14  ;;  %s3004_s22 = sshll.u32 %s2795_s18, 7  ;;  %s3580_s21 = sshll.u32 %s3676_s20, 4  ;;  %s3581_s21 = int_to_ptr.vmem [resolvable:$false] %s3580_s21 }
 0x29d   : > { %3538 = vtanh.f32 %v2688_v16  ;;  %s4743_s9 = scalar_lea.hbm %s4814_s7, %s3004_s22  ;;  %s3582_s18 = scalar_lea.vmem %s3581_s21, 4096 }
 0x29e   : > { %3540 = vtanh.f32 %v2686_v37  ;;  %p3583_p5 = scmp.lt.s32.totalorder %s4745_s23, %s3581_s21  ;;  %p3584_p6 = scmp.lt.s32.totalorder %s3582_s18, %s3576_s17 }
 0x2a0   : > { %p3585_p7 = por %p3584_p6, %p3583_p5 }
 0x2a2   : > { %p3586_p9 = pnand %p3585_p7, %p3579_p4 }
 0x2a5   : > { %v3535_v19 = vpop.eup %3534 }
 0x2a6   : > { %v3537_v7 = vpop.eup %3536  ;;  %v2735_v12 = vadd.f32 1.0, %v3535_v19 }
 0x2a7   : > { %v3539_v61 = vpop.eup %3538  ;;  %v2733_v50 = vadd.f32 1.0, %v3537_v7 }
 0x2a8   : > { %v3541_v20 = vpop.eup %3540  ;;  %v2751_v17 = vmul.f32 %v2735_v12, %v2703_v40  ;;  %v2736_v39 = vadd.f32 1.0, %v3539_v61 }
 0x2a9   : > { %v2749_v6 = vmul.f32 %v2733_v50, %v2701_v54  ;;  %v2734_v29 = vadd.f32 1.0, %v3541_v20 }
 0x2aa   : > { %2767 = vst.msk [vmem:[%s4107_s13 + $0x10] sm:$0xff] %vm425_vm1, %v2751_v17  ;;  %v2752_v41 = vmul.f32 %v2736_v39, %v2704_v60 }
 0x2ab   : > { %2765 = vst.msk [vmem:[%s4107_s13] sm:$0xff] %vm425_vm1, %v2749_v6  ;;  %v2750_v43 = vmul.f32 %v2734_v29, %v2702_v27 }
 0x2ac   : > { %2768 = vst.msk [vmem:[%s4107_s13 + $0x18] sm:$0xff] %vm425_vm1, %v2752_v41 }
 0x2ad   : > { %2766 = vst.msk [vmem:[%s4107_s13 + $0x8] sm:$0xff] %vm425_vm1, %v2750_v43 }
 0x2bf   : > { %v3325_v4 = vpop.f32.mrb[24].mxu1 }
 0x2c0   : > { %v2451_v25 = vadd.f32 %v3325_v4, %v4665_v51  ;;  %v2442_v15 = vpop.f32.mrb[25].mxu1  ;;  %v2588_v4 = vrot.slane %v2531_v38, 1  ;;  %v2540_v38 = vunpack.c.l.bf16 %v2999_v53 }
 0x2c1   : > { %v2443_v9 = vadd.f32 %v4665_v51, %v2442_v15  ;;  %v3326_v0 = vpop.f32.mrb[26].mxu1 }
 0x2c2   : > { %v2627_v21 = vadd.f32 %v2582_v10, %v2451_v25  ;;  %v2454_v24 = vadd.f32 %v3326_v0, %v4665_v51  ;;  %v2445_v63 = vpop.f32.mrb[27].mxu1  ;;  %v2592_v25 = vsel %vm1243_vm8, %v2590_v55, %v2591_v59  ;;  %v2537_v55 = vunpack.c.l.bf16 %v2996_v34 }
 0x2c3   : > { %v2625_v23 = vadd.f32 %v2577_v8, %v2443_v9  ;;  %v2446_v47 = vadd.f32 %v4665_v51, %v2445_v63  ;;  %v2587_v9 = vsel %vm1243_vm8, %v2585_v31, %v2586_v33  ;;  %v2601_v31 = vrot.slane %v3177_v56, 1 }
 0x2c4   : > { %v2643_v26 = vmul.f32 %v2627_v21, %v2627_v21  ;;  %v2628_v28 = vadd.f32 %v2584_v11, %v2454_v24  ;;  %v2707_v12 = vmul.f32 0.5, %v2627_v21 }
 0x2c5   : > { %v2641_v3 = vmul.f32 %v2625_v23, %v2625_v23  ;;  %v2626_v5 = vadd.f32 %v2579_v45, %v2446_v47  ;;  %v2705_v50 = vmul.f32 0.5, %v2625_v23 }
 0x2c6   : > { %v2659_v58 = vmul.f32 0.035677407, %v2643_v26  ;;  %v2644_v32 = vmul.f32 %v2628_v28, %v2628_v28  ;;  %v2708_v39 = vmul.f32 0.5, %v2628_v28 }
 0x2c7   : > { %v2657_v62 = vmul.f32 0.035677407, %v2641_v3  ;;  %v2642_v57 = vmul.f32 %v2626_v5, %v2626_v5  ;;  %v2706_v29 = vmul.f32 0.5, %v2626_v5 }
 0x2c8   : > { %v2675_v42 = vadd.f32 0.7978846, %v2659_v58  ;;  %v2660_v22 = vmul.f32 0.035677407, %v2644_v32 }
 0x2c9   : > { %v2673_v48 = vadd.f32 0.7978846, %v2657_v62  ;;  %v2658_v36 = vmul.f32 0.035677407, %v2642_v57 }
 0x2ca   : > { %v2691_v30 = vmul.f32 %v2675_v42, %v2627_v21  ;;  %v2676_v35 = vadd.f32 0.7978846, %v2660_v22  ;;  %v2594_v21 = vsel %vm1243_vm8, %v2591_v59, %v2593_v1  ;;  %v2600_v59 = vrot.slane %v3176_v13, 1 }
 0x2cb   : > { %v2689_v52 = vmul.f32 %v2673_v48, %v2625_v23  ;;  %v2674_v16 = vadd.f32 0.7978846, %v2658_v36  ;;  %v2589_v23 = vsel %vm1243_vm8, %v2586_v33, %v2588_v4  ;;  %v2595_v33 = vrot.slane %v2535_v18, 1 }
 0x2cc   : > { %3542 = vtanh.f32 %v2691_v30  ;;  %v2692_v37 = vmul.f32 %v2676_v35, %v2628_v28  ;;  %v2596_v1 = vrot.slane %v2536_v49, 1  ;;  %v2603_v4 = vrot.slane %v2540_v38, 1 }
 0x2cd   : > { %3544 = vtanh.f32 %v2689_v52  ;;  %v2690_v19 = vmul.f32 %v2674_v16, %v2626_v5 }
 0x2ce   : > { %3546 = vtanh.f32 %v2692_v37 }
 0x2cf   : > { %3548 = vtanh.f32 %v2690_v19 }
 0x2d6   : > { %v3543_v7 = vpop.eup %3542 }
 0x2d7   : > { %v3545_v40 = vpop.eup %3544  ;;  %v2739_v61 = vadd.f32 1.0, %v3543_v7 }
 0x2d8   : > { %v3547_v54 = vpop.eup %3546  ;;  %v2737_v20 = vadd.f32 1.0, %v3545_v40 }
 0x2d9   : > { %v3549_v17 = vpop.eup %3548  ;;  %v2755_v60 = vmul.f32 %v2739_v61, %v2707_v12  ;;  %v2740_v6 = vadd.f32 1.0, %v3547_v54 }
 0x2da   : > { %v2753_v27 = vmul.f32 %v2737_v20, %v2705_v50  ;;  %v2738_v41 = vadd.f32 1.0, %v3549_v17 }
 0x2db   : > { %2771 = vst.msk [vmem:[%s4107_s13 + $0x30] sm:$0xff] %vm425_vm1, %v2755_v60  ;;  %v2756_v43 = vmul.f32 %v2740_v6, %v2708_v39 }
 0x2dc   : > { %2769 = vst.msk [vmem:[%s4107_s13 + $0x20] sm:$0xff] %vm425_vm1, %v2753_v27  ;;  %v2754_v44 = vmul.f32 %v2738_v41, %v2706_v29 }
 0x2dd   : > { %2772 = vst.msk [vmem:[%s4107_s13 + $0x38] sm:$0xff] %vm425_vm1, %v2756_v43 }
 0x2de   : > { %2770 = vst.msk [vmem:[%s4107_s13 + $0x28] sm:$0xff] %vm425_vm1, %v2754_v44 }
 0x2f0   : > { %v3329_v10 = vpop.f32.mrb[28].mxu1 }
 0x2f1   : > { %v2467_v15 = vadd.f32 %v3329_v10, %v4665_v51  ;;  %v2458_v8 = vpop.f32.mrb[29].mxu1  ;;  %v2598_v10 = vrot.slane %v2537_v55, 1 }
 0x2f2   : > { %v2459_v0 = vadd.f32 %v4665_v51, %v2458_v8  ;;  %v3330_v11 = vpop.f32.mrb[30].mxu1 }
 0x2f3   : > { %v2631_v24 = vadd.f32 %v2592_v25, %v2467_v15  ;;  %v2470_v63 = vadd.f32 %v3330_v11, %v4665_v51  ;;  %v2461_v45 = vpop.f32.mrb[31].mxu1  ;;  %v2602_v15 = vsel %vm1243_vm8, %v2600_v59, %v2601_v31 }
 0x2f4   : > { %v2629_v47 = vadd.f32 %v2587_v9, %v2459_v0  ;;  %v2462_v26 = vadd.f32 %v4665_v51, %v2461_v45  ;;  %v2597_v0 = vsel %vm1243_vm8, %v2595_v33, %v2596_v1 }
 0x2f5   : > { %v2647_v28 = vmul.f32 %v2631_v24, %v2631_v24  ;;  %v2632_v3 = vadd.f32 %v2594_v21, %v2470_v63  ;;  %v2711_v61 = vmul.f32 0.5, %v2631_v24 }
 0x2f6   : > { %v2645_v5 = vmul.f32 %v2629_v47, %v2629_v47  ;;  %v2630_v58 = vadd.f32 %v2589_v23, %v2462_v26  ;;  %v2709_v20 = vmul.f32 0.5, %v2629_v47 }
 0x2f7   : > { %v2663_v32 = vmul.f32 0.035677407, %v2647_v28  ;;  %v2648_v62 = vmul.f32 %v2632_v3, %v2632_v3  ;;  %v2712_v6 = vmul.f32 0.5, %v2632_v3 }
 0x2f8   : > { %v2661_v57 = vmul.f32 0.035677407, %v2645_v5  ;;  %v2646_v42 = vmul.f32 %v2630_v58, %v2630_v58  ;;  %v2710_v41 = vmul.f32 0.5, %v2630_v58 }
 0x2f9   : > { %v2679_v22 = vadd.f32 0.7978846, %v2663_v32  ;;  %v2664_v48 = vmul.f32 0.035677407, %v2648_v62 }
 0x2fa   : > { %v2677_v36 = vadd.f32 0.7978846, %v2661_v57  ;;  %v2662_v30 = vmul.f32 0.035677407, %v2646_v42 }
 0x2fb   : > { %v2695_v35 = vmul.f32 %v2679_v22, %v2631_v24  ;;  %v2680_v52 = vadd.f32 0.7978846, %v2664_v48  ;;  %v2604_v24 = vsel %vm1243_vm8, %v2601_v31, %v2603_v4 }
 0x2fc   : > { %v2693_v16 = vmul.f32 %v2677_v36, %v2629_v47  ;;  %v2678_v37 = vadd.f32 0.7978846, %v2662_v30  ;;  %v2599_v47 = vsel %vm1243_vm8, %v2596_v1, %v2598_v10 }
 0x2fd   : > { %3550 = vtanh.f32 %v2695_v35  ;;  %v2696_v19 = vmul.f32 %v2680_v52, %v2632_v3 }
 0x2fe   : > { %3552 = vtanh.f32 %v2693_v16  ;;  %v2694_v7 = vmul.f32 %v2678_v37, %v2630_v58 }
 0x2ff   : > { %3554 = vtanh.f32 %v2696_v19 }
 0x300   : > { %3556 = vtanh.f32 %v2694_v7 }
 0x307   : > { %v3551_v40 = vpop.eup %3550 }
 0x308   : > { %v3553_v12 = vpop.eup %3552  ;;  %v2743_v54 = vadd.f32 1.0, %v3551_v40 }
 0x309   : > { %v3555_v50 = vpop.eup %3554  ;;  %v2741_v17 = vadd.f32 1.0, %v3553_v12 }
 0x30a   : > { %v3557_v60 = vpop.eup %3556  ;;  %v2759_v39 = vmul.f32 %v2743_v54, %v2711_v61  ;;  %v2744_v27 = vadd.f32 1.0, %v3555_v50 }
 0x30b   : > { %v2757_v29 = vmul.f32 %v2741_v17, %v2709_v20  ;;  %v2742_v43 = vadd.f32 1.0, %v3557_v60 }
 0x30c   : > { %2775 = vst.msk [vmem:[%s4107_s13 + $0x50] sm:$0xff] %vm425_vm1, %v2759_v39  ;;  %v2760_v44 = vmul.f32 %v2744_v27, %v2712_v6 }
 0x30d   : > { %2773 = vst.msk [vmem:[%s4107_s13 + $0x40] sm:$0xff] %vm425_vm1, %v2757_v29  ;;  %v2758_v46 = vmul.f32 %v2742_v43, %v2710_v41 }
 0x30e   : > { %2776 = vst.msk [vmem:[%s4107_s13 + $0x58] sm:$0xff] %vm425_vm1, %v2760_v44 }
 0x30f   : > { %2774 = vst.msk [vmem:[%s4107_s13 + $0x48] sm:$0xff] %vm425_vm1, %v2758_v46 }
 0x321   : > { %v3333_v25 = vpop.f32.mrb[32].mxu1 }
 0x322   : > { %v2483_v8 = vadd.f32 %v3333_v25, %v4665_v51  ;;  %v2474_v9 = vpop.f32.mrb[33].mxu1 }
 0x323   : > { %v2475_v11 = vadd.f32 %v4665_v51, %v2474_v9  ;;  %v3334_v21 = vpop.f32.mrb[34].mxu1 }
 0x324   : > { %v2635_v63 = vadd.f32 %v2602_v15, %v2483_v8  ;;  %v2486_v45 = vadd.f32 %v3334_v21, %v4665_v51  ;;  %v2477_v23 = vpop.f32.mrb[35].mxu1 }
 0x325   : > { %v2633_v26 = vadd.f32 %v2597_v0, %v2475_v11  ;;  %v2478_v28 = vadd.f32 %v4665_v51, %v2477_v23 }
 0x326   : > { %v2651_v3 = vmul.f32 %v2635_v63, %v2635_v63  ;;  %v2636_v5 = vadd.f32 %v2604_v24, %v2486_v45  ;;  %v2715_v61 = vmul.f32 0.5, %v2635_v63 }
 0x327   : > { %v2649_v58 = vmul.f32 %v2633_v26, %v2633_v26  ;;  %v2634_v32 = vadd.f32 %v2599_v47, %v2478_v28  ;;  %v2713_v20 = vmul.f32 0.5, %v2633_v26 }
 0x328   : > { %v2667_v62 = vmul.f32 0.035677407, %v2651_v3  ;;  %v2652_v57 = vmul.f32 %v2636_v5, %v2636_v5  ;;  %v2716_v6 = vmul.f32 0.5, %v2636_v5 }
 0x329   : > { %v2665_v42 = vmul.f32 0.035677407, %v2649_v58  ;;  %v2650_v22 = vmul.f32 %v2634_v32, %v2634_v32  ;;  %v2714_v41 = vmul.f32 0.5, %v2634_v32 }
 0x32a   : > { %v2683_v48 = vadd.f32 0.7978846, %v2667_v62  ;;  %v2668_v36 = vmul.f32 0.035677407, %v2652_v57 }
 0x32b   : > { %v2681_v30 = vadd.f32 0.7978846, %v2665_v42  ;;  %v2666_v35 = vmul.f32 0.035677407, %v2650_v22 }
 0x32c   : > { %v2699_v52 = vmul.f32 %v2683_v48, %v2635_v63  ;;  %v2684_v16 = vadd.f32 0.7978846, %v2668_v36 }
 0x32d   : > { %v2697_v37 = vmul.f32 %v2681_v30, %v2633_v26  ;;  %v2682_v19 = vadd.f32 0.7978846, %v2666_v35 }
 0x32e   : > { %3558 = vtanh.f32 %v2699_v52  ;;  %v2700_v51 = vmul.f32 %v2684_v16, %v2636_v5 }
 0x32f   : > { %3560 = vtanh.f32 %v2697_v37  ;;  %v2698_v7 = vmul.f32 %v2682_v19, %v2634_v32 }
 0x330   : > { %3562 = vtanh.f32 %v2700_v51 }
 0x331   : > { %3564 = vtanh.f32 %v2698_v7 }
 0x338   : > { %v3559_v40 = vpop.eup %3558 }
 0x339   : > { %v3561_v12 = vpop.eup %3560  ;;  %v2747_v54 = vadd.f32 1.0, %v3559_v40 }
 0x33a   : > { %v3563_v50 = vpop.eup %3562  ;;  %v2745_v17 = vadd.f32 1.0, %v3561_v12 }
 0x33b   : > { %v3565_v60 = vpop.eup %3564  ;;  %v2763_v39 = vmul.f32 %v2747_v54, %v2715_v61  ;;  %v2748_v27 = vadd.f32 1.0, %v3563_v50 }
 0x33c   : > { %v2761_v29 = vmul.f32 %v2745_v17, %v2713_v20  ;;  %v2746_v43 = vadd.f32 1.0, %v3565_v60 }
 0x33d   : > { %2779 = vst.msk [vmem:[%s4107_s13 + $0x70] sm:$0xff] %vm425_vm1, %v2763_v39  ;;  %v2764_v44 = vmul.f32 %v2748_v27, %v2716_v6 }
 0x33e   : > { %2777 = vst.msk [vmem:[%s4107_s13 + $0x60] sm:$0xff] %vm425_vm1, %v2761_v29  ;;  %v2762_v46 = vmul.f32 %v2746_v43, %v2714_v41 }
 0x33f   : > { %2780 = vst.msk [vmem:[%s4107_s13 + $0x78] sm:$0xff] %vm425_vm1, %v2764_v44 }
 0x340   : > { %2778 = vst.msk [vmem:[%s4107_s13 + $0x68] sm:$0xff] %vm425_vm1, %v2762_v46 }
 0x341   : > { %3589 = shalt.err (!%p3586_p9)
}
 0x342   : > { %s3590_s13 = scalar_lea.hbm %s4743_s9, 2048  ;;  %s3594_s28 = scalar_lea.hbm %s4814_s7, 8192 }
 0x343   : > { %p3591_p10 = scmp.ne.s32.totalorder %s4743_s9, %s3590_s13  ;;  %p3595_p13 = scmp.lt.u32.totalorder %s4743_s9, %s4814_s7 }
 0x344   : > { %p3596_p0 = scmp.lt.u32.totalorder %s3594_s28, %s3590_s13  ;;  %p3598_p2 = scmp.lt.u32.totalorder %s3590_s13, %s4743_s9 }
 0x345   : > { %p3592_p11 = pnand %p3591_p10, %p3770_p3 }
 0x346   : > { %p3597_p1 = por %p3596_p0, %p3595_p13 }
 0x347   : > { %p3593_p12 = pneg %p3592_p11 }
 0x348   : > { %p3599_p4 = por %p3598_p2, %p3597_p1 }
 0x34a   : > { %p3600_p5 = pnand %p3599_p4, %p3593_p12 }
 0x34c   : > { %3603 = shalt.err (!%p3600_p5)
}
 0x34d   : > { %s3677_s17 = smov 128   ;;  %s3678_s21 = smov 8  }
 0x34e   : > { %3340 = dma.vmem_to_hbm [thread:$0]  (%p3770_p3), %s4745_s23, 2048, %s4743_s9, %s4755_s16, %s3677_s17, %s3677_s17, %s3678_s21  }
 0x34f PF: > { %p3346_p6 = scmp.ge.s32.totalorder %s3670_s8, 2  ;;  %s2813_s18 = sand.u32 1, %s3642_s24  }
 0x350   : > { %s2814_s13 = scalar_lea.sflag [#allocation4], %s2813_s18 }
 0x351   : > { %p3343_p7 = pnand %p3346_p6, %p3779_p8 }
 0x353   : > { %3637 = dma.done.wait (!%p3343_p7), %s2814_s13, 2048  }
 0x354   : > { %3639 = vsyncadd (!%p3343_p7), %s2814_s13, 4294965248  ;;  %s20_s8 = sadd.s32 1, %s3670_s8   ;;  %s4823_s24 = smov %s3646_s25 }
 0x355   : > { %p17_p9 = scmp.ge.s32.totalorder %s20_s8, 6   ;;  %s4824_s25 = smov %s3650_s26 }
 0x356   : > { %s4825_s26 = smov %s3788_s19  ;;  %s4826_s27 = smov %s3662_s29 }
 0x357   : > { %s4827_s28 = smov %s3666_s30  ;;  %s4828_s29 = smov %s4831_s11 }
 0x358   : > { %s4829_s30 = smov %s4835_s12  ;;  %19 = sbr.rel (!%p17_p9) target bundleno = 5 (0x5), region = 96 }
 0x35f   :  { %2819 = vsyncpa [#allocation4], 1 }
 0x360   :  { %2821 = vsyncpa [#allocation4 + $0x1], 1 }

</bundles_post_ra>
